<compile_context>
chip_gen: v7x
topology: tpu7x:2x2x1
jax: 0.10.0
libtpu: 0.0.40
codegen_flags: <defaults>
</compile_context>

<pallas_src>
import functools

import numpy as np
import jax
import jax.numpy as jnp
from jax.experimental import pallas as pl
from jax.experimental.pallas import tpu as pltpu


# ---------------------------------------------------------------------------
# Model configuration (mirrors AutoencoderParametric.__init__; 3x3 kernels).
# ---------------------------------------------------------------------------
def layer_configs(input_channels):
    # (kind, c_in, c_out, stride, padding, output_padding)
    return (
        ("conv",  input_channels, 16, 2, 1, 0),
        ("conv",  16,             16, 2, 1, 0),
        ("convT", 16,             32, 2, 1, 1),
        ("convT", 32,             16, 2, 1, 1),
        ("conv",  16, input_channels, 1, 1, 0),
    )


def _out_hw(kind, h, w, stride, pad, out_pad, k=3):
    if kind == "conv":
        return (h + 2 * pad - k) // stride + 1, (w + 2 * pad - k) // stride + 1
    return ((h - 1) * stride - 2 * pad + k + out_pad,
            (w - 1) * stride - 2 * pad + k + out_pad)


# ---------------------------------------------------------------------------
# Setup-time (numpy) packing: tap-selection matrices + stacked tap weights.
# ---------------------------------------------------------------------------
def _selection_matrices(kind, h, w, oh, ow, stride, pad):
    """R[t, p_in, p_out] = 1 iff input pixel p_in feeds output pixel p_out
    under kernel tap t = dy*3 + dx (encodes stride/padding/output_padding and
    conv vs. transposed-conv geometry)."""
    r = np.zeros((9, h * w, oh * ow), np.float32)
    for dy in range(3):
        for dx in range(3):
            t = dy * 3 + dx
            if kind == "conv":
                oy, ox = np.arange(oh), np.arange(ow)
                iy, ix = oy * stride - pad + dy, ox * stride - pad + dx
            else:                                  # transposed conv
                iy, ix = np.arange(h), np.arange(w)
                oy, ox = iy * stride - pad + dy, ix * stride - pad + dx
            my = (iy >= 0) & (iy < h) & (oy >= 0) & (oy < oh)
            mx = (ix >= 0) & (ix < w) & (ox >= 0) & (ox < ow)
            iy, oy, ix, ox = iy[my], oy[my], ix[mx], ox[mx]
            src = (iy[:, None] * w + ix[None, :]).ravel()
            dst = (oy[:, None] * ow + ox[None, :]).ravel()
            r[t, src, dst] = 1.0
    return r


def prepare_inputs(params, input_channels, height, width):
    """Pack PyTorch-layout parameters + constant selection matrices into the
    flat operand list the fused kernel consumes.  Run ONCE outside jit."""
    flat, metas = [], []
    h, w = height, width
    out_c = input_channels
    r_bytes = 0
    for (kind, c_in, c_out, stride, pad, out_pad), p in zip(
            layer_configs(input_channels), params):
        wt = np.asarray(p["w"], np.float32)
        if kind == "convT":                        # (Cin,Cout,3,3)->(Cout,Cin,3,3)
            wt = wt.transpose(1, 0, 2, 3)
        # Row t*Cout + o of W_stack holds tap t of output channel o.
        w_stack = wt.transpose(2, 3, 0, 1).reshape(9 * c_out, c_in)
        oh, ow = _out_hw(kind, h, w, stride, pad, out_pad)
        r = _selection_matrices(kind, h, w, oh, ow, stride, pad)
        r_cat = r.reshape(9 * h * w, oh * ow)      # taps stacked on contracting dim
        r_bytes += r_cat.size * 2
        b = np.asarray(p["b"], np.float32).reshape(c_out, 1)
        # bf16 MXU operands (0/1 R entries are exact in bf16).  Cin==1 layers
        # keep f32 weights: they run on the VPU as an outer product, not MXU.
        w_dtype = jnp.float32 if c_in == 1 else jnp.bfloat16
        flat += [jnp.asarray(w_stack, w_dtype),
                 jnp.asarray(r_cat, jnp.bfloat16),
                 jnp.asarray(b, jnp.float32)]
        metas.append((c_in, c_out, h * w, oh * ow))
        h, w, out_c = oh, ow, c_out
    # Item 9: dense R scales as 9*(H*W)^2 per layer -- guard VMEM (v7x: 64 MiB).
    # TODO(synk): replace the dense R matmul with strided lane selection
    # (pl.ds with stride / pltpu.roll + masked adds) before scaling image size.
    assert r_bytes < 24 * 1024 * 1024, "dense selection matrices too large for VMEM"
    return tuple(flat), tuple(metas), (out_c, h, w)


# ---------------------------------------------------------------------------
# The fused Pallas kernel: whole autoencoder forward, one batch element / step.
# ---------------------------------------------------------------------------
def _make_kernel(metas, n_coef):
    n_layers = len(metas)

    def kernel(coef_ref, x_ref, *refs):
        layer_refs = refs[:3 * n_layers]          # (w, r_cat, b) per layer
        o_ref = refs[3 * n_layers]
        g2_refs = refs[3 * n_layers + 1:]         # per-layer regroup scratch

        # Item 8: hoist the SMEM coefficient reads out of the layer loop.
        coefs = [coef_ref[d] for d in range(n_coef)]

        h = x_ref[0]                                           # (Cin, H*W) f32
        for li, (cin, cout, hw_in, hw_out) in enumerate(metas):
            w_ref, r_ref, b_ref = layer_refs[3 * li:3 * li + 3]
            g2_ref = g2_refs[li]

            # ---- stage 1: all 9 taps at once, regrouped into G2 (bf16) ----
            if cin == 1:
                # Item 6: a K==1 matmul is an outer product -> VPU broadcast.
                for t in range(9):
                    piece = w_ref[t * cout:(t + 1) * cout, :] * h
                    g2_ref[:, t * hw_in:(t + 1) * hw_in] = (
                        piece.astype(jnp.bfloat16))
            else:
                g = jnp.dot(w_ref[...], h.astype(jnp.bfloat16),
                            preferred_element_type=jnp.float32)  # (9*Cout, HWin)
                for t in range(9):                 # 9 cheap lane-offset copies
                    g2_ref[:, t * hw_in:(t + 1) * hw_in] = (
                        g[t * cout:(t + 1) * cout, :].astype(jnp.bfloat16))

            # ---- stage 2: tap-sum inside one MXU contraction (K = 9*HWin) --
            acc = jnp.dot(g2_ref[...], r_ref[...],
                          preferred_element_type=jnp.float32)    # (Cout, HWout)
            acc = acc + b_ref[...]                               # lane-broadcast

            # Parametric activation: Horner over RUNTIME coefficients.
            if n_coef == 1:
                y = jnp.zeros_like(acc) + coefs[0]
            else:
                y = acc * coefs[n_coef - 1] + coefs[n_coef - 2]
                for d in range(n_coef - 3, -1, -1):
                    y = y * acc + coefs[d]
            h = y

        o_ref[0] = h                               # lane-dense (Cout, H*W) store

    return kernel


@functools.partial(jax.jit, static_argnums=(3, 4))
def autoencoder_forward(x, act_coeffs, flat_inputs, metas, out_shape):
    n, c, hh, ww = x.shape
    oc, oh, ow = out_shape
    hw_in, hw_out = hh * ww, oh * ow
    n_coef = act_coeffs.shape[0]

    x3 = x.astype(jnp.float32).reshape(n, c, hw_in)        # free reshape of NCHW
    kernel = _make_kernel(metas, n_coef)

    # Batch is the grid; weights/R/bias use constant index maps -> fetched once,
    # VMEM resident; activations/outputs are pipelined per batch element.
    in_specs = [pl.BlockSpec((1, c, hw_in), lambda i, coef: (i, 0, 0))]
    for arr in flat_inputs:
        in_specs.append(pl.BlockSpec(arr.shape, lambda i, coef: (0, 0)))
    out_spec = pl.BlockSpec((1, oc, hw_out), lambda i, coef: (i, 0, 0))

    grid_spec = pltpu.PrefetchScalarGridSpec(
        num_scalar_prefetch=1,                     # activation coefficients (SMEM)
        grid=(n,),
        in_specs=in_specs,
        out_specs=out_spec,
        scratch_shapes=[pltpu.VMEM((cout, 9 * hwi), jnp.bfloat16)
                        for (_, cout, hwi, _) in metas],
    )

    out3 = pl.pallas_call(
        kernel,
        out_shape=jax.ShapeDtypeStruct((n, oc, hw_out), jnp.float32),
        grid_spec=grid_spec,
        compiler_params=pltpu.CompilerParams(
            dimension_semantics=("parallel",)),    # v7x: two TCs split the batch
    )(act_coeffs.astype(jnp.float32), x3, *flat_inputs)

    return out3.reshape(n, oc, oh, ow)             # free reshape back to NCHW


# ---------------------------------------------------------------------------
# Deterministic init (PyTorch-style; ConvTranspose2d fan_in = dim1 * k * k).
# ---------------------------------------------------------------------------
def init_params(key, input_channels=1):
    params = []
    for i, (kind, c_in, c_out, *_rest) in enumerate(layer_configs(input_channels)):
        kw, kb = jax.random.split(jax.random.fold_in(key, i))
        if kind == "conv":
            shape, fan_in = (c_out, c_in, 3, 3), c_in * 9
        else:
            shape, fan_in = (c_in, c_out, 3, 3), c_out * 9
        bound = 1.0 / float(fan_in) ** 0.5
        params.append({
            "w": jax.random.uniform(kw, shape, jnp.float32, -bound, bound),
            "b": jax.random.uniform(kb, (c_out,), jnp.float32, -bound, bound),
        })
    return params


# ---------------------------------------------------------------------------
# Independent float64 numpy reference (self-check).
# ---------------------------------------------------------------------------
def _np_reference(x, params, coeffs, input_channels):
    def act(v):
        y = np.zeros_like(v) + coeffs[-1]
        for cc in coeffs[-2::-1]:
            y = y * v + cc
        return y

    h = np.asarray(x, np.float64)
    for (kind, c_in, c_out, stride, pad, out_pad), p in zip(
            layer_configs(input_channels), params):
        wt = np.asarray(p["w"], np.float64)
        b = np.asarray(p["b"], np.float64)
        n, _, hh, ww = h.shape
        oh, ow = _out_hw(kind, hh, ww, stride, pad, out_pad)
        out = np.zeros((n, c_out, oh, ow), np.float64)
        if kind == "conv":
            hp = np.pad(h, ((0, 0), (0, 0), (pad, pad), (pad, pad)))
            for dy in range(3):
                for dx in range(3):
                    patch = hp[:, :, dy:dy + stride * oh:stride,
                               dx:dx + stride * ow:stride]
                    out += np.einsum("nchw,oc->nohw", patch, wt[:, :, dy, dx])
        else:
            for dy in range(3):
                for dx in range(3):
                    contrib = np.einsum("nchw,co->nohw", h, wt[:, :, dy, dx])
                    iy, ix = np.arange(hh), np.arange(ww)
                    oy, ox = iy * stride - pad + dy, ix * stride - pad + dx
                    my = (oy >= 0) & (oy < oh)
                    mx = (ox >= 0) & (ox < ow)
                    out[:, :, oy[my][:, None], ox[mx][None, :]] += \
                        contrib[:, :, iy[my][:, None], ix[mx][None, :]]
        h = act(out + b.reshape(1, c_out, 1, 1))
    return h


if __name__ == "__main__":
    key = jax.random.PRNGKey(0)
    kx, kp = jax.random.split(key)

    input_channels = 1
    batch, height, width = 2, 16, 16
    x = jax.random.normal(kx, (batch, input_channels, height, width), jnp.float32)

    params = init_params(kp, input_channels)
    # TODO(synk): ParametricActivation is undefined in the source; modeled as
    # f(v) = c0 + c1*v + c2*v^2 with runtime coefficients.
    act_coeffs = jnp.asarray([0.0, 1.0, 0.1], jnp.float32)

    flat_inputs, metas, out_shape = prepare_inputs(params, input_channels,
                                                   height, width)

    out = autoencoder_forward(x, act_coeffs, flat_inputs, metas, out_shape)
    out = np.asarray(jax.block_until_ready(out))

    assert out.shape == (batch, input_channels, height, width), out.shape
    assert np.all(np.isfinite(out))

    ref = _np_reference(np.asarray(x), params,
                        [float(v) for v in np.asarray(act_coeffs)],
                        input_channels)
    err = np.abs(out - ref)
    # bf16 MXU operands (review item 2) introduce ~2^-9 relative rounding per
    # operand per layer; budget that against the float64 reference.
    bound = 5e-3 + 4e-2 * np.abs(ref)
    assert np.all(err <= bound), (
        f"max abs err {float(err.max())}, worst err/bound "
        f"{float((err / bound).max())}")
    print("KERNEL_OK")
</pallas_src>

<mosaic_0001>
module attributes {stable_mosaic.version = 11 : i64} {
  func.func @kernel(%arg0: i32, %arg1: memref<3xf32, #tpu.memory_space<smem>>, %arg2: memref<1x1x256xf32, #tpu.memory_space<vmem>>, %arg3: memref<144x1xf32, #tpu.memory_space<vmem>>, %arg4: memref<2304x64xbf16, #tpu.memory_space<vmem>>, %arg5: memref<16x1xf32, #tpu.memory_space<vmem>>, %arg6: memref<144x16xbf16, #tpu.memory_space<vmem>>, %arg7: memref<576x16xbf16, #tpu.memory_space<vmem>>, %arg8: memref<16x1xf32, #tpu.memory_space<vmem>>, %arg9: memref<288x16xbf16, #tpu.memory_space<vmem>>, %arg10: memref<144x64xbf16, #tpu.memory_space<vmem>>, %arg11: memref<32x1xf32, #tpu.memory_space<vmem>>, %arg12: memref<144x32xbf16, #tpu.memory_space<vmem>>, %arg13: memref<576x256xbf16, #tpu.memory_space<vmem>>, %arg14: memref<16x1xf32, #tpu.memory_space<vmem>>, %arg15: memref<9x16xbf16, #tpu.memory_space<vmem>>, %arg16: memref<2304x256xbf16, #tpu.memory_space<vmem>>, %arg17: memref<1x1xf32, #tpu.memory_space<vmem>>, %arg18: memref<1x1x256xf32, #tpu.memory_space<vmem>>, %arg19: memref<16x2304xbf16, #tpu.memory_space<vmem>>, %arg20: memref<16x576xbf16, #tpu.memory_space<vmem>>, %arg21: memref<32x144xbf16, #tpu.memory_space<vmem>>, %arg22: memref<16x576xbf16, #tpu.memory_space<vmem>>, %arg23: memref<1x2304xbf16, #tpu.memory_space<vmem>>) attributes {dimension_semantics = [#tpu.dimension_semantics<parallel>], iteration_bounds = array<i64: 2>, scalar_prefetch = 1 : i64, scratch_operands = 5 : i64, tpu.core_type = #tpu.core_type<tc>, window_params = [{transform_indices = @transform_0, window_bounds = array<i64: 1, 1, 256>}, {pipeline_mode = #tpu.pipeline_mode<synchronous>, transform_indices = @transform_1, window_bounds = array<i64: 144, 1>}, {pipeline_mode = #tpu.pipeline_mode<synchronous>, transform_indices = @transform_2, window_bounds = array<i64: 2304, 64>}, {pipeline_mode = #tpu.pipeline_mode<synchronous>, transform_indices = @transform_3, window_bounds = array<i64: 16, 1>}, {pipeline_mode = #tpu.pipeline_mode<synchronous>, transform_indices = @transform_4, window_bounds = array<i64: 144, 16>}, {pipeline_mode = #tpu.pipeline_mode<synchronous>, transform_indices = @transform_5, window_bounds = array<i64: 576, 16>}, {pipeline_mode = #tpu.pipeline_mode<synchronous>, transform_indices = @transform_6, window_bounds = array<i64: 16, 1>}, {pipeline_mode = #tpu.pipeline_mode<synchronous>, transform_indices = @transform_7, window_bounds = array<i64: 288, 16>}, {pipeline_mode = #tpu.pipeline_mode<synchronous>, transform_indices = @transform_8, window_bounds = array<i64: 144, 64>}, {pipeline_mode = #tpu.pipeline_mode<synchronous>, transform_indices = @transform_9, window_bounds = array<i64: 32, 1>}, {pipeline_mode = #tpu.pipeline_mode<synchronous>, transform_indices = @transform_10, window_bounds = array<i64: 144, 32>}, {pipeline_mode = #tpu.pipeline_mode<synchronous>, transform_indices = @transform_11, window_bounds = array<i64: 576, 256>}, {pipeline_mode = #tpu.pipeline_mode<synchronous>, transform_indices = @transform_12, window_bounds = array<i64: 16, 1>}, {pipeline_mode = #tpu.pipeline_mode<synchronous>, transform_indices = @transform_13, window_bounds = array<i64: 9, 16>}, {pipeline_mode = #tpu.pipeline_mode<synchronous>, transform_indices = @transform_14, window_bounds = array<i64: 2304, 256>}, {pipeline_mode = #tpu.pipeline_mode<synchronous>, transform_indices = @transform_15, window_bounds = array<i64: 1, 1>}, {transform_indices = @transform_16, window_bounds = array<i64: 1, 1, 256>}]} {
    %c0 = arith.constant 0 : index
    %0 = memref.load %arg1[%c0] : memref<3xf32, #tpu.memory_space<smem>>
    %c1 = arith.constant 1 : index
    %1 = memref.load %arg1[%c1] : memref<3xf32, #tpu.memory_space<smem>>
    %c2 = arith.constant 2 : index
    %2 = memref.load %arg1[%c2] : memref<3xf32, #tpu.memory_space<smem>>
    %c0_0 = arith.constant 0 : index
    %c0_1 = arith.constant 0 : index
    %c0_2 = arith.constant 0 : index
    %3 = vector.load %arg2[%c0_0, %c0_1, %c0_2] : memref<1x1x256xf32, #tpu.memory_space<vmem>>, vector<1x1x256xf32>
    %4 = vector.shape_cast %3 : vector<1x1x256xf32> to vector<1x256xf32>
    %c0_3 = arith.constant 0 : index
    %c0_4 = arith.constant 0 : index
    %5 = vector.load %arg3[%c0_3, %c0_4] : memref<144x1xf32, #tpu.memory_space<vmem>>, vector<16x1xf32>
    %6 = vector.broadcast %5 : vector<16x1xf32> to vector<16x256xf32>
    %7 = vector.broadcast %4 : vector<1x256xf32> to vector<16x256xf32>
    %8 = arith.mulf %6, %7 : vector<16x256xf32>
    %9 = arith.truncf %8 : vector<16x256xf32> to vector<16x256xbf16>
    %c0_5 = arith.constant 0 : index
    %c0_6 = arith.constant 0 : index
    %10 = vector.load %arg19[%c0_5, %c0_6] : memref<16x2304xbf16, #tpu.memory_space<vmem>>, vector<16x256xbf16>
    tpu.vector_store %arg19[%c0_5, %c0_6], %9 {strides = array<i32>} : memref<16x2304xbf16, #tpu.memory_space<vmem>>, vector<16x256xbf16>,
    %c16 = arith.constant 16 : index
    %c0_7 = arith.constant 0 : index
    %11 = vector.load %arg3[%c16, %c0_7] : memref<144x1xf32, #tpu.memory_space<vmem>>, vector<16x1xf32>
    %12 = vector.broadcast %11 : vector<16x1xf32> to vector<16x256xf32>
    %13 = vector.broadcast %4 : vector<1x256xf32> to vector<16x256xf32>
    %14 = arith.mulf %12, %13 : vector<16x256xf32>
    %15 = arith.truncf %14 : vector<16x256xf32> to vector<16x256xbf16>
    %c0_8 = arith.constant 0 : index
    %c256 = arith.constant 256 : index
    %16 = vector.load %arg19[%c0_8, %c256] : memref<16x2304xbf16, #tpu.memory_space<vmem>>, vector<16x256xbf16>
    tpu.vector_store %arg19[%c0_8, %c256], %15 {strides = array<i32>} : memref<16x2304xbf16, #tpu.memory_space<vmem>>, vector<16x256xbf16>,
    %c32 = arith.constant 32 : index
    %c0_9 = arith.constant 0 : index
    %17 = vector.load %arg3[%c32, %c0_9] : memref<144x1xf32, #tpu.memory_space<vmem>>, vector<16x1xf32>
    %18 = vector.broadcast %17 : vector<16x1xf32> to vector<16x256xf32>
    %19 = vector.broadcast %4 : vector<1x256xf32> to vector<16x256xf32>
    %20 = arith.mulf %18, %19 : vector<16x256xf32>
    %21 = arith.truncf %20 : vector<16x256xf32> to vector<16x256xbf16>
    %c0_10 = arith.constant 0 : index
    %c512 = arith.constant 512 : index
    %22 = vector.load %arg19[%c0_10, %c512] : memref<16x2304xbf16, #tpu.memory_space<vmem>>, vector<16x256xbf16>
    tpu.vector_store %arg19[%c0_10, %c512], %21 {strides = array<i32>} : memref<16x2304xbf16, #tpu.memory_space<vmem>>, vector<16x256xbf16>,
    %c48 = arith.constant 48 : index
    %c0_11 = arith.constant 0 : index
    %23 = vector.load %arg3[%c48, %c0_11] : memref<144x1xf32, #tpu.memory_space<vmem>>, vector<16x1xf32>
    %24 = vector.broadcast %23 : vector<16x1xf32> to vector<16x256xf32>
    %25 = vector.broadcast %4 : vector<1x256xf32> to vector<16x256xf32>
    %26 = arith.mulf %24, %25 : vector<16x256xf32>
    %27 = arith.truncf %26 : vector<16x256xf32> to vector<16x256xbf16>
    %c0_12 = arith.constant 0 : index
    %c768 = arith.constant 768 : index
    %28 = vector.load %arg19[%c0_12, %c768] : memref<16x2304xbf16, #tpu.memory_space<vmem>>, vector<16x256xbf16>
    tpu.vector_store %arg19[%c0_12, %c768], %27 {strides = array<i32>} : memref<16x2304xbf16, #tpu.memory_space<vmem>>, vector<16x256xbf16>,
    %c64 = arith.constant 64 : index
    %c0_13 = arith.constant 0 : index
    %29 = vector.load %arg3[%c64, %c0_13] : memref<144x1xf32, #tpu.memory_space<vmem>>, vector<16x1xf32>
    %30 = vector.broadcast %29 : vector<16x1xf32> to vector<16x256xf32>
    %31 = vector.broadcast %4 : vector<1x256xf32> to vector<16x256xf32>
    %32 = arith.mulf %30, %31 : vector<16x256xf32>
    %33 = arith.truncf %32 : vector<16x256xf32> to vector<16x256xbf16>
    %c0_14 = arith.constant 0 : index
    %c1024 = arith.constant 1024 : index
    %34 = vector.load %arg19[%c0_14, %c1024] : memref<16x2304xbf16, #tpu.memory_space<vmem>>, vector<16x256xbf16>
    tpu.vector_store %arg19[%c0_14, %c1024], %33 {strides = array<i32>} : memref<16x2304xbf16, #tpu.memory_space<vmem>>, vector<16x256xbf16>,
    %c80 = arith.constant 80 : index
    %c0_15 = arith.constant 0 : index
    %35 = vector.load %arg3[%c80, %c0_15] : memref<144x1xf32, #tpu.memory_space<vmem>>, vector<16x1xf32>
    %36 = vector.broadcast %35 : vector<16x1xf32> to vector<16x256xf32>
    %37 = vector.broadcast %4 : vector<1x256xf32> to vector<16x256xf32>
    %38 = arith.mulf %36, %37 : vector<16x256xf32>
    %39 = arith.truncf %38 : vector<16x256xf32> to vector<16x256xbf16>
    %c0_16 = arith.constant 0 : index
    %c1280 = arith.constant 1280 : index
    %40 = vector.load %arg19[%c0_16, %c1280] : memref<16x2304xbf16, #tpu.memory_space<vmem>>, vector<16x256xbf16>
    tpu.vector_store %arg19[%c0_16, %c1280], %39 {strides = array<i32>} : memref<16x2304xbf16, #tpu.memory_space<vmem>>, vector<16x256xbf16>,
    %c96 = arith.constant 96 : index
    %c0_17 = arith.constant 0 : index
    %41 = vector.load %arg3[%c96, %c0_17] : memref<144x1xf32, #tpu.memory_space<vmem>>, vector<16x1xf32>
    %42 = vector.broadcast %41 : vector<16x1xf32> to vector<16x256xf32>
    %43 = vector.broadcast %4 : vector<1x256xf32> to vector<16x256xf32>
    %44 = arith.mulf %42, %43 : vector<16x256xf32>
    %45 = arith.truncf %44 : vector<16x256xf32> to vector<16x256xbf16>
    %c0_18 = arith.constant 0 : index
    %c1536 = arith.constant 1536 : index
    %46 = vector.load %arg19[%c0_18, %c1536] : memref<16x2304xbf16, #tpu.memory_space<vmem>>, vector<16x256xbf16>
    tpu.vector_store %arg19[%c0_18, %c1536], %45 {strides = array<i32>} : memref<16x2304xbf16, #tpu.memory_space<vmem>>, vector<16x256xbf16>,
    %c112 = arith.constant 112 : index
    %c0_19 = arith.constant 0 : index
    %47 = vector.load %arg3[%c112, %c0_19] : memref<144x1xf32, #tpu.memory_space<vmem>>, vector<16x1xf32>
    %48 = vector.broadcast %47 : vector<16x1xf32> to vector<16x256xf32>
    %49 = vector.broadcast %4 : vector<1x256xf32> to vector<16x256xf32>
    %50 = arith.mulf %48, %49 : vector<16x256xf32>
    %51 = arith.truncf %50 : vector<16x256xf32> to vector<16x256xbf16>
    %c0_20 = arith.constant 0 : index
    %c1792 = arith.constant 1792 : index
    %52 = vector.load %arg19[%c0_20, %c1792] : memref<16x2304xbf16, #tpu.memory_space<vmem>>, vector<16x256xbf16>
    tpu.vector_store %arg19[%c0_20, %c1792], %51 {strides = array<i32>} : memref<16x2304xbf16, #tpu.memory_space<vmem>>, vector<16x256xbf16>,
    %c128 = arith.constant 128 : index
    %c0_21 = arith.constant 0 : index
    %53 = vector.load %arg3[%c128, %c0_21] : memref<144x1xf32, #tpu.memory_space<vmem>>, vector<16x1xf32>
    %54 = vector.broadcast %53 : vector<16x1xf32> to vector<16x256xf32>
    %55 = vector.broadcast %4 : vector<1x256xf32> to vector<16x256xf32>
    %56 = arith.mulf %54, %55 : vector<16x256xf32>
    %57 = arith.truncf %56 : vector<16x256xf32> to vector<16x256xbf16>
    %c0_22 = arith.constant 0 : index
    %c2048 = arith.constant 2048 : index
    %58 = vector.load %arg19[%c0_22, %c2048] : memref<16x2304xbf16, #tpu.memory_space<vmem>>, vector<16x256xbf16>
    tpu.vector_store %arg19[%c0_22, %c2048], %57 {strides = array<i32>} : memref<16x2304xbf16, #tpu.memory_space<vmem>>, vector<16x256xbf16>,
    %c0_23 = arith.constant 0 : index
    %c0_24 = arith.constant 0 : index
    %59 = vector.load %arg19[%c0_23, %c0_24] : memref<16x2304xbf16, #tpu.memory_space<vmem>>, vector<16x2304xbf16>
    %c0_25 = arith.constant 0 : index
    %c0_26 = arith.constant 0 : index
    %60 = vector.load %arg4[%c0_25, %c0_26] : memref<2304x64xbf16, #tpu.memory_space<vmem>>, vector<2304x64xbf16>
    %cst = arith.constant dense<0.000000e+00> : vector<16x64xf32>
    %61 = tpu.matmul %59, %60, %cst {dimension_numbers = #tpu.dot_dimension_numbers<[1], [0], [0], [1], [0, 0, 1, 1], [], []>} : vector<16x2304xbf16>, vector<2304x64xbf16>, vector<16x64xf32> -> vector<16x64xf32>
    %c0_27 = arith.constant 0 : index
    %c0_28 = arith.constant 0 : index
    %62 = vector.load %arg5[%c0_27, %c0_28] : memref<16x1xf32, #tpu.memory_space<vmem>>, vector<16x1xf32>
    %63 = vector.broadcast %62 : vector<16x1xf32> to vector<16x64xf32>
    %64 = arith.addf %61, %63 : vector<16x64xf32>
    %65 = vector.broadcast %2 : f32 to vector<16x64xf32>
    %66 = arith.mulf %64, %65 : vector<16x64xf32>
    %67 = vector.broadcast %1 : f32 to vector<16x64xf32>
    %68 = arith.addf %66, %67 : vector<16x64xf32>
    %69 = arith.mulf %68, %64 : vector<16x64xf32>
    %70 = vector.broadcast %0 : f32 to vector<16x64xf32>
    %71 = arith.addf %69, %70 : vector<16x64xf32>
    %c0_29 = arith.constant 0 : index
    %c0_30 = arith.constant 0 : index
    %72 = vector.load %arg6[%c0_29, %c0_30] : memref<144x16xbf16, #tpu.memory_space<vmem>>, vector<144x16xbf16>
    %73 = arith.truncf %71 : vector<16x64xf32> to vector<16x64xbf16>
    %cst_31 = arith.constant dense<0.000000e+00> : vector<144x64xf32>
    %74 = tpu.matmul %72, %73, %cst_31 {dimension_numbers = #tpu.dot_dimension_numbers<[1], [0], [0], [1], [0, 0, 1, 1], [], []>} : vector<144x16xbf16>, vector<16x64xbf16>, vector<144x64xf32> -> vector<144x64xf32>
    %75 = vector.extract_strided_slice %74 {offsets = [0, 0], sizes = [16, 64], strides = [1, 1]} : vector<144x64xf32> to vector<16x64xf32>
    %76 = arith.truncf %75 : vector<16x64xf32> to vector<16x64xbf16>
    %c0_32 = arith.constant 0 : index
    %c0_33 = arith.constant 0 : index
    %77 = vector.load %arg20[%c0_32, %c0_33] : memref<16x576xbf16, #tpu.memory_space<vmem>>, vector<16x64xbf16>
    tpu.vector_store %arg20[%c0_32, %c0_33], %76 {strides = array<i32>} : memref<16x576xbf16, #tpu.memory_space<vmem>>, vector<16x64xbf16>,
    %78 = vector.extract_strided_slice %74 {offsets = [16, 0], sizes = [16, 64], strides = [1, 1]} : vector<144x64xf32> to vector<16x64xf32>
    %79 = arith.truncf %78 : vector<16x64xf32> to vector<16x64xbf16>
    %c0_34 = arith.constant 0 : index
    %c64_35 = arith.constant 64 : index
    %80 = vector.load %arg20[%c0_34, %c64_35] : memref<16x576xbf16, #tpu.memory_space<vmem>>, vector<16x64xbf16>
    tpu.vector_store %arg20[%c0_34, %c64_35], %79 {strides = array<i32>} : memref<16x576xbf16, #tpu.memory_space<vmem>>, vector<16x64xbf16>,
    %81 = vector.extract_strided_slice %74 {offsets = [32, 0], sizes = [16, 64], strides = [1, 1]} : vector<144x64xf32> to vector<16x64xf32>
    %82 = arith.truncf %81 : vector<16x64xf32> to vector<16x64xbf16>
    %c0_36 = arith.constant 0 : index
    %c128_37 = arith.constant 128 : index
    %83 = vector.load %arg20[%c0_36, %c128_37] : memref<16x576xbf16, #tpu.memory_space<vmem>>, vector<16x64xbf16>
    tpu.vector_store %arg20[%c0_36, %c128_37], %82 {strides = array<i32>} : memref<16x576xbf16, #tpu.memory_space<vmem>>, vector<16x64xbf16>,
    %84 = vector.extract_strided_slice %74 {offsets = [48, 0], sizes = [16, 64], strides = [1, 1]} : vector<144x64xf32> to vector<16x64xf32>
    %85 = arith.truncf %84 : vector<16x64xf32> to vector<16x64xbf16>
    %c0_38 = arith.constant 0 : index
    %c192 = arith.constant 192 : index
    %86 = vector.load %arg20[%c0_38, %c192] : memref<16x576xbf16, #tpu.memory_space<vmem>>, vector<16x64xbf16>
    tpu.vector_store %arg20[%c0_38, %c192], %85 {strides = array<i32>} : memref<16x576xbf16, #tpu.memory_space<vmem>>, vector<16x64xbf16>,
    %87 = vector.extract_strided_slice %74 {offsets = [64, 0], sizes = [16, 64], strides = [1, 1]} : vector<144x64xf32> to vector<16x64xf32>
    %88 = arith.truncf %87 : vector<16x64xf32> to vector<16x64xbf16>
    %c0_39 = arith.constant 0 : index
    %c256_40 = arith.constant 256 : index
    %89 = vector.load %arg20[%c0_39, %c256_40] : memref<16x576xbf16, #tpu.memory_space<vmem>>, vector<16x64xbf16>
    tpu.vector_store %arg20[%c0_39, %c256_40], %88 {strides = array<i32>} : memref<16x576xbf16, #tpu.memory_space<vmem>>, vector<16x64xbf16>,
    %90 = vector.extract_strided_slice %74 {offsets = [80, 0], sizes = [16, 64], strides = [1, 1]} : vector<144x64xf32> to vector<16x64xf32>
    %91 = arith.truncf %90 : vector<16x64xf32> to vector<16x64xbf16>
    %c0_41 = arith.constant 0 : index
    %c320 = arith.constant 320 : index
    %92 = vector.load %arg20[%c0_41, %c320] : memref<16x576xbf16, #tpu.memory_space<vmem>>, vector<16x64xbf16>
    tpu.vector_store %arg20[%c0_41, %c320], %91 {strides = array<i32>} : memref<16x576xbf16, #tpu.memory_space<vmem>>, vector<16x64xbf16>,
    %93 = vector.extract_strided_slice %74 {offsets = [96, 0], sizes = [16, 64], strides = [1, 1]} : vector<144x64xf32> to vector<16x64xf32>
    %94 = arith.truncf %93 : vector<16x64xf32> to vector<16x64xbf16>
    %c0_42 = arith.constant 0 : index
    %c384 = arith.constant 384 : index
    %95 = vector.load %arg20[%c0_42, %c384] : memref<16x576xbf16, #tpu.memory_space<vmem>>, vector<16x64xbf16>
    tpu.vector_store %arg20[%c0_42, %c384], %94 {strides = array<i32>} : memref<16x576xbf16, #tpu.memory_space<vmem>>, vector<16x64xbf16>,
    %96 = vector.extract_strided_slice %74 {offsets = [112, 0], sizes = [16, 64], strides = [1, 1]} : vector<144x64xf32> to vector<16x64xf32>
    %97 = arith.truncf %96 : vector<16x64xf32> to vector<16x64xbf16>
    %c0_43 = arith.constant 0 : index
    %c448 = arith.constant 448 : index
    %98 = vector.load %arg20[%c0_43, %c448] : memref<16x576xbf16, #tpu.memory_space<vmem>>, vector<16x64xbf16>
    tpu.vector_store %arg20[%c0_43, %c448], %97 {strides = array<i32>} : memref<16x576xbf16, #tpu.memory_space<vmem>>, vector<16x64xbf16>,
    %99 = vector.extract_strided_slice %74 {offsets = [128, 0], sizes = [16, 64], strides = [1, 1]} : vector<144x64xf32> to vector<16x64xf32>
    %100 = arith.truncf %99 : vector<16x64xf32> to vector<16x64xbf16>
    %c0_44 = arith.constant 0 : index
    %c512_45 = arith.constant 512 : index
    %101 = vector.load %arg20[%c0_44, %c512_45] : memref<16x576xbf16, #tpu.memory_space<vmem>>, vector<16x64xbf16>
    tpu.vector_store %arg20[%c0_44, %c512_45], %100 {strides = array<i32>} : memref<16x576xbf16, #tpu.memory_space<vmem>>, vector<16x64xbf16>,
    %c0_46 = arith.constant 0 : index
    %c0_47 = arith.constant 0 : index
    %102 = vector.load %arg20[%c0_46, %c0_47] : memref<16x576xbf16, #tpu.memory_space<vmem>>, vector<16x576xbf16>
    %c0_48 = arith.constant 0 : index
    %c0_49 = arith.constant 0 : index
    %103 = vector.load %arg7[%c0_48, %c0_49] : memref<576x16xbf16, #tpu.memory_space<vmem>>, vector<576x16xbf16>
    %cst_50 = arith.constant dense<0.000000e+00> : vector<16x16xf32>
    %104 = tpu.matmul %102, %103, %cst_50 {dimension_numbers = #tpu.dot_dimension_numbers<[1], [0], [0], [1], [0, 0, 1, 1], [], []>} : vector<16x576xbf16>, vector<576x16xbf16>, vector<16x16xf32> -> vector<16x16xf32>
    %c0_51 = arith.constant 0 : index
    %c0_52 = arith.constant 0 : index
    %105 = vector.load %arg8[%c0_51, %c0_52] : memref<16x1xf32, #tpu.memory_space<vmem>>, vector<16x1xf32>
    %106 = vector.broadcast %105 : vector<16x1xf32> to vector<16x16xf32>
    %107 = arith.addf %104, %106 : vector<16x16xf32>
    %108 = vector.broadcast %2 : f32 to vector<16x16xf32>
    %109 = arith.mulf %107, %108 : vector<16x16xf32>
    %110 = vector.broadcast %1 : f32 to vector<16x16xf32>
    %111 = arith.addf %109, %110 : vector<16x16xf32>
    %112 = arith.mulf %111, %107 : vector<16x16xf32>
    %113 = vector.broadcast %0 : f32 to vector<16x16xf32>
    %114 = arith.addf %112, %113 : vector<16x16xf32>
    %c0_53 = arith.constant 0 : index
    %c0_54 = arith.constant 0 : index
    %115 = vector.load %arg9[%c0_53, %c0_54] : memref<288x16xbf16, #tpu.memory_space<vmem>>, vector<288x16xbf16>
    %116 = arith.truncf %114 : vector<16x16xf32> to vector<16x16xbf16>
    %cst_55 = arith.constant dense<0.000000e+00> : vector<288x16xf32>
    %117 = tpu.matmul %115, %116, %cst_55 {dimension_numbers = #tpu.dot_dimension_numbers<[1], [0], [0], [1], [0, 0, 1, 1], [], []>} : vector<288x16xbf16>, vector<16x16xbf16>, vector<288x16xf32> -> vector<288x16xf32>
    %118 = vector.extract_strided_slice %117 {offsets = [0, 0], sizes = [32, 16], strides = [1, 1]} : vector<288x16xf32> to vector<32x16xf32>
    %119 = arith.truncf %118 : vector<32x16xf32> to vector<32x16xbf16>
    %c0_56 = arith.constant 0 : index
    %c0_57 = arith.constant 0 : index
    %120 = vector.load %arg21[%c0_56, %c0_57] : memref<32x144xbf16, #tpu.memory_space<vmem>>, vector<32x16xbf16>
    tpu.vector_store %arg21[%c0_56, %c0_57], %119 {strides = array<i32>} : memref<32x144xbf16, #tpu.memory_space<vmem>>, vector<32x16xbf16>,
    %121 = vector.extract_strided_slice %117 {offsets = [32, 0], sizes = [32, 16], strides = [1, 1]} : vector<288x16xf32> to vector<32x16xf32>
    %122 = arith.truncf %121 : vector<32x16xf32> to vector<32x16xbf16>
    %c0_58 = arith.constant 0 : index
    %c16_59 = arith.constant 16 : index
    %123 = vector.load %arg21[%c0_58, %c16_59] : memref<32x144xbf16, #tpu.memory_space<vmem>>, vector<32x16xbf16>
    tpu.vector_store %arg21[%c0_58, %c16_59], %122 {strides = array<i32>} : memref<32x144xbf16, #tpu.memory_space<vmem>>, vector<32x16xbf16>,
    %124 = vector.extract_strided_slice %117 {offsets = [64, 0], sizes = [32, 16], strides = [1, 1]} : vector<288x16xf32> to vector<32x16xf32>
    %125 = arith.truncf %124 : vector<32x16xf32> to vector<32x16xbf16>
    %c0_60 = arith.constant 0 : index
    %c32_61 = arith.constant 32 : index
    %126 = vector.load %arg21[%c0_60, %c32_61] : memref<32x144xbf16, #tpu.memory_space<vmem>>, vector<32x16xbf16>
    tpu.vector_store %arg21[%c0_60, %c32_61], %125 {strides = array<i32>} : memref<32x144xbf16, #tpu.memory_space<vmem>>, vector<32x16xbf16>,
    %127 = vector.extract_strided_slice %117 {offsets = [96, 0], sizes = [32, 16], strides = [1, 1]} : vector<288x16xf32> to vector<32x16xf32>
    %128 = arith.truncf %127 : vector<32x16xf32> to vector<32x16xbf16>
    %c0_62 = arith.constant 0 : index
    %c48_63 = arith.constant 48 : index
    %129 = vector.load %arg21[%c0_62, %c48_63] : memref<32x144xbf16, #tpu.memory_space<vmem>>, vector<32x16xbf16>
    tpu.vector_store %arg21[%c0_62, %c48_63], %128 {strides = array<i32>} : memref<32x144xbf16, #tpu.memory_space<vmem>>, vector<32x16xbf16>,
    %130 = vector.extract_strided_slice %117 {offsets = [128, 0], sizes = [32, 16], strides = [1, 1]} : vector<288x16xf32> to vector<32x16xf32>
    %131 = arith.truncf %130 : vector<32x16xf32> to vector<32x16xbf16>
    %c0_64 = arith.constant 0 : index
    %c64_65 = arith.constant 64 : index
    %132 = vector.load %arg21[%c0_64, %c64_65] : memref<32x144xbf16, #tpu.memory_space<vmem>>, vector<32x16xbf16>
    tpu.vector_store %arg21[%c0_64, %c64_65], %131 {strides = array<i32>} : memref<32x144xbf16, #tpu.memory_space<vmem>>, vector<32x16xbf16>,
    %133 = vector.extract_strided_slice %117 {offsets = [160, 0], sizes = [32, 16], strides = [1, 1]} : vector<288x16xf32> to vector<32x16xf32>
    %134 = arith.truncf %133 : vector<32x16xf32> to vector<32x16xbf16>
    %c0_66 = arith.constant 0 : index
    %c80_67 = arith.constant 80 : index
    %135 = vector.load %arg21[%c0_66, %c80_67] : memref<32x144xbf16, #tpu.memory_space<vmem>>, vector<32x16xbf16>
    tpu.vector_store %arg21[%c0_66, %c80_67], %134 {strides = array<i32>} : memref<32x144xbf16, #tpu.memory_space<vmem>>, vector<32x16xbf16>,
    %136 = vector.extract_strided_slice %117 {offsets = [192, 0], sizes = [32, 16], strides = [1, 1]} : vector<288x16xf32> to vector<32x16xf32>
    %137 = arith.truncf %136 : vector<32x16xf32> to vector<32x16xbf16>
    %c0_68 = arith.constant 0 : index
    %c96_69 = arith.constant 96 : index
    %138 = vector.load %arg21[%c0_68, %c96_69] : memref<32x144xbf16, #tpu.memory_space<vmem>>, vector<32x16xbf16>
    tpu.vector_store %arg21[%c0_68, %c96_69], %137 {strides = array<i32>} : memref<32x144xbf16, #tpu.memory_space<vmem>>, vector<32x16xbf16>,
    %139 = vector.extract_strided_slice %117 {offsets = [224, 0], sizes = [32, 16], strides = [1, 1]} : vector<288x16xf32> to vector<32x16xf32>
    %140 = arith.truncf %139 : vector<32x16xf32> to vector<32x16xbf16>
    %c0_70 = arith.constant 0 : index
    %c112_71 = arith.constant 112 : index
    %141 = vector.load %arg21[%c0_70, %c112_71] : memref<32x144xbf16, #tpu.memory_space<vmem>>, vector<32x16xbf16>
    tpu.vector_store %arg21[%c0_70, %c112_71], %140 {strides = array<i32>} : memref<32x144xbf16, #tpu.memory_space<vmem>>, vector<32x16xbf16>,
    %142 = vector.extract_strided_slice %117 {offsets = [256, 0], sizes = [32, 16], strides = [1, 1]} : vector<288x16xf32> to vector<32x16xf32>
    %143 = arith.truncf %142 : vector<32x16xf32> to vector<32x16xbf16>
    %c0_72 = arith.constant 0 : index
    %c128_73 = arith.constant 128 : index
    %144 = vector.load %arg21[%c0_72, %c128_73] : memref<32x144xbf16, #tpu.memory_space<vmem>>, vector<32x16xbf16>
    tpu.vector_store %arg21[%c0_72, %c128_73], %143 {strides = array<i32>} : memref<32x144xbf16, #tpu.memory_space<vmem>>, vector<32x16xbf16>,
    %c0_74 = arith.constant 0 : index
    %c0_75 = arith.constant 0 : index
    %145 = vector.load %arg21[%c0_74, %c0_75] : memref<32x144xbf16, #tpu.memory_space<vmem>>, vector<32x144xbf16>
    %c0_76 = arith.constant 0 : index
    %c0_77 = arith.constant 0 : index
    %146 = vector.load %arg10[%c0_76, %c0_77] : memref<144x64xbf16, #tpu.memory_space<vmem>>, vector<144x64xbf16>
    %cst_78 = arith.constant dense<0.000000e+00> : vector<32x64xf32>
    %147 = tpu.matmul %145, %146, %cst_78 {dimension_numbers = #tpu.dot_dimension_numbers<[1], [0], [0], [1], [0, 0, 1, 1], [], []>} : vector<32x144xbf16>, vector<144x64xbf16>, vector<32x64xf32> -> vector<32x64xf32>
    %c0_79 = arith.constant 0 : index
    %c0_80 = arith.constant 0 : index
    %148 = vector.load %arg11[%c0_79, %c0_80] : memref<32x1xf32, #tpu.memory_space<vmem>>, vector<32x1xf32>
    %149 = vector.broadcast %148 : vector<32x1xf32> to vector<32x64xf32>
    %150 = arith.addf %147, %149 : vector<32x64xf32>
    %151 = vector.broadcast %2 : f32 to vector<32x64xf32>
    %152 = arith.mulf %150, %151 : vector<32x64xf32>
    %153 = vector.broadcast %1 : f32 to vector<32x64xf32>
    %154 = arith.addf %152, %153 : vector<32x64xf32>
    %155 = arith.mulf %154, %150 : vector<32x64xf32>
    %156 = vector.broadcast %0 : f32 to vector<32x64xf32>
    %157 = arith.addf %155, %156 : vector<32x64xf32>
    %c0_81 = arith.constant 0 : index
    %c0_82 = arith.constant 0 : index
    %158 = vector.load %arg12[%c0_81, %c0_82] : memref<144x32xbf16, #tpu.memory_space<vmem>>, vector<144x32xbf16>
    %159 = arith.truncf %157 : vector<32x64xf32> to vector<32x64xbf16>
    %cst_83 = arith.constant dense<0.000000e+00> : vector<144x64xf32>
    %160 = tpu.matmul %158, %159, %cst_83 {dimension_numbers = #tpu.dot_dimension_numbers<[1], [0], [0], [1], [0, 0, 1, 1], [], []>} : vector<144x32xbf16>, vector<32x64xbf16>, vector<144x64xf32> -> vector<144x64xf32>
    %161 = vector.extract_strided_slice %160 {offsets = [0, 0], sizes = [16, 64], strides = [1, 1]} : vector<144x64xf32> to vector<16x64xf32>
    %162 = arith.truncf %161 : vector<16x64xf32> to vector<16x64xbf16>
    %c0_84 = arith.constant 0 : index
    %c0_85 = arith.constant 0 : index
    %163 = vector.load %arg22[%c0_84, %c0_85] : memref<16x576xbf16, #tpu.memory_space<vmem>>, vector<16x64xbf16>
    tpu.vector_store %arg22[%c0_84, %c0_85], %162 {strides = array<i32>} : memref<16x576xbf16, #tpu.memory_space<vmem>>, vector<16x64xbf16>,
    %164 = vector.extract_strided_slice %160 {offsets = [16, 0], sizes = [16, 64], strides = [1, 1]} : vector<144x64xf32> to vector<16x64xf32>
    %165 = arith.truncf %164 : vector<16x64xf32> to vector<16x64xbf16>
    %c0_86 = arith.constant 0 : index
    %c64_87 = arith.constant 64 : index
    %166 = vector.load %arg22[%c0_86, %c64_87] : memref<16x576xbf16, #tpu.memory_space<vmem>>, vector<16x64xbf16>
    tpu.vector_store %arg22[%c0_86, %c64_87], %165 {strides = array<i32>} : memref<16x576xbf16, #tpu.memory_space<vmem>>, vector<16x64xbf16>,
    %167 = vector.extract_strided_slice %160 {offsets = [32, 0], sizes = [16, 64], strides = [1, 1]} : vector<144x64xf32> to vector<16x64xf32>
    %168 = arith.truncf %167 : vector<16x64xf32> to vector<16x64xbf16>
    %c0_88 = arith.constant 0 : index
    %c128_89 = arith.constant 128 : index
    %169 = vector.load %arg22[%c0_88, %c128_89] : memref<16x576xbf16, #tpu.memory_space<vmem>>, vector<16x64xbf16>
    tpu.vector_store %arg22[%c0_88, %c128_89], %168 {strides = array<i32>} : memref<16x576xbf16, #tpu.memory_space<vmem>>, vector<16x64xbf16>,
    %170 = vector.extract_strided_slice %160 {offsets = [48, 0], sizes = [16, 64], strides = [1, 1]} : vector<144x64xf32> to vector<16x64xf32>
    %171 = arith.truncf %170 : vector<16x64xf32> to vector<16x64xbf16>
    %c0_90 = arith.constant 0 : index
    %c192_91 = arith.constant 192 : index
    %172 = vector.load %arg22[%c0_90, %c192_91] : memref<16x576xbf16, #tpu.memory_space<vmem>>, vector<16x64xbf16>
    tpu.vector_store %arg22[%c0_90, %c192_91], %171 {strides = array<i32>} : memref<16x576xbf16, #tpu.memory_space<vmem>>, vector<16x64xbf16>,
    %173 = vector.extract_strided_slice %160 {offsets = [64, 0], sizes = [16, 64], strides = [1, 1]} : vector<144x64xf32> to vector<16x64xf32>
    %174 = arith.truncf %173 : vector<16x64xf32> to vector<16x64xbf16>
    %c0_92 = arith.constant 0 : index
    %c256_93 = arith.constant 256 : index
    %175 = vector.load %arg22[%c0_92, %c256_93] : memref<16x576xbf16, #tpu.memory_space<vmem>>, vector<16x64xbf16>
    tpu.vector_store %arg22[%c0_92, %c256_93], %174 {strides = array<i32>} : memref<16x576xbf16, #tpu.memory_space<vmem>>, vector<16x64xbf16>,
    %176 = vector.extract_strided_slice %160 {offsets = [80, 0], sizes = [16, 64], strides = [1, 1]} : vector<144x64xf32> to vector<16x64xf32>
    %177 = arith.truncf %176 : vector<16x64xf32> to vector<16x64xbf16>
    %c0_94 = arith.constant 0 : index
    %c320_95 = arith.constant 320 : index
    %178 = vector.load %arg22[%c0_94, %c320_95] : memref<16x576xbf16, #tpu.memory_space<vmem>>, vector<16x64xbf16>
    tpu.vector_store %arg22[%c0_94, %c320_95], %177 {strides = array<i32>} : memref<16x576xbf16, #tpu.memory_space<vmem>>, vector<16x64xbf16>,
    %179 = vector.extract_strided_slice %160 {offsets = [96, 0], sizes = [16, 64], strides = [1, 1]} : vector<144x64xf32> to vector<16x64xf32>
    %180 = arith.truncf %179 : vector<16x64xf32> to vector<16x64xbf16>
    %c0_96 = arith.constant 0 : index
    %c384_97 = arith.constant 384 : index
    %181 = vector.load %arg22[%c0_96, %c384_97] : memref<16x576xbf16, #tpu.memory_space<vmem>>, vector<16x64xbf16>
    tpu.vector_store %arg22[%c0_96, %c384_97], %180 {strides = array<i32>} : memref<16x576xbf16, #tpu.memory_space<vmem>>, vector<16x64xbf16>,
    %182 = vector.extract_strided_slice %160 {offsets = [112, 0], sizes = [16, 64], strides = [1, 1]} : vector<144x64xf32> to vector<16x64xf32>
    %183 = arith.truncf %182 : vector<16x64xf32> to vector<16x64xbf16>
    %c0_98 = arith.constant 0 : index
    %c448_99 = arith.constant 448 : index
    %184 = vector.load %arg22[%c0_98, %c448_99] : memref<16x576xbf16, #tpu.memory_space<vmem>>, vector<16x64xbf16>
    tpu.vector_store %arg22[%c0_98, %c448_99], %183 {strides = array<i32>} : memref<16x576xbf16, #tpu.memory_space<vmem>>, vector<16x64xbf16>,
    %185 = vector.extract_strided_slice %160 {offsets = [128, 0], sizes = [16, 64], strides = [1, 1]} : vector<144x64xf32> to vector<16x64xf32>
    %186 = arith.truncf %185 : vector<16x64xf32> to vector<16x64xbf16>
    %c0_100 = arith.constant 0 : index
    %c512_101 = arith.constant 512 : index
    %187 = vector.load %arg22[%c0_100, %c512_101] : memref<16x576xbf16, #tpu.memory_space<vmem>>, vector<16x64xbf16>
    tpu.vector_store %arg22[%c0_100, %c512_101], %186 {strides = array<i32>} : memref<16x576xbf16, #tpu.memory_space<vmem>>, vector<16x64xbf16>,
    %c0_102 = arith.constant 0 : index
    %c0_103 = arith.constant 0 : index
    %188 = vector.load %arg22[%c0_102, %c0_103] : memref<16x576xbf16, #tpu.memory_space<vmem>>, vector<16x576xbf16>
    %c0_104 = arith.constant 0 : index
    %c0_105 = arith.constant 0 : index
    %189 = vector.load %arg13[%c0_104, %c0_105] : memref<576x256xbf16, #tpu.memory_space<vmem>>, vector<576x256xbf16>
    %cst_106 = arith.constant dense<0.000000e+00> : vector<16x256xf32>
    %190 = tpu.matmul %188, %189, %cst_106 {dimension_numbers = #tpu.dot_dimension_numbers<[1], [0], [0], [1], [0, 0, 1, 1], [], []>} : vector<16x576xbf16>, vector<576x256xbf16>, vector<16x256xf32> -> vector<16x256xf32>
    %c0_107 = arith.constant 0 : index
    %c0_108 = arith.constant 0 : index
    %191 = vector.load %arg14[%c0_107, %c0_108] : memref<16x1xf32, #tpu.memory_space<vmem>>, vector<16x1xf32>
    %192 = vector.broadcast %191 : vector<16x1xf32> to vector<16x256xf32>
    %193 = arith.addf %190, %192 : vector<16x256xf32>
    %194 = vector.broadcast %2 : f32 to vector<16x256xf32>
    %195 = arith.mulf %193, %194 : vector<16x256xf32>
    %196 = vector.broadcast %1 : f32 to vector<16x256xf32>
    %197 = arith.addf %195, %196 : vector<16x256xf32>
    %198 = arith.mulf %197, %193 : vector<16x256xf32>
    %199 = vector.broadcast %0 : f32 to vector<16x256xf32>
    %200 = arith.addf %198, %199 : vector<16x256xf32>
    %c0_109 = arith.constant 0 : index
    %c0_110 = arith.constant 0 : index
    %201 = vector.load %arg15[%c0_109, %c0_110] : memref<9x16xbf16, #tpu.memory_space<vmem>>, vector<9x16xbf16>
    %202 = arith.truncf %200 : vector<16x256xf32> to vector<16x256xbf16>
    %cst_111 = arith.constant dense<0.000000e+00> : vector<9x256xf32>
    %203 = tpu.matmul %201, %202, %cst_111 {dimension_numbers = #tpu.dot_dimension_numbers<[1], [0], [0], [1], [0, 0, 1, 1], [], []>} : vector<9x16xbf16>, vector<16x256xbf16>, vector<9x256xf32> -> vector<9x256xf32>
    %204 = vector.extract_strided_slice %203 {offsets = [0, 0], sizes = [1, 256], strides = [1, 1]} : vector<9x256xf32> to vector<1x256xf32>
    %205 = arith.truncf %204 : vector<1x256xf32> to vector<1x256xbf16>
    %c0_112 = arith.constant 0 : index
    %c0_113 = arith.constant 0 : index
    %206 = vector.load %arg23[%c0_112, %c0_113] : memref<1x2304xbf16, #tpu.memory_space<vmem>>, vector<1x256xbf16>
    tpu.vector_store %arg23[%c0_112, %c0_113], %205 {strides = array<i32>} : memref<1x2304xbf16, #tpu.memory_space<vmem>>, vector<1x256xbf16>,
    %207 = vector.extract_strided_slice %203 {offsets = [1, 0], sizes = [1, 256], strides = [1, 1]} : vector<9x256xf32> to vector<1x256xf32>
    %208 = arith.truncf %207 : vector<1x256xf32> to vector<1x256xbf16>
    %c0_114 = arith.constant 0 : index
    %c256_115 = arith.constant 256 : index
    %209 = vector.load %arg23[%c0_114, %c256_115] : memref<1x2304xbf16, #tpu.memory_space<vmem>>, vector<1x256xbf16>
    tpu.vector_store %arg23[%c0_114, %c256_115], %208 {strides = array<i32>} : memref<1x2304xbf16, #tpu.memory_space<vmem>>, vector<1x256xbf16>,
    %210 = vector.extract_strided_slice %203 {offsets = [2, 0], sizes = [1, 256], strides = [1, 1]} : vector<9x256xf32> to vector<1x256xf32>
    %211 = arith.truncf %210 : vector<1x256xf32> to vector<1x256xbf16>
    %c0_116 = arith.constant 0 : index
    %c512_117 = arith.constant 512 : index
    %212 = vector.load %arg23[%c0_116, %c512_117] : memref<1x2304xbf16, #tpu.memory_space<vmem>>, vector<1x256xbf16>
    tpu.vector_store %arg23[%c0_116, %c512_117], %211 {strides = array<i32>} : memref<1x2304xbf16, #tpu.memory_space<vmem>>, vector<1x256xbf16>,
    %213 = vector.extract_strided_slice %203 {offsets = [3, 0], sizes = [1, 256], strides = [1, 1]} : vector<9x256xf32> to vector<1x256xf32>
    %214 = arith.truncf %213 : vector<1x256xf32> to vector<1x256xbf16>
    %c0_118 = arith.constant 0 : index
    %c768_119 = arith.constant 768 : index
    %215 = vector.load %arg23[%c0_118, %c768_119] : memref<1x2304xbf16, #tpu.memory_space<vmem>>, vector<1x256xbf16>
    tpu.vector_store %arg23[%c0_118, %c768_119], %214 {strides = array<i32>} : memref<1x2304xbf16, #tpu.memory_space<vmem>>, vector<1x256xbf16>,
    %216 = vector.extract_strided_slice %203 {offsets = [4, 0], sizes = [1, 256], strides = [1, 1]} : vector<9x256xf32> to vector<1x256xf32>
    %217 = arith.truncf %216 : vector<1x256xf32> to vector<1x256xbf16>
    %c0_120 = arith.constant 0 : index
    %c1024_121 = arith.constant 1024 : index
    %218 = vector.load %arg23[%c0_120, %c1024_121] : memref<1x2304xbf16, #tpu.memory_space<vmem>>, vector<1x256xbf16>
    tpu.vector_store %arg23[%c0_120, %c1024_121], %217 {strides = array<i32>} : memref<1x2304xbf16, #tpu.memory_space<vmem>>, vector<1x256xbf16>,
    %219 = vector.extract_strided_slice %203 {offsets = [5, 0], sizes = [1, 256], strides = [1, 1]} : vector<9x256xf32> to vector<1x256xf32>
    %220 = arith.truncf %219 : vector<1x256xf32> to vector<1x256xbf16>
    %c0_122 = arith.constant 0 : index
    %c1280_123 = arith.constant 1280 : index
    %221 = vector.load %arg23[%c0_122, %c1280_123] : memref<1x2304xbf16, #tpu.memory_space<vmem>>, vector<1x256xbf16>
    tpu.vector_store %arg23[%c0_122, %c1280_123], %220 {strides = array<i32>} : memref<1x2304xbf16, #tpu.memory_space<vmem>>, vector<1x256xbf16>,
    %222 = vector.extract_strided_slice %203 {offsets = [6, 0], sizes = [1, 256], strides = [1, 1]} : vector<9x256xf32> to vector<1x256xf32>
    %223 = arith.truncf %222 : vector<1x256xf32> to vector<1x256xbf16>
    %c0_124 = arith.constant 0 : index
    %c1536_125 = arith.constant 1536 : index
    %224 = vector.load %arg23[%c0_124, %c1536_125] : memref<1x2304xbf16, #tpu.memory_space<vmem>>, vector<1x256xbf16>
    tpu.vector_store %arg23[%c0_124, %c1536_125], %223 {strides = array<i32>} : memref<1x2304xbf16, #tpu.memory_space<vmem>>, vector<1x256xbf16>,
    %225 = vector.extract_strided_slice %203 {offsets = [7, 0], sizes = [1, 256], strides = [1, 1]} : vector<9x256xf32> to vector<1x256xf32>
    %226 = arith.truncf %225 : vector<1x256xf32> to vector<1x256xbf16>
    %c0_126 = arith.constant 0 : index
    %c1792_127 = arith.constant 1792 : index
    %227 = vector.load %arg23[%c0_126, %c1792_127] : memref<1x2304xbf16, #tpu.memory_space<vmem>>, vector<1x256xbf16>
    tpu.vector_store %arg23[%c0_126, %c1792_127], %226 {strides = array<i32>} : memref<1x2304xbf16, #tpu.memory_space<vmem>>, vector<1x256xbf16>,
    %228 = vector.extract_strided_slice %203 {offsets = [8, 0], sizes = [1, 256], strides = [1, 1]} : vector<9x256xf32> to vector<1x256xf32>
    %229 = arith.truncf %228 : vector<1x256xf32> to vector<1x256xbf16>
    %c0_128 = arith.constant 0 : index
    %c2048_129 = arith.constant 2048 : index
    %230 = vector.load %arg23[%c0_128, %c2048_129] : memref<1x2304xbf16, #tpu.memory_space<vmem>>, vector<1x256xbf16>
    tpu.vector_store %arg23[%c0_128, %c2048_129], %229 {strides = array<i32>} : memref<1x2304xbf16, #tpu.memory_space<vmem>>, vector<1x256xbf16>,
    %c0_130 = arith.constant 0 : index
    %c0_131 = arith.constant 0 : index
    %231 = vector.load %arg23[%c0_130, %c0_131] : memref<1x2304xbf16, #tpu.memory_space<vmem>>, vector<1x2304xbf16>
    %c0_132 = arith.constant 0 : index
    %c0_133 = arith.constant 0 : index
    %232 = vector.load %arg16[%c0_132, %c0_133] : memref<2304x256xbf16, #tpu.memory_space<vmem>>, vector<2304x256xbf16>
    %cst_134 = arith.constant dense<0.000000e+00> : vector<1x256xf32>
    %233 = tpu.matmul %231, %232, %cst_134 {dimension_numbers = #tpu.dot_dimension_numbers<[1], [0], [0], [1], [0, 0, 1, 1], [], []>} : vector<1x2304xbf16>, vector<2304x256xbf16>, vector<1x256xf32> -> vector<1x256xf32>
    %c0_135 = arith.constant 0 : index
    %c0_136 = arith.constant 0 : index
    %234 = vector.load %arg17[%c0_135, %c0_136] : memref<1x1xf32, #tpu.memory_space<vmem>>, vector<1x1xf32>
    %235 = vector.broadcast %234 : vector<1x1xf32> to vector<1x256xf32>
    %236 = arith.addf %233, %235 : vector<1x256xf32>
    %237 = vector.broadcast %2 : f32 to vector<1x256xf32>
    %238 = arith.mulf %236, %237 : vector<1x256xf32>
    %239 = vector.broadcast %1 : f32 to vector<1x256xf32>
    %240 = arith.addf %238, %239 : vector<1x256xf32>
    %241 = arith.mulf %240, %236 : vector<1x256xf32>
    %242 = vector.broadcast %0 : f32 to vector<1x256xf32>
    %243 = arith.addf %241, %242 : vector<1x256xf32>
    %c0_137 = arith.constant 0 : index
    %c0_138 = arith.constant 0 : index
    %c0_139 = arith.constant 0 : index
    %244 = vector.load %arg18[%c0_137, %c0_138, %c0_139] : memref<1x1x256xf32, #tpu.memory_space<vmem>>, vector<1x1x256xf32>
    %245 = vector.shape_cast %244 : vector<1x1x256xf32> to vector<1x256xf32>
    %246 = vector.shape_cast %243 : vector<1x256xf32> to vector<1x1x256xf32>
    tpu.vector_store %arg18[%c0_137, %c0_138, %c0_139], %246 {strides = array<i32>} : memref<1x1x256xf32, #tpu.memory_space<vmem>>, vector<1x1x256xf32>,
    return
  }
  func.func @transform_0(%arg0: i32, %arg1: memref<3xf32, #tpu.memory_space<smem>>) -> (i32, i32, i32) {
    %c0_i32 = arith.constant 0 : i32
    %c0_i32_0 = arith.constant 0 : i32
    %c0_i32_1 = arith.constant 0 : i32
    return %arg0, %c0_i32, %c0_i32_0 : i32, i32, i32
  }
  func.func @transform_1(%arg0: i32, %arg1: memref<3xf32, #tpu.memory_space<smem>>) -> (i32, i32) {
    %c0_i32 = arith.constant 0 : i32
    %c0_i32_0 = arith.constant 0 : i32
    %c0_i32_1 = arith.constant 0 : i32
    return %c0_i32, %c0_i32_0 : i32, i32
  }
  func.func @transform_2(%arg0: i32, %arg1: memref<3xf32, #tpu.memory_space<smem>>) -> (i32, i32) {
    %c0_i32 = arith.constant 0 : i32
    %c0_i32_0 = arith.constant 0 : i32
    %c0_i32_1 = arith.constant 0 : i32
    return %c0_i32, %c0_i32_0 : i32, i32
  }
  func.func @transform_3(%arg0: i32, %arg1: memref<3xf32, #tpu.memory_space<smem>>) -> (i32, i32) {
    %c0_i32 = arith.constant 0 : i32
    %c0_i32_0 = arith.constant 0 : i32
    %c0_i32_1 = arith.constant 0 : i32
    return %c0_i32, %c0_i32_0 : i32, i32
  }
  func.func @transform_4(%arg0: i32, %arg1: memref<3xf32, #tpu.memory_space<smem>>) -> (i32, i32) {
    %c0_i32 = arith.constant 0 : i32
    %c0_i32_0 = arith.constant 0 : i32
    %c0_i32_1 = arith.constant 0 : i32
    return %c0_i32, %c0_i32_0 : i32, i32
  }
  func.func @transform_5(%arg0: i32, %arg1: memref<3xf32, #tpu.memory_space<smem>>) -> (i32, i32) {
    %c0_i32 = arith.constant 0 : i32
    %c0_i32_0 = arith.constant 0 : i32
    %c0_i32_1 = arith.constant 0 : i32
    return %c0_i32, %c0_i32_0 : i32, i32
  }
  func.func @transform_6(%arg0: i32, %arg1: memref<3xf32, #tpu.memory_space<smem>>) -> (i32, i32) {
    %c0_i32 = arith.constant 0 : i32
    %c0_i32_0 = arith.constant 0 : i32
    %c0_i32_1 = arith.constant 0 : i32
    return %c0_i32, %c0_i32_0 : i32, i32
  }
  func.func @transform_7(%arg0: i32, %arg1: memref<3xf32, #tpu.memory_space<smem>>) -> (i32, i32) {
    %c0_i32 = arith.constant 0 : i32
    %c0_i32_0 = arith.constant 0 : i32
    %c0_i32_1 = arith.constant 0 : i32
    return %c0_i32, %c0_i32_0 : i32, i32
  }
  func.func @transform_8(%arg0: i32, %arg1: memref<3xf32, #tpu.memory_space<smem>>) -> (i32, i32) {
    %c0_i32 = arith.constant 0 : i32
    %c0_i32_0 = arith.constant 0 : i32
    %c0_i32_1 = arith.constant 0 : i32
    return %c0_i32, %c0_i32_0 : i32, i32
  }
  func.func @transform_9(%arg0: i32, %arg1: memref<3xf32, #tpu.memory_space<smem>>) -> (i32, i32) {
    %c0_i32 = arith.constant 0 : i32
    %c0_i32_0 = arith.constant 0 : i32
    %c0_i32_1 = arith.constant 0 : i32
    return %c0_i32, %c0_i32_0 : i32, i32
  }
  func.func @transform_10(%arg0: i32, %arg1: memref<3xf32, #tpu.memory_space<smem>>) -> (i32, i32) {
    %c0_i32 = arith.constant 0 : i32
    %c0_i32_0 = arith.constant 0 : i32
    %c0_i32_1 = arith.constant 0 : i32
    return %c0_i32, %c0_i32_0 : i32, i32
  }
  func.func @transform_11(%arg0: i32, %arg1: memref<3xf32, #tpu.memory_space<smem>>) -> (i32, i32) {
    %c0_i32 = arith.constant 0 : i32
    %c0_i32_0 = arith.constant 0 : i32
    %c0_i32_1 = arith.constant 0 : i32
    return %c0_i32, %c0_i32_0 : i32, i32
  }
  func.func @transform_12(%arg0: i32, %arg1: memref<3xf32, #tpu.memory_space<smem>>) -> (i32, i32) {
    %c0_i32 = arith.constant 0 : i32
    %c0_i32_0 = arith.constant 0 : i32
    %c0_i32_1 = arith.constant 0 : i32
    return %c0_i32, %c0_i32_0 : i32, i32
  }
  func.func @transform_13(%arg0: i32, %arg1: memref<3xf32, #tpu.memory_space<smem>>) -> (i32, i32) {
    %c0_i32 = arith.constant 0 : i32
    %c0_i32_0 = arith.constant 0 : i32
    %c0_i32_1 = arith.constant 0 : i32
    return %c0_i32, %c0_i32_0 : i32, i32
  }
  func.func @transform_14(%arg0: i32, %arg1: memref<3xf32, #tpu.memory_space<smem>>) -> (i32, i32) {
    %c0_i32 = arith.constant 0 : i32
    %c0_i32_0 = arith.constant 0 : i32
    %c0_i32_1 = arith.constant 0 : i32
    return %c0_i32, %c0_i32_0 : i32, i32
  }
  func.func @transform_15(%arg0: i32, %arg1: memref<3xf32, #tpu.memory_space<smem>>) -> (i32, i32) {
    %c0_i32 = arith.constant 0 : i32
    %c0_i32_0 = arith.constant 0 : i32
    %c0_i32_1 = arith.constant 0 : i32
    return %c0_i32, %c0_i32_0 : i32, i32
  }
  func.func @transform_16(%arg0: i32, %arg1: memref<3xf32, #tpu.memory_space<smem>>) -> (i32, i32, i32) {
    %c0_i32 = arith.constant 0 : i32
    %c0_i32_0 = arith.constant 0 : i32
    %c0_i32_1 = arith.constant 0 : i32
    return %arg0, %c0_i32, %c0_i32_0 : i32, i32, i32
  }
}

</mosaic_0001>

<bundles_post_ra>
// kernel: autoencoder_forward.1
= control target key start
LH: loop header
LB: loop body
LE: loop exit
PB: predicated region body
PF: predicated region fallthrough
CT: control target
= control target key end

     0   :  { %s11109_s0 = inlined_call_operand.vmem [shape: f32[3], index: 0, kind: input, shape index: {}]   ;;  %s11110_s1 = inlined_call_operand.vmem [shape: f32[2,1,256], index: 1, kind: input, shape index: {}]   ;;  %s11111_s2 = inlined_call_operand.vmem [shape: f32[144,1], index: 2, kind: input, shape index: {}]   ;;  %s11112_s3 = inlined_call_operand.vmem [shape: bf16[2304,64], index: 3, kind: input, shape index: {}]   ;;  %s11113_s4 = inlined_call_operand.vmem [shape: f32[16,1], index: 4, kind: input, shape index: {}]   ;;  %s11114_s5 = inlined_call_operand.vmem [shape: bf16[144,16], index: 5, kind: input, shape index: {}]   ;;  %s11115_s6 = inlined_call_operand.vmem [shape: bf16[576,16], index: 6, kind: input, shape index: {}]   ;;  %s11116_s7 = inlined_call_operand.vmem [shape: f32[16,1], index: 7, kind: input, shape index: {}]   ;;  %s11117_s8 = inlined_call_operand.vmem [shape: bf16[288,16], index: 8, kind: input, shape index: {}]   ;;  %s11118_s9 = inlined_call_operand.vmem [shape: bf16[144,64], index: 9, kind: input, shape index: {}]   ;;  %s11119_s10 = inlined_call_operand.vmem [shape: f32[32,1], index: 10, kind: input, shape index: {}]   ;;  %s11120_s11 = inlined_call_operand.vmem [shape: bf16[144,32], index: 11, kind: input, shape index: {}]   ;;  %s11121_s12 = inlined_call_operand.hbm [shape: bf16[576,256], index: 12, kind: input, shape index: {}]   ;;  %s11122_s13 = inlined_call_operand.vmem [shape: f32[16,1], index: 13, kind: input, shape index: {}]   ;;  %s11123_s14 = inlined_call_operand.vmem [shape: bf16[9,16], index: 14, kind: input, shape index: {}]   ;;  %s11124_s15 = inlined_call_operand.vmem [shape: bf16[2304,256], index: 15, kind: input, shape index: {}]   ;;  %s11125_s17 = inlined_call_operand.vmem [shape: f32[2,1,256], index: 17, kind: output, shape index: {}]   ;;  %s11126_s16 = inlined_call_operand.<no memory space> [shape: f32[1,1], index: 16, kind: input, shape index: {}]  }
   0x1   :  { %11130 = sst [smem:[#allocation14_spill]] %s11109_s0  ;;  %v26_v0 = vstv %s11126_s16 }
   0x2   :  { %11131 = sst [smem:[#allocation15_spill]] %s11110_s1  ;;  %s11133_s26 = sld [smem:[#allocation14_spill]]  ;;  %27 = vst [vmem:[#allocation9] sm:$0x1] %v26_v0 }
   0x3   :  { %11132 = sst [smem:[#allocation16_spill]] %s11120_s11 }
   0x8   :  { %s22_s11 = sshll.u32 %s11133_s26, 4  ;;  %s23_s11 = int_to_ptr.vmem [resolvable:$true] %s22_s11 }
   0x9   :  { %s8868_s29 = scalar_lea.vmem %s23_s11, 16  ;;  %p8873_p1 = scmp.lt.s32.totalorder %s23_s11, %s23_s11 }
   0xa   :  { %p8869_p0 = scmp.ne.s32.totalorder %s23_s11, %s8868_s29  ;;  %p8874_p2 = scmp.lt.s32.totalorder %s8868_s29, %s8868_s29 }
   0xc   :  { %p8875_p3 = por %p8874_p2, %p8873_p1 }
   0xe   :  { %p8876_p4 = pnand %p8875_p3, %p8869_p0 }
  0x10   :  { %8879 = shalt.err (!%p8876_p4)  }
  0x11   :  { %s8922_s0 = smov [#allocation8]  }
  0x12   :  { %25 = dma.vmem_to_smem %s23_s11, 16, %s8922_s0, [#allocation7] }
  0x13   :  { %8912 = dma.done.wait [#allocation7], 16 }
  0x14   :  { %8913 = vsyncadd [#allocation7], 4294967280 }
  0x15   :  { %29 = sfence }
  0x16   :  { %30 = vsyncpa [#allocation11], 0  ;;  %s9033_s30 = smov 0  }
  0x17 LB: > { %s9039_s16 = sadd.s32 4294967295, %s8920_s30   ;;  %p6943_p5 = scmp.ge.s32.totalorder %s8920_s30, 1  ;;  %s8920_s30 = sphi %s9033_s30, %s36_s30  }
  0x18   : > { %p408_p6 = scmp.lt.s32.totalorder %s8920_s30, 3  ;;  %s8923_s11 = smov [#allocation10]  }
  0x19   : > { %s450_s18 = sshll.u32 %s8923_s11, 4  ;;  %p11128_p8 = scmp.eq.s32.totalorder %s9039_s16, 0  ;;  %s451_s18 = int_to_ptr.vmem [resolvable:$true] %s450_s18 }
  0x1a   : > { %p9043_p7 = pnand %p6943_p5, %p408_p6  ;;  %s8880_s22 = scalar_lea.hbm %s11121_s12, 9216 }
  0x1b   : > { %p8881_p11 = scmp.ne.s32.totalorder %s11121_s12, %s8880_s22  ;;  %p8887_p1 = scmp.lt.u32.totalorder %s8880_s22, %s11121_s12 }
  0x1c   : > { %s11134_s19 = scalar_select %p9043_p7, 1, 0 }
  0x1d   : > { %p8069_p9 = pneg %p9043_p7 }
  0x1f   : > { %p9052_p10 = pnand %p11128_p8, %p8069_p9 }
  0x21   : > { %p8882_p12 = pneg %p9052_p10 }
  0x23   : > { %p8883_p13 = pnand %p8882_p12, %p8881_p11 }
  0x25   : > { %p8884_p0 = pneg %p8883_p13 }
  0x27   : > { %p8889_p2 = pnand %p8887_p1, %p8884_p0 }
  0x29   : > { %8892 = shalt.err (!%p8889_p2)
}
  0x2a   : > { %s8893_s27 = scalar_lea.vmem %s451_s18, 9216  ;;  %p8901_p6 = scmp.lt.s32.totalorder %s451_s18, %s451_s18 }
  0x2b   : > { %p8894_p3 = scmp.ne.s32.totalorder %s451_s18, %s8893_s27  ;;  %p8902_p9 = scmp.lt.s32.totalorder %s8893_s27, %s8893_s27 }
  0x2d   : > { %p8896_p4 = pnand %p8894_p3, %p8882_p12  ;;  %p8903_p8 = por %p8902_p9, %p8901_p6 }
  0x2f   : > { %p8897_p5 = pneg %p8896_p4 }
  0x31   : > { %p8904_p7 = pnand %p8903_p8, %p8897_p5 }
  0x33   : > { %8907 = shalt.err (!%p8904_p7)
}
  0x34   : > { %s8924_s28 = smov 128   ;;  %s8925_s29 = smov 8  }
  0x35   : > { %8072 = dma.hbm_to_vmem [thread:$0]  (!%p9052_p10), %s11121_s12, 9216, %s451_s18, [#allocation11], %s8924_s28, %s8924_s28, %s8925_s29  }
  0x36   : > { %p11136_p11 = scmp.ne.s32.totalorder %s11134_s19, 0 }
  0x37   : > { %p11137_p13 = scmp.eq.s32.totalorder (!%p11136_p11), %s9039_s16, 0 }
  0x38   : > { %485 = sbr.rel (%p11136_p11) target bundleno = 3292 (0xcdc), region = 84 }
  0x3f   : > { %8915 = dma.done.wait (%p11137_p13), [#allocation11], 9216   ;;  %p11138_p12 = pmov %p11137_p13 }
  0x40   : > { %v8926_v1 = vmov 0   ;;  %v577_v2 = vld [vmem:[%s11111_s2 + $0x10] sm:$0xff]  ;;  %v546_v3 = vld [vmem:[%s11111_s2] sm:$0xff]  ;;  %v578_v4 = vld [vmem:[%s11111_s2 + $0x18] sm:$0xff]  ;;  %p533_p7 = scmp.lt.s32.totalorder %s9039_s16, 1  ;;  %v559_v56 = vlaneseq  ;;  %s11139_s23 = sld [smem:[#allocation15_spill]] }
  0x41   : > { %8917 = vsyncadd (%p11138_p12), [#allocation11], 4294958080  ;;  %8099 = vset.pattern.permute.xlu1 %v8926_v1  ;;  %8098 = vset.pattern.permute.xlu0 %v8926_v1  ;;  %v547_v5 = vld [vmem:[%s11111_s2 + $0x8] sm:$0xff]  ;;  %v597_v7 = vld [vmem:[%s11111_s2 + $0x20] sm:$0xff]  ;;  %vm8928_vm0 = vmmov 0   ;;  %s6951_s19 = sld [smem:[#allocation8 + $0x2]] }
  0x42   : > { %581 = vperm.xlu1 %8099, %v577_v2   ;;  %550 = vperm.xlu0 %8098, %v546_v3   ;;  %v598_v6 = vld [vmem:[%s11111_s2 + $0x28] sm:$0xff]  ;;  %v8100_v8 = vld [vmem:[%s11112_s3 + $0x40] sm:$0xff]   ;;  %v618_v9 = vld [vmem:[%s11111_s2 + $0x38] sm:$0xff]  ;;  %s11144_s16 = smov (!%p533_p7, %s9039_s16), 1  ;;  %v9248_v57 = vshrl.u32 %v559_v56, 7  ;;  %s6950_s22 = sld [smem:[#allocation8 + $0x1]] }
  0x43   : > { %v617_v10 = vld [vmem:[%s11111_s2 + $0x30] sm:$0xff]  ;;  %v8101_v11 = vld [vmem:[%s11112_s3 + $0xc0] sm:$0xff]   ;;  %7588 = vmatprep.subr.bf16.mxu0 %v8100_v8  ;;  %v8104_v14 = vld [vmem:[%s11112_s3 + $0x48] sm:$0xff]   ;;  %s6948_s18 = sshll.u32 %s11144_s16, 1  ;;  %vm2363_vm1 = vcmask 130048   ;;  %vm2497_vm2 = vcmask 523264  }
  0x44   : > { %v8102_v12 = vld [vmem:[%s11112_s3] sm:$0xff]   ;;  %7610 = vmatprep.subr.bf16.mxu1 %v8101_v11  ;;  %v638_v15 = vld [vmem:[%s11111_s2 + $0x48] sm:$0xff]  ;;  %v8108_v20 = vld [vmem:[%s11112_s3 + $0x50] sm:$0xff]   ;;  %v561_v58 = vsub.s32 0, %v9248_v57  ;;  %v565_v59 = vsub.s32 1, %v9248_v57  ;;  %vm2504_vm3 = vcmask 1048064   ;;  %s540_s1 = scalar_lea.vmem %s11125_s17, %s6948_s18 }
  0x45   : > { %v8103_v13 = vld [vmem:[%s11112_s3 + $0x80] sm:$0xff]   ;;  %7589 = vmatpush3.bf16.msra.mxu0 %v8102_v12  ;;  %v8105_v17 = vld [vmem:[%s11112_s3 + $0xc8] sm:$0xff]   ;;  %v658_v21 = vld [vmem:[%s11111_s2 + $0x58] sm:$0xff]  ;;  %s8930_s29 = smov 16   ;;  %s8931_s20 = smov 32   ;;  %vm3343_vm4 = vcmask 261248  }
  0x46   : > { %586 = vperm.xlu1 %8099, %v578_v4   ;;  %555 = vperm.xlu0 %8098, %v547_v5   ;;  %v637_v16 = vld [vmem:[%s11111_s2 + $0x40] sm:$0xff]  ;;  %v8106_v18 = vld [vmem:[%s11112_s3 + $0x8] sm:$0xff]   ;;  %v657_v22 = vld [vmem:[%s11111_s2 + $0x50] sm:$0xff]  ;;  %s536_s24 = scalar_lea.vmem %s11139_s23, %s6948_s18  ;;  %s542_s23 = sld [smem:[#allocation8]]  ;;  %vm3356_vm5 = vcmask 392448   ;;  %vm3369_vm6 = vcmask 523648  }
  0x47   : > { %7611 = vmatpush3.bf16.msra.mxu1 %v8103_v13  ;;  %7590 = vmatprep.subr.bf16.mxu0 %v8104_v14  ;;  %v8107_v19 = vld [vmem:[%s11112_s3 + $0x88] sm:$0xff]   ;;  %v8109_v23 = vld [vmem:[%s11112_s3 + $0xd0] sm:$0xff]   ;;  %v8112_v26 = vld [vmem:[%s11112_s3 + $0x58] sm:$0xff]   ;;  %s8933_s27 = smov 80   ;;  %s8934_s28 = smov 96   ;;  %vm3382_vm7 = vcmask 654848  }
  0x48   : > { %7612 = vmatprep.subr.bf16.mxu1 %v8105_v17  ;;  %v8110_v24 = vld [vmem:[%s11112_s3 + $0x10] sm:$0xff]   ;;  %v678_v27 = vld [vmem:[%s11111_s2 + $0x68] sm:$0xff]  ;;  %v677_v28 = vld [vmem:[%s11111_s2 + $0x60] sm:$0xff]  ;;  %vm3395_vm8 = vcmask 786048   ;;  %vm3408_vm9 = vcmask 917248   ;;  %vm3421_vm10 = vcmask 1048448  }
  0x49   : > { %7591 = vmatpush3.bf16.msra.mxu0 %v8106_v18  ;;  %v8111_v25 = vld [vmem:[%s11112_s3 + $0x90] sm:$0xff]   ;;  %v8113_v29 = vld [vmem:[%s11112_s3 + $0xd8] sm:$0xff]   ;;  %v8116_v32 = vld [vmem:[%s11112_s3 + $0x60] sm:$0xff]   ;;  %vm3664_vm11 = vcmask 261120   ;;  %vm4503_vm12 = vcmask 1040384   ;;  %vm4506_vm14 = vcmask 1041409  }
  0x4a   : > { %606 = vperm.xlu1 %8099, %v598_v6   ;;  %601 = vperm.xlu0 %8098, %v597_v7   ;;  %v8114_v30 = vld [vmem:[%s11112_s3 + $0x18] sm:$0xff]   ;;  %v697_v34 = vld [vmem:[%s11111_s2 + $0x70] sm:$0xff]  ;;  %v8117_v35 = vld [vmem:[%s11112_s3 + $0xe0] sm:$0xff]   ;;  %vm4504_vm13 = vsmask.f32 256 }
  0x4b   : > { %7613 = vmatpush3.bf16.msra.mxu1 %v8107_v19  ;;  %7592 = vmatprep.subr.bf16.mxu0 %v8108_v20  ;;  %v8115_v31 = vld [vmem:[%s11112_s3 + $0x98] sm:$0xff]   ;;  %v8118_v36 = vld [vmem:[%s11112_s3 + $0x20] sm:$0xff]   ;;  %v8120_v38 = vld [vmem:[%s11112_s3 + $0x68] sm:$0xff]   ;;  %vm4507_vm15 = vsmask.f32 1280 }
  0x4c   : > { %7614 = vmatprep.subr.bf16.mxu1 %v8109_v23  ;;  %v698_v33 = vld [vmem:[%s11111_s2 + $0x78] sm:$0xff]  ;;  %v8119_v37 = vld [vmem:[%s11112_s3 + $0xa0] sm:$0xff]   ;;  %v718_v39 = vld [vmem:[%s11111_s2 + $0x88] sm:$0xff] }
  0x4d   : > { %7593 = vmatpush3.bf16.msra.mxu0 %v8110_v24  ;;  %v8121_v40 = vld [vmem:[%s11112_s3 + $0xe8] sm:$0xff]   ;;  %v717_v42 = vld [vmem:[%s11111_s2 + $0x80] sm:$0xff]  ;;  %v8124_v44 = vld [vmem:[%s11112_s3 + $0x70] sm:$0xff]  }
  0x4e   : > { %626 = vperm.xlu1 %8099, %v618_v9   ;;  %621 = vperm.xlu0 %8098, %v617_v10   ;;  %v8122_v41 = vld [vmem:[%s11112_s3 + $0x28] sm:$0xff]   ;;  %v1043_v46 = vld [vmem:[%s11113_s4] sm:$0xff]  ;;  %v8125_v47 = vld [vmem:[%s11112_s3 + $0xf0] sm:$0xff]  }
  0x4f   : > { %7615 = vmatpush3.bf16.msra.mxu1 %v8111_v25  ;;  %7594 = vmatprep.subr.bf16.mxu0 %v8112_v26  ;;  %v8123_v43 = vld [vmem:[%s11112_s3 + $0xa8] sm:$0xff]   ;;  %v8126_v48 = vld [vmem:[%s11112_s3 + $0x30] sm:$0xff]   ;;  %v8128_v50 = vld [vmem:[%s11112_s3 + $0x78] sm:$0xff]  }
  0x50   : > { %7616 = vmatprep.subr.bf16.mxu1 %v8113_v29  ;;  %v1044_v45 = vld [vmem:[%s11113_s4 + $0x8] sm:$0xff]  ;;  %v8127_v49 = vld [vmem:[%s11112_s3 + $0xb0] sm:$0xff]   ;;  %v8129_v51 = vld [vmem:[%s11112_s3 + $0xf8] sm:$0xff]  }
  0x51   : > { %7595 = vmatpush3.bf16.msra.mxu0 %v8114_v30  ;;  %v8130_v52 = vld [vmem:[%s11112_s3 + $0x38] sm:$0xff]   ;;  %v8132_v54 = vld [vmem:[%s11112_s3 + $0x140] sm:$0xff]   ;;  %v8136_v18 = vld [vmem:[%s11112_s3 + $0x148] sm:$0xff]  }
  0x52   : > { %646 = vperm.xlu1 %8099, %v638_v15   ;;  %641 = vperm.xlu0 %8098, %v637_v16   ;;  %v8131_v53 = vld [vmem:[%s11112_s3 + $0xb8] sm:$0xff]   ;;  %v8133_v55 = vld [vmem:[%s11112_s3 + $0x1c0] sm:$0xff]   ;;  %v8138_v24 = vld [vmem:[%s11112_s3 + $0x108] sm:$0xff]  }
  0x53   : > { %7617 = vmatpush3.bf16.msra.mxu1 %v8115_v31  ;;  %7596 = vmatprep.subr.bf16.mxu0 %v8116_v32  ;;  %v545_v60 = vld [vmem:[%s536_s24] sm:$0x3]  ;;  %v8139_v25 = vld [vmem:[%s11112_s3 + $0x188] sm:$0xff]   ;;  %v8141_v30 = vld [vmem:[%s11112_s3 + $0x1d0] sm:$0xff]  }
  0x54   : > { %7618 = vmatprep.subr.bf16.mxu1 %v8117_v35  ;;  %v9259_v62 = vrot.slane %v545_v60, %v561_v58  ;;  %v9261_v63 = vrot.slane %v545_v60, %v565_v59  ;;  %v8134_v12 = vld [vmem:[%s11112_s3 + $0x100] sm:$0xff]   ;;  %v8162_v59 = vld [vmem:[%s11112_s3 + $0x138] sm:$0xff]  }
  0x55   : > { %7597 = vmatpush3.bf16.msra.mxu0 %v8118_v36  ;;  %v8135_v13 = vld [vmem:[%s11112_s3 + $0x180] sm:$0xff]   ;;  %v8144_v36 = vld [vmem:[%s11112_s3 + $0x158] sm:$0xff]  }
  0x56   : > { %666 = vperm.xlu1 %8099, %v658_v21   ;;  %661 = vperm.xlu0 %8098, %v657_v22   ;;  %v8137_v21 = vld [vmem:[%s11112_s3 + $0x1c8] sm:$0xff]   ;;  %v8163_v60 = vld [vmem:[%s11112_s3 + $0x1b8] sm:$0xff]  }
  0x57   : > { %7619 = vmatpush3.bf16.msra.mxu1 %v8119_v37  ;;  %7598 = vmatprep.subr.bf16.mxu0 %v8120_v38  ;;  %v8145_v37 = vld [vmem:[%s11112_s3 + $0x1d8] sm:$0xff]  }
  0x58   : > { %7620 = vmatprep.subr.bf16.mxu1 %v8121_v40  ;;  %v8146_v38 = vld [vmem:[%s11112_s3 + $0x118] sm:$0xff]   ;;  %v8148_v40 = vld [vmem:[%s11112_s3 + $0x160] sm:$0xff]  }
  0x59   : > { %7599 = vmatpush3.bf16.msra.mxu0 %v8122_v41  ;;  %v8149_v41 = vld [vmem:[%s11112_s3 + $0x1e0] sm:$0xff]  }
  0x5a   : > { %686 = vperm.xlu1 %8099, %v678_v27   ;;  %681 = vperm.xlu0 %8098, %v677_v28   ;;  %v8140_v27 = vld [vmem:[%s11112_s3 + $0x150] sm:$0xff]  }
  0x5b   : > { %7621 = vmatpush3.bf16.msra.mxu1 %v8123_v43  ;;  %7600 = vmatprep.subr.bf16.mxu0 %v8124_v44  ;;  %v8151_v43 = vld [vmem:[%s11112_s3 + $0x1a0] sm:$0xff]   ;;  %v8152_v44 = vld [vmem:[%s11112_s3 + $0x168] sm:$0xff]  }
  0x5c   : > { %7622 = vmatprep.subr.bf16.mxu1 %v8125_v47  ;;  %v8155_v47 = vld [vmem:[%s11112_s3 + $0x1a8] sm:$0xff]  }
  0x5d   : > { %7601 = vmatpush3.bf16.msra.mxu0 %v8126_v48  ;;  %v8156_v48 = vld [vmem:[%s11112_s3 + $0x170] sm:$0xff]  }
  0x5e   : > { %706 = vperm.xlu1 %8099, %v698_v33   ;;  %701 = vperm.xlu0 %8098, %v697_v34   ;;  %v8142_v33 = vld [vmem:[%s11112_s3 + $0x110] sm:$0xff]  }
  0x5f   : > { %7623 = vmatpush3.bf16.msra.mxu1 %v8127_v49  ;;  %7602 = vmatprep.subr.bf16.mxu0 %v8128_v50  ;;  %v8143_v34 = vld [vmem:[%s11112_s3 + $0x190] sm:$0xff]  }
  0x60   : > { %7624 = vmatprep.subr.bf16.mxu1 %v8129_v51  ;;  %v8157_v49 = vld [vmem:[%s11112_s3 + $0x1f0] sm:$0xff]  }
  0x61   : > { %7603 = vmatpush3.bf16.msra.mxu0 %v8130_v52  ;;  %v8158_v50 = vld [vmem:[%s11112_s3 + $0x130] sm:$0xff]  }
  0x62   : > { %726 = vperm.xlu1 %8099, %v718_v39   ;;  %721 = vperm.xlu0 %8098, %v717_v42   ;;  %v8147_v39 = vld [vmem:[%s11112_s3 + $0x198] sm:$0xff]   ;;  %v8150_v42 = vld [vmem:[%s11112_s3 + $0x120] sm:$0xff]  }
  0x63   : > { %7625 = vmatpush3.bf16.msra.mxu1 %v8131_v53  ;;  %7632 = vmatprep.subr.bf16.mxu0 %v8132_v54  ;;  %v8159_v53 = vld [vmem:[%s11112_s3 + $0x1b0] sm:$0xff]   ;;  %v8160_v54 = vld [vmem:[%s11112_s3 + $0x178] sm:$0xff]  }
  0x64   : > { %7654 = vmatprep.subr.bf16.mxu1 %v8133_v55  ;;  %v8161_v55 = vld [vmem:[%s11112_s3 + $0x1f8] sm:$0xff]  }
  0x66   : > { %1052 = vperm.xlu1 %8099, %v1044_v45   ;;  %1047 = vperm.xlu0 %8098, %v1043_v46   ;;  %v8153_v45 = vld [vmem:[%s11112_s3 + $0x1e8] sm:$0xff]  }
  0x67   : > { %v8154_v46 = vld [vmem:[%s11112_s3 + $0x128] sm:$0xff]  }
  0xc1   : > { %v582_v61 = vpop.permute.xlu1 %581  ;;  %v551_v0 = vpop.permute.xlu0 %550 }
  0xc2   : > { %v589_v2 = vmul.f32 %v582_v61, %v9259_v62  ;;  %v590_v3 = vmul.f32 %v582_v61, %v9261_v63  ;;  %v569_v4 = vmul.f32 %v9259_v62, %v551_v0  ;;  %v570_v5 = vmul.f32 %v9261_v63, %v551_v0  ;;  %v8164_v61 = vld [vmem:[%s11112_s3 + $0x240] sm:$0xff]  }
  0xc3   : > { %v8165_v0 = vld [vmem:[%s11112_s3 + $0x2c0] sm:$0xff]  }
  0xc5   : > { %v587_v6 = vpop.permute.xlu1 %586  ;;  %v556_v7 = vpop.permute.xlu0 %555 }
  0xc6   : > { %v591_v8 = vmul.f32 %v587_v6, %v9259_v62  ;;  %v592_v9 = vmul.f32 %v587_v6, %v9261_v63  ;;  %v571_v10 = vmul.f32 %v9259_v62, %v556_v7  ;;  %v572_v11 = vmul.f32 %v9261_v63, %v556_v7 }
  0xc8   : > { %v593_v14 = vpack.c.bf16 %v591_v8, %v589_v2  ;;  %v573_v15 = vpack.c.bf16 %v571_v10, %v569_v4  ;;  %v574_v16 = vpack.c.bf16 %v572_v11, %v570_v5  ;;  %v594_v17 = vpack.c.bf16 %v592_v9, %v590_v3  ;;  %v8166_v8 = vld [vmem:[%s11112_s3 + $0x200] sm:$0xff]  }
  0xc9   : > { %v9280_v19 = vpop.permute.xlu1 %606  ;;  %v9282_v20 = vpop.permute.xlu0 %601  ;;  %v8167_v11 = vld [vmem:[%s11112_s3 + $0x280] sm:$0xff]  }
  0xca   : > { %v612_v22 = vmul.f32 %v9280_v19, %v9261_v63  ;;  %v610_v23 = vmul.f32 %v9282_v20, %v9261_v63  ;;  %1951 = vmatprep.mubr.bf16.mxu0 %v574_v16  ;;  %1992 = vmatprep.mubr.bf16.mxu1 %v594_v17  ;;  %v611_v2 = vmul.f32 %v9280_v19, %v9259_v62  ;;  %v8169_v16 = vld [vmem:[%s11112_s3 + $0x2c8] sm:$0xff]  }
  0xcb   : > { %1952 = vmatmul.mubr.bf16.vlgmr.msra.gmra.mrb[0].mxu0 %v573_v15  ;;  %1993 = vmatmul.mubr.bf16.vlgmr.msra.gmra.mrb[0].mxu1 %v593_v14  ;;  %v609_v3 = vmul.f32 %v9282_v20, %v9259_v62  ;;  %v8168_v14 = vld [vmem:[%s11112_s3 + $0x248] sm:$0xff]  }
  0xcc   : > { %v614_v26 = vpack.c.bf16 %v612_v22, %v610_v23  ;;  %7633 = vmatpush3.bf16.msra.mxu0 %v8134_v12  ;;  %7655 = vmatpush3.bf16.msra.mxu1 %v8135_v13  ;;  %v8171_v20 = vld [vmem:[%s11112_s3 + $0x288] sm:$0xff]   ;;  %v8173_v23 = vld [vmem:[%s11112_s3 + $0x2d0] sm:$0xff]  }
  0xcd   : > { %v9300_v28 = vpop.permute.xlu1 %626  ;;  %v9302_v29 = vpop.permute.xlu0 %621  ;;  %7634 = vmatprep.subr.bf16.mxu0 %v8136_v18  ;;  %7656 = vmatprep.subr.bf16.mxu1 %v8137_v21  ;;  %v613_v15 = vpack.c.bf16 %v611_v2, %v609_v3  ;;  %v8170_v18 = vld [vmem:[%s11112_s3 + $0x208] sm:$0xff]   ;;  %v8172_v21 = vld [vmem:[%s11112_s3 + $0x250] sm:$0xff]  }
  0xce   : > { %v632_v31 = vmul.f32 %v9300_v28, %v9261_v63  ;;  %v630_v32 = vmul.f32 %v9302_v29, %v9261_v63  ;;  %2033 = vmatprep.mubr.bf16.mxu0 %v614_v26  ;;  %v631_v6 = vmul.f32 %v9300_v28, %v9259_v62  ;;  %v629_v7 = vmul.f32 %v9302_v29, %v9259_v62  ;;  %v8176_v26 = vld [vmem:[%s11112_s3 + $0x258] sm:$0xff]  }
  0xcf   : > { %v8178_v28 = vld [vmem:[%s11112_s3 + $0x218] sm:$0xff]  }
  0xd0   : > { %v634_v35 = vpack.c.bf16 %v632_v31, %v630_v32  ;;  %7635 = vmatpush3.bf16.msra.mxu0 %v8138_v24  ;;  %7657 = vmatpush3.bf16.msra.mxu1 %v8139_v25  ;;  %v633_v17 = vpack.c.bf16 %v631_v6, %v629_v7  ;;  %v8174_v24 = vld [vmem:[%s11112_s3 + $0x210] sm:$0xff]   ;;  %v8179_v29 = vld [vmem:[%s11112_s3 + $0x298] sm:$0xff]   ;;  %v8181_v31 = vld [vmem:[%s11112_s3 + $0x2e0] sm:$0xff]  }
  0xd1   : > { %7636 = vmatprep.subr.bf16.mxu0 %v8140_v27  ;;  %7658 = vmatprep.subr.bf16.mxu1 %v8141_v30  ;;  %v9362_v51 = vpop.permute.xlu1 %646  ;;  %v9364_v52 = vpop.permute.xlu0 %641  ;;  %v8175_v25 = vld [vmem:[%s11112_s3 + $0x290] sm:$0xff]   ;;  %v8177_v27 = vld [vmem:[%s11112_s3 + $0x2d8] sm:$0xff]   ;;  %v8180_v30 = vld [vmem:[%s11112_s3 + $0x260] sm:$0xff]  }
  0xd2   : > { %2074 = vmatprep.mubr.bf16.mxu1 %v634_v35  ;;  %v652_v9 = vmul.f32 %v9362_v51, %v9261_v63  ;;  %v650_v10 = vmul.f32 %v9364_v52, %v9261_v63  ;;  %v8182_v32 = vld [vmem:[%s11112_s3 + $0x220] sm:$0xff]   ;;  %v8185_v35 = vld [vmem:[%s11112_s3 + $0x2e8] sm:$0xff]  }
  0xd3   : > { %v8201_v6 = vld [vmem:[%s11112_s3 + $0x3c8] sm:$0xff]  }
  0xd4   : > { %7637 = vmatpush3.bf16.msra.mxu0 %v8142_v33  ;;  %7659 = vmatpush3.bf16.msra.mxu1 %v8143_v34  ;;  %v654_v19 = vpack.c.bf16 %v652_v9, %v650_v10  ;;  %v8183_v33 = vld [vmem:[%s11112_s3 + $0x2a0] sm:$0xff]   ;;  %v8184_v34 = vld [vmem:[%s11112_s3 + $0x268] sm:$0xff]  }
  0xd5   : > { %7638 = vmatprep.subr.bf16.mxu0 %v8144_v36  ;;  %7660 = vmatprep.subr.bf16.mxu1 %v8145_v37  ;;  %v9391_v4 = vpop.permute.xlu1 %666  ;;  %v9393_v5 = vpop.permute.xlu0 %661  ;;  %v8186_v36 = vld [vmem:[%s11112_s3 + $0x228] sm:$0xff]  }
  0xd6   : > { %v672_v12 = vmul.f32 %v9391_v4, %v9261_v63  ;;  %v670_v13 = vmul.f32 %v9393_v5, %v9261_v63  ;;  %v8187_v37 = vld [vmem:[%s11112_s3 + $0x2a8] sm:$0xff]  }
  0xd7   : > { %v8203_v10 = vld [vmem:[%s11112_s3 + $0x388] sm:$0xff]  }
  0xd8   : > { %7639 = vmatpush3.bf16.msra.mxu0 %v8146_v38  ;;  %7661 = vmatpush3.bf16.msra.mxu1 %v8147_v39  ;;  %v674_v22 = vpack.c.bf16 %v672_v12, %v670_v13  ;;  %v8188_v38 = vld [vmem:[%s11112_s3 + $0x270] sm:$0xff]  }
  0xd9   : > { %7640 = vmatprep.subr.bf16.mxu0 %v8148_v40  ;;  %7662 = vmatprep.subr.bf16.mxu1 %v8149_v41  ;;  %v8189_v39 = vld [vmem:[%s11112_s3 + $0x2f0] sm:$0xff]   ;;  %v9482_v41 = vpop.permute.xlu1 %686 }
  0xda   : > { %v8190_v40 = vld [vmem:[%s11112_s3 + $0x230] sm:$0xff]  }
  0xdb   : > { %v8205_v13 = vld [vmem:[%s11112_s3 + $0x3d0] sm:$0xff]  }
  0xdc   : > { %7641 = vmatpush3.bf16.msra.mxu0 %v8150_v42  ;;  %7663 = vmatpush3.bf16.msra.mxu1 %v8151_v43  ;;  %v9484_v42 = vpop.permute.xlu0 %681  ;;  %v8191_v43 = vld [vmem:[%s11112_s3 + $0x2b0] sm:$0xff]  }
  0xdd   : > { %7642 = vmatprep.subr.bf16.mxu0 %v8152_v44  ;;  %7664 = vmatprep.subr.bf16.mxu1 %v8153_v45  ;;  %v8192_v44 = vld [vmem:[%s11112_s3 + $0x278] sm:$0xff]  }
  0xde   : > { %v8193_v45 = vld [vmem:[%s11112_s3 + $0x2f8] sm:$0xff]  }
  0xe0   : > { %7643 = vmatpush3.bf16.msra.mxu0 %v8154_v46  ;;  %7665 = vmatpush3.bf16.msra.mxu1 %v8155_v47  ;;  %v8194_v46 = vld [vmem:[%s11112_s3 + $0x238] sm:$0xff]  }
  0xe1   : > { %7644 = vmatprep.subr.bf16.mxu0 %v8156_v48  ;;  %7666 = vmatprep.subr.bf16.mxu1 %v8157_v49  ;;  %v8195_v47 = vld [vmem:[%s11112_s3 + $0x2b8] sm:$0xff]   ;;  %v8196_v48 = vld [vmem:[%s11112_s3 + $0x340] sm:$0xff]  }
  0xe2   : > { %v8197_v49 = vld [vmem:[%s11112_s3 + $0x3c0] sm:$0xff]  }
  0xe4   : > { %7645 = vmatpush3.bf16.msra.mxu0 %v8158_v50  ;;  %7667 = vmatpush3.bf16.msra.mxu1 %v8159_v53  ;;  %v651_v50 = vmul.f32 %v9362_v51, %v9259_v62  ;;  %v649_v53 = vmul.f32 %v9364_v52, %v9259_v62  ;;  %v8198_v51 = vld [vmem:[%s11112_s3 + $0x300] sm:$0xff]   ;;  %v692_v52 = vmul.f32 %v9482_v41, %v9261_v63 }
  0xe5   : > { %7646 = vmatprep.subr.bf16.mxu0 %v8160_v54  ;;  %7668 = vmatprep.subr.bf16.mxu1 %v8161_v55  ;;  %v9511_v54 = vpop.permute.xlu1 %706  ;;  %v9513_v55 = vpop.permute.xlu0 %701 }
  0xe6   : > { %v712_v2 = vmul.f32 %v9511_v54, %v9261_v63  ;;  %v710_v3 = vmul.f32 %v9513_v55, %v9261_v63 }
  0xe8   : > { %7647 = vmatpush3.bf16.msra.mxu0 %v8162_v59  ;;  %7669 = vmatpush3.bf16.msra.mxu1 %v8163_v60  ;;  %v671_v59 = vmul.f32 %v9391_v4, %v9259_v62  ;;  %v669_v60 = vmul.f32 %v9393_v5, %v9259_v62  ;;  %v8200_v4 = vld [vmem:[%s11112_s3 + $0x348] sm:$0xff]   ;;  %v653_v5 = vpack.c.bf16 %v651_v50, %v649_v53  ;;  %v8232_v53 = vld [vmem:[%s11112_s3 + $0x450] sm:$0xff]  }
  0xe9   : > { %7676 = vmatprep.subr.bf16.mxu0 %v8164_v61  ;;  %7698 = vmatprep.subr.bf16.mxu1 %v8165_v0  ;;  %v690_v61 = vmul.f32 %v9484_v42, %v9261_v63  ;;  %v8199_v0 = vld [vmem:[%s11112_s3 + $0x380] sm:$0xff]   ;;  %v714_v12 = vpack.c.bf16 %v712_v2, %v710_v3  ;;  %v8242_v2 = vld [vmem:[%s11112_s3 + $0x478] sm:$0xff]  }
  0xea   : > { %v673_v7 = vpack.c.bf16 %v671_v59, %v669_v60  ;;  %v8236_v59 = vld [vmem:[%s11112_s3 + $0x460] sm:$0xff]   ;;  %v8243_v3 = vld [vmem:[%s11112_s3 + $0x438] sm:$0xff]  }
  0xeb   : > { %2034 = vmatmul.mubr.bf16.vlgmr.msra.gmra.mrb[4].mxu0 %v613_v15  ;;  %2075 = vmatmul.mubr.bf16.vlgmr.msra.gmra.mrb[4].mxu1 %v633_v17  ;;  %v694_v9 = vpack.c.bf16 %v692_v52, %v690_v61  ;;  %v8207_v15 = vld [vmem:[%s11112_s3 + $0x390] sm:$0xff]   ;;  %v8209_v17 = vld [vmem:[%s11112_s3 + $0x3d8] sm:$0xff]   ;;  %v8237_v60 = vld [vmem:[%s11112_s3 + $0x420] sm:$0xff]  }
  0xec   : > { %7677 = vmatpush3.bf16.msra.mxu0 %v8166_v8  ;;  %2115 = vmatprep.mubr.bf16.mxu0 %v654_v19  ;;  %v8202_v8 = vld [vmem:[%s11112_s3 + $0x308] sm:$0xff]   ;;  %v8211_v19 = vld [vmem:[%s11112_s3 + $0x398] sm:$0xff]   ;;  %v8240_v61 = vld [vmem:[%s11112_s3 + $0x470] sm:$0xff]  }
  0xed   : > { %7699 = vmatpush3.bf16.msra.mxu1 %v8167_v11  ;;  %2156 = vmatprep.mubr.bf16.mxu1 %v674_v22  ;;  %v8204_v11 = vld [vmem:[%s11112_s3 + $0x350] sm:$0xff]   ;;  %v8214_v22 = vld [vmem:[%s11112_s3 + $0x320] sm:$0xff]   ;;  %v8239_v52 = vld [vmem:[%s11112_s3 + $0x428] sm:$0xff]  }
  0xee   : > { %7678 = vmatprep.subr.bf16.mxu0 %v8168_v14  ;;  %7700 = vmatprep.subr.bf16.mxu1 %v8169_v16  ;;  %v8206_v14 = vld [vmem:[%s11112_s3 + $0x310] sm:$0xff]   ;;  %v8208_v16 = vld [vmem:[%s11112_s3 + $0x358] sm:$0xff]  }
  0xf0   : > { %7679 = vmatpush3.bf16.msra.mxu0 %v8170_v18  ;;  %v8210_v18 = vld [vmem:[%s11112_s3 + $0x318] sm:$0xff]  }
  0xf1   : > { %7701 = vmatpush3.bf16.msra.mxu1 %v8171_v20  ;;  %7680 = vmatprep.subr.bf16.mxu0 %v8172_v21  ;;  %v8212_v20 = vld [vmem:[%s11112_s3 + $0x360] sm:$0xff]  }
  0xf2   : > { %7702 = vmatprep.subr.bf16.mxu1 %v8173_v23  ;;  %v8213_v21 = vld [vmem:[%s11112_s3 + $0x3e0] sm:$0xff]  }
  0xf3   : > { %v8215_v23 = vld [vmem:[%s11112_s3 + $0x3a0] sm:$0xff]  }
  0xf4   : > { %7681 = vmatpush3.bf16.msra.mxu0 %v8174_v24  ;;  %v8216_v24 = vld [vmem:[%s11112_s3 + $0x368] sm:$0xff]  }
  0xf5   : > { %7703 = vmatpush3.bf16.msra.mxu1 %v8175_v25  ;;  %7682 = vmatprep.subr.bf16.mxu0 %v8176_v26  ;;  %v8217_v25 = vld [vmem:[%s11112_s3 + $0x3e8] sm:$0xff]  }
  0xf6   : > { %7704 = vmatprep.subr.bf16.mxu1 %v8177_v27  ;;  %v8218_v26 = vld [vmem:[%s11112_s3 + $0x328] sm:$0xff]  }
  0xf7   : > { %v8219_v27 = vld [vmem:[%s11112_s3 + $0x3a8] sm:$0xff]  }
  0xf8   : > { %7683 = vmatpush3.bf16.msra.mxu0 %v8178_v28  ;;  %v8220_v28 = vld [vmem:[%s11112_s3 + $0x370] sm:$0xff]  }
  0xf9   : > { %7705 = vmatpush3.bf16.msra.mxu1 %v8179_v29  ;;  %7684 = vmatprep.subr.bf16.mxu0 %v8180_v30  ;;  %v8221_v29 = vld [vmem:[%s11112_s3 + $0x3f0] sm:$0xff]  }
  0xfa   : > { %7706 = vmatprep.subr.bf16.mxu1 %v8181_v31  ;;  %v8222_v30 = vld [vmem:[%s11112_s3 + $0x330] sm:$0xff]  }
  0xfb   : > { %v8223_v31 = vld [vmem:[%s11112_s3 + $0x3b0] sm:$0xff]  }
  0xfc   : > { %7685 = vmatpush3.bf16.msra.mxu0 %v8182_v32  ;;  %v8224_v32 = vld [vmem:[%s11112_s3 + $0x378] sm:$0xff]  }
  0xfd   : > { %7707 = vmatpush3.bf16.msra.mxu1 %v8183_v33  ;;  %7686 = vmatprep.subr.bf16.mxu0 %v8184_v34  ;;  %v8225_v33 = vld [vmem:[%s11112_s3 + $0x3f8] sm:$0xff]  }
  0xfe   : > { %7708 = vmatprep.subr.bf16.mxu1 %v8185_v35  ;;  %v8226_v34 = vld [vmem:[%s11112_s3 + $0x338] sm:$0xff]  }
  0xff   : > { %v8227_v35 = vld [vmem:[%s11112_s3 + $0x3b8] sm:$0xff]  }
 0x100   : > { %7687 = vmatpush3.bf16.msra.mxu0 %v8186_v36  ;;  %v8228_v36 = vld [vmem:[%s11112_s3 + $0x440] sm:$0xff]  }
 0x101   : > { %7709 = vmatpush3.bf16.msra.mxu1 %v8187_v37  ;;  %7688 = vmatprep.subr.bf16.mxu0 %v8188_v38  ;;  %v727_v37 = vpop.permute.xlu1 %726  ;;  %v722_v38 = vpop.permute.xlu0 %721 }
 0x102   : > { %7710 = vmatprep.subr.bf16.mxu1 %v8189_v39  ;;  %v691_v39 = vmul.f32 %v9482_v41, %v9259_v62  ;;  %v730_v41 = vmul.f32 %v722_v38, %v9261_v63 }
 0x104   : > { %7689 = vmatpush3.bf16.msra.mxu0 %v8190_v40  ;;  %v689_v40 = vmul.f32 %v9484_v42, %v9259_v62  ;;  %v8230_v42 = vld [vmem:[%s11112_s3 + $0x448] sm:$0xff]  }
 0x105   : > { %7711 = vmatpush3.bf16.msra.mxu1 %v8191_v43  ;;  %7690 = vmatprep.subr.bf16.mxu0 %v8192_v44  ;;  %v711_v43 = vmul.f32 %v9511_v54, %v9259_v62  ;;  %v709_v44 = vmul.f32 %v9513_v55, %v9259_v62  ;;  %v8234_v54 = vld [vmem:[%s11112_s3 + $0x458] sm:$0xff]  }
 0x106   : > { %7712 = vmatprep.subr.bf16.mxu1 %v8193_v45  ;;  %v8229_v45 = vld [vmem:[%s11112_s3 + $0x400] sm:$0xff]   ;;  %v8235_v55 = vld [vmem:[%s11112_s3 + $0x418] sm:$0xff]  }
 0x108   : > { %7691 = vmatpush3.bf16.msra.mxu0 %v8194_v46  ;;  %v732_v46 = vmul.f32 %v727_v37, %v9261_v63  ;;  %v8233_v63 = vld [vmem:[%s11112_s3 + $0x410] sm:$0xff]  }
 0x109   : > { %7713 = vmatpush3.bf16.msra.mxu1 %v8195_v47  ;;  %7720 = vmatprep.subr.bf16.mxu0 %v8196_v48  ;;  %v693_v47 = vpack.c.bf16 %v691_v39, %v689_v40  ;;  %v713_v48 = vpack.c.bf16 %v711_v43, %v709_v44 }
 0x10a   : > { %7742 = vmatprep.subr.bf16.mxu1 %v8197_v49  ;;  %v8231_v49 = vld [vmem:[%s11112_s3 + $0x408] sm:$0xff]   ;;  %v734_v50 = vpack.c.bf16 %v732_v46, %v730_v41 }
 0x10b   : > { %2116 = vmatmul.mubr.bf16.vlgmr.msra.gmra.mrb[8].mxu0 %v653_v5  ;;  %v729_v5 = vmul.f32 %v722_v38, %v9259_v62 }
 0x10c   : > { %2157 = vmatmul.mubr.bf16.vlgmr.msra.gmra.mrb[8].mxu1 %v673_v7  ;;  %7721 = vmatpush3.bf16.msra.mxu0 %v8198_v51  ;;  %v8238_v51 = vld [vmem:[%s11112_s3 + $0x468] sm:$0xff]   ;;  %v1048_v7 = vpop.permute.xlu0 %1047 }
 0x10d   : > { %2197 = vmatprep.mubr.bf16.mxu0 %v694_v9  ;;  %7743 = vmatpush3.bf16.msra.mxu1 %v8199_v0  ;;  %v8241_v0 = vld [vmem:[%s11112_s3 + $0x430] sm:$0xff]  }
 0x10e   : > { %2238 = vmatprep.mubr.bf16.mxu1 %v714_v12  ;;  %7722 = vmatprep.subr.bf16.mxu0 %v8200_v4  ;;  %v731_v4 = vmul.f32 %v727_v37, %v9259_v62 }
 0x10f   : > { %7744 = vmatprep.subr.bf16.mxu1 %v8201_v6 }
 0x110   : > { %7723 = vmatpush3.bf16.msra.mxu0 %v8202_v8  ;;  %v733_v6 = vpack.c.bf16 %v731_v4, %v729_v5 }
 0x111   : > { %7745 = vmatpush3.bf16.msra.mxu1 %v8203_v10  ;;  %7724 = vmatprep.subr.bf16.mxu0 %v8204_v11 }
 0x112   : > { %7746 = vmatprep.subr.bf16.mxu1 %v8205_v13 }
 0x114   : > { %7725 = vmatpush3.bf16.msra.mxu0 %v8206_v14 }
 0x115   : > { %7747 = vmatpush3.bf16.msra.mxu1 %v8207_v15  ;;  %7726 = vmatprep.subr.bf16.mxu0 %v8208_v16 }
 0x116   : > { %7748 = vmatprep.subr.bf16.mxu1 %v8209_v17 }
 0x118   : > { %7727 = vmatpush3.bf16.msra.mxu0 %v8210_v18 }
 0x119   : > { %7749 = vmatpush3.bf16.msra.mxu1 %v8211_v19  ;;  %7728 = vmatprep.subr.bf16.mxu0 %v8212_v20  ;;  %v1053_v20 = vpop.permute.xlu1 %1052 }
 0x11a   : > { %7750 = vmatprep.subr.bf16.mxu1 %v8213_v21 }
 0x11c   : > { %7729 = vmatpush3.bf16.msra.mxu0 %v8214_v22 }
 0x11d   : > { %7751 = vmatpush3.bf16.msra.mxu1 %v8215_v23  ;;  %7730 = vmatprep.subr.bf16.mxu0 %v8216_v24  ;;  %v8927_v24 = vmov 0.0  }
 0x11e   : > { %7752 = vmatprep.subr.bf16.mxu1 %v8217_v25 }
 0x120   : > { %7731 = vmatpush3.bf16.msra.mxu0 %v8218_v26 }
 0x121   : > { %7753 = vmatpush3.bf16.msra.mxu1 %v8219_v27  ;;  %7732 = vmatprep.subr.bf16.mxu0 %v8220_v28 }
 0x122   : > { %7754 = vmatprep.subr.bf16.mxu1 %v8221_v29 }
 0x124   : > { %7733 = vmatpush3.bf16.msra.mxu0 %v8222_v30 }
 0x125   : > { %7755 = vmatpush3.bf16.msra.mxu1 %v8223_v31  ;;  %7734 = vmatprep.subr.bf16.mxu0 %v8224_v32 }
 0x126   : > { %7756 = vmatprep.subr.bf16.mxu1 %v8225_v33 }
 0x128   : > { %7735 = vmatpush3.bf16.msra.mxu0 %v8226_v34 }
 0x129   : > { %7757 = vmatpush3.bf16.msra.mxu1 %v8227_v35  ;;  %7764 = vmatprep.subr.bf16.mxu0 %v8228_v36 }
 0x12a   : > { %7875 = vmatprep.subr.bf16.mxu1 %v8927_v24 }
 0x12b   : > { %2198 = vmatmul.mubr.bf16.vlgmr.msra.gmra.mrb[12].mxu0 %v693_v47 }
 0x12c   : > { %2239 = vmatmul.mubr.bf16.vlgmr.msra.gmra.mrb[12].mxu1 %v713_v48  ;;  %7765 = vmatpush3.bf16.msra.mxu0 %v8229_v45 }
 0x12d   : > { %2279 = vmatprep.mubr.bf16.mxu0 %v734_v50  ;;  %7766 = vmatprep.subr.bf16.mxu0 %v8230_v42 }
 0x12e   : > { %7877 = vmatprep.mubr.msk.bf16.mxu1 %vm8928_vm0, %v8927_v24 }
 0x130   : > { %7767 = vmatpush3.bf16.msra.mxu0 %v8231_v49 }
 0x131   : > { %7768 = vmatprep.subr.bf16.mxu0 %v8232_v53 }
 0x134   : > { %7769 = vmatpush3.bf16.msra.mxu0 %v8233_v63 }
 0x135   : > { %7770 = vmatprep.subr.bf16.mxu0 %v8234_v54 }
 0x138   : > { %7771 = vmatpush3.bf16.msra.mxu0 %v8235_v55 }
 0x139   : > { %7772 = vmatprep.subr.bf16.mxu0 %v8236_v59 }
 0x13c   : > { %7773 = vmatpush3.bf16.msra.mxu0 %v8237_v60 }
 0x13d   : > { %7774 = vmatprep.subr.bf16.mxu0 %v8238_v51 }
 0x140   : > { %7775 = vmatpush3.bf16.msra.mxu0 %v8239_v52 }
 0x141   : > { %7776 = vmatprep.subr.bf16.mxu0 %v8240_v61 }
 0x144   : > { %7777 = vmatpush3.bf16.msra.mxu0 %v8241_v0 }
 0x145   : > { %7778 = vmatprep.subr.bf16.mxu0 %v8242_v2 }
 0x148   : > { %7779 = vmatpush3.bf16.msra.mxu0 %v8243_v3 }
 0x14b   : > { %2280 = vmatmul.mubr.bf16.vlgmr.msra.gmra.mrb[16].mxu0 %v733_v6 }
 0x19e   : > { %v7604_v8 = vpop.f32.mrb[0].mxu0  ;;  %v7626_v10 = vpop.f32.mrb[0].mxu1 }
 0x19f   : > { %v7605_v9 = vpop.f32.mrb[1].mxu0  ;;  %v7627_v13 = vpop.f32.mrb[1].mxu1 }
 0x1a0   : > { %v7606_v11 = vadd.f32 %v7605_v9, %v7604_v8  ;;  %v7607_v12 = vpop.f32.mrb[2].mxu0  ;;  %v7628_v15 = vadd.f32 %v7627_v13, %v7626_v10  ;;  %v7629_v16 = vpop.f32.mrb[2].mxu1 }
 0x1a1   : > { %v7608_v14 = vpop.f32.mrb[3].mxu0  ;;  %v7630_v19 = vpop.f32.mrb[3].mxu1 }
 0x1a2   : > { %v1954_v17 = vadd.f32 %v7606_v11, %v1048_v7  ;;  %v7609_v18 = vadd.f32 %v7608_v14, %v7607_v12  ;;  %v7631_v21 = vadd.f32 %v7630_v19, %v7629_v16 }
 0x1a4   : > { %v1957_v62 = vadd.f32 %v7609_v18, %v1053_v20  ;;  %v1995_v22 = vadd.f32 %v7628_v15, %v1954_v17  ;;  %v9680_v18 = vstv %s6951_s19  ;;  %s8932_s19 = smov 48  }
 0x1a6   : > { %v1998_v23 = vadd.f32 %v7631_v21, %v1957_v62  ;;  %v9682_v62 = vstv %s6950_s22  ;;  %s8929_s22 = smov 64  }
 0x1be   : > { %v7648_v25 = vpop.f32.mrb[4].mxu0  ;;  %v7670_v26 = vpop.f32.mrb[4].mxu1 }
 0x1bf   : > { %v7649_v27 = vpop.f32.mrb[5].mxu0  ;;  %v7671_v29 = vpop.f32.mrb[5].mxu1 }
 0x1c0   : > { %v7650_v28 = vadd.f32 %v7649_v27, %v7648_v25  ;;  %v7651_v30 = vpop.f32.mrb[6].mxu0  ;;  %v7672_v31 = vadd.f32 %v7671_v29, %v7670_v26  ;;  %v7673_v32 = vpop.f32.mrb[6].mxu1  ;;  %v9688_v29 = vstv %s542_s23 }
 0x1c1   : > { %v7652_v33 = vpop.f32.mrb[7].mxu0  ;;  %v7674_v36 = vpop.f32.mrb[7].mxu1 }
 0x1c2   : > { %v2036_v34 = vadd.f32 %v7650_v28, %v1995_v22  ;;  %v7653_v35 = vadd.f32 %v7652_v33, %v7651_v30  ;;  %v7675_v37 = vadd.f32 %v7674_v36, %v7673_v32  ;;  %v8246_v36 = vld [vmem:[%s11114_s5 + $0x10] sm:$0xff]  }
 0x1c4   : > { %v2077_v38 = vadd.f32 %v7672_v31, %v2036_v34  ;;  %v2039_v39 = vadd.f32 %v7653_v35, %v1998_v23  ;;  %v8244_v34 = vld [vmem:[%s11114_s5] sm:$0xff]   ;;  %v8245_v35 = vld [vmem:[%s11114_s5 + $0x8] sm:$0xff]  }
 0x1c6   : > { %v2080_v40 = vadd.f32 %v7675_v37, %v2039_v39  ;;  %v8247_v37 = vld [vmem:[%s11114_s5 + $0x18] sm:$0xff]   ;;  %v8249_v39 = vld [vmem:[%s11114_s5 + $0x28] sm:$0xff]  }
 0x1de   : > { %v7692_v43 = vpop.f32.mrb[8].mxu0 }
 0x1df   : > { %v7714_v44 = vpop.f32.mrb[8].mxu1  ;;  %v7693_v45 = vpop.f32.mrb[9].mxu0 }
 0x1e0   : > { %v7694_v46 = vadd.f32 %v7693_v45, %v7692_v43  ;;  %v7715_v41 = vpop.f32.mrb[9].mxu1  ;;  %v7695_v42 = vpop.f32.mrb[10].mxu0  ;;  %v8251_v43 = vld [vmem:[%s11114_s5 + $0x38] sm:$0xff]   ;;  %v8253_v45 = vld [vmem:[%s11115_s6 + $0xc0] sm:$0xff]  }
 0x1e1   : > { %v7716_v47 = vadd.f32 %v7715_v41, %v7714_v44  ;;  %v7717_v48 = vpop.f32.mrb[10].mxu1  ;;  %v7696_v49 = vpop.f32.mrb[11].mxu0  ;;  %v8252_v44 = vld [vmem:[%s11114_s5 + $0x40] sm:$0xff]  }
 0x1e2   : > { %v2118_v50 = vadd.f32 %v7694_v46, %v2077_v38  ;;  %v7697_v53 = vadd.f32 %v7696_v49, %v7695_v42  ;;  %v7718_v63 = vpop.f32.mrb[11].mxu1  ;;  %v8248_v38 = vld [vmem:[%s11114_s5 + $0x20] sm:$0xff]   ;;  %v8258_v49 = vld [vmem:[%s11115_s6 + $0x8] sm:$0xff]  }
 0x1e3   : > { %v7719_v54 = vadd.f32 %v7718_v63, %v7717_v48  ;;  %v8254_v46 = vld [vmem:[%s11115_s6 + $0x80] sm:$0xff]   ;;  %v8259_v48 = vld [vmem:[%s11115_s6 + $0xc8] sm:$0xff]   ;;  %v8261_v63 = vld [vmem:[%s11115_s6 + $0x50] sm:$0xff]  }
 0x1e4   : > { %v2159_v55 = vadd.f32 %v7716_v47, %v2118_v50  ;;  %v2121_v59 = vadd.f32 %v7697_v53, %v2080_v40  ;;  %v8250_v40 = vld [vmem:[%s11114_s5 + $0x30] sm:$0xff]   ;;  %v8255_v41 = vld [vmem:[%s11115_s6 + $0x40] sm:$0xff]   ;;  %v8257_v47 = vld [vmem:[%s11115_s6 + $0x48] sm:$0xff]  }
 0x1e5   : > { %v8256_v42 = vld [vmem:[%s11115_s6] sm:$0xff]   ;;  %7796 = vmatprep.subr.bf16.mxu0 %v8255_v41  ;;  %v8260_v50 = vld [vmem:[%s11115_s6 + $0x88] sm:$0xff]  }
 0x1e6   : > { %v2162_v60 = vadd.f32 %v7719_v54, %v2121_v59  ;;  %7797 = vmatpush3.bf16.msra.mxu0 %v8256_v42  ;;  %v8262_v54 = vld [vmem:[%s11115_s6 + $0x10] sm:$0xff]  }
 0x1e7   : > { %7798 = vmatprep.subr.bf16.mxu0 %v8257_v47  ;;  %v2610_v47 = vld [vmem:[%s11116_s7 + $0x8] sm:$0xff] }
 0x1ea   : > { %7799 = vmatpush3.bf16.msra.mxu0 %v8258_v49  ;;  %v8286_v49 = vld [vmem:[%s11115_s6 + $0xf8] sm:$0xff]  }
 0x1eb   : > { %7800 = vmatprep.subr.bf16.mxu0 %v8261_v63 }
 0x1ee   : > { %7801 = vmatpush3.bf16.msra.mxu0 %v8262_v54 }
 0x1fe   : > { %v7736_v51 = vpop.f32.mrb[12].mxu0 }
 0x1ff   : > { %v7758_v52 = vpop.f32.mrb[12].mxu1  ;;  %v7737_v61 = vpop.f32.mrb[13].mxu0 }
 0x200   : > { %v7738_v0 = vadd.f32 %v7737_v61, %v7736_v51  ;;  %v7759_v2 = vpop.f32.mrb[13].mxu1  ;;  %v7739_v3 = vpop.f32.mrb[14].mxu0  ;;  %v8266_v51 = vld [vmem:[%s11115_s6 + $0x90] sm:$0xff]  }
 0x201   : > { %v7760_v4 = vadd.f32 %v7759_v2, %v7758_v52  ;;  %v7761_v5 = vpop.f32.mrb[14].mxu1  ;;  %v7740_v6 = vpop.f32.mrb[15].mxu0  ;;  %v8264_v2 = vld [vmem:[%s11115_s6 + $0x18] sm:$0xff]  }
 0x202   : > { %v2200_v7 = vadd.f32 %v7738_v0, %v2159_v55  ;;  %v7741_v8 = vadd.f32 %v7740_v6, %v7739_v3  ;;  %v7762_v9 = vpop.f32.mrb[15].mxu1  ;;  %v8263_v55 = vld [vmem:[%s11115_s6 + $0x58] sm:$0xff]   ;;  %v8267_v3 = vld [vmem:[%s11115_s6 + $0x60] sm:$0xff]   ;;  %v8269_v6 = vld [vmem:[%s11115_s6 + $0x68] sm:$0xff]  }
 0x203   : > { %v7763_v10 = vadd.f32 %v7762_v9, %v7761_v5  ;;  %7802 = vmatprep.subr.bf16.mxu0 %v8263_v55 }
 0x204   : > { %v2241_v11 = vadd.f32 %v7760_v4, %v2200_v7  ;;  %v2203_v12 = vadd.f32 %v7741_v8, %v2162_v60  ;;  %v8265_v60 = vld [vmem:[%s11115_s6 + $0xd0] sm:$0xff]   ;;  %7803 = vmatpush3.bf16.msra.mxu0 %v8264_v2  ;;  %v8268_v4 = vld [vmem:[%s11115_s6 + $0x20] sm:$0xff]  }
 0x205   : > { %7804 = vmatprep.subr.bf16.mxu0 %v8267_v3 }
 0x206   : > { %v2244_v13 = vadd.f32 %v7763_v10, %v2203_v12 }
 0x208   : > { %7805 = vmatpush3.bf16.msra.mxu0 %v8268_v4 }
 0x209   : > { %7806 = vmatprep.subr.bf16.mxu0 %v8269_v6 }
 0x21e   : > { %v7780_v14 = vpop.f32.mrb[16].mxu0 }
 0x21f   : > { %v7781_v15 = vpop.f32.mrb[17].mxu0 }
 0x220   : > { %v7782_v16 = vadd.f32 %v7781_v15, %v7780_v14  ;;  %v7783_v17 = vpop.f32.mrb[18].mxu0  ;;  %v8272_v14 = vld [vmem:[%s11115_s6 + $0x70] sm:$0xff]   ;;  %v8273_v15 = vld [vmem:[%s11115_s6 + $0x98] sm:$0xff]  }
 0x221   : > { %v7784_v19 = vpop.f32.mrb[19].mxu0 }
 0x222   : > { %v2282_v20 = vadd.f32 %v7782_v16, %v2241_v11  ;;  %v7785_v21 = vadd.f32 %v7784_v19, %v7783_v17  ;;  %v8270_v11 = vld [vmem:[%s11115_s6 + $0x28] sm:$0xff]   ;;  %v8274_v17 = vld [vmem:[%s11115_s6 + $0x30] sm:$0xff]   ;;  %v8275_v19 = vld [vmem:[%s11115_s6 + $0x78] sm:$0xff]  }
 0x223   : > { %7807 = vmatpush3.bf16.msra.mxu0 %v8270_v11 }
 0x224   : > { %v2289_v22 = vmul.f32 %v9680_v18, %v2282_v20  ;;  %v2285_v23 = vadd.f32 %v7785_v21, %v2244_v13  ;;  %v8271_v13 = vld [vmem:[%s11115_s6 + $0xd8] sm:$0xff]   ;;  %7808 = vmatprep.subr.bf16.mxu0 %v8272_v14 }
 0x226   : > { %v2292_v25 = vadd.f32 %v9682_v62, %v2289_v22  ;;  %v2290_v26 = vmul.f32 %v9680_v18, %v2285_v23 }
 0x227   : > { %7809 = vmatpush3.bf16.msra.mxu0 %v8274_v17 }
 0x228   : > { %v2294_v27 = vmul.f32 %v2292_v25, %v2282_v20  ;;  %v2293_v28 = vadd.f32 %v9682_v62, %v2290_v26  ;;  %7810 = vmatprep.subr.bf16.mxu0 %v8275_v19 }
 0x22a   : > { %v2295_v30 = vmul.f32 %v2293_v28, %v2285_v23  ;;  %v2297_v31 = vadd.f32 %v9688_v29, %v2294_v27  ;;  %v8276_v23 = vld [vmem:[%s11115_s6 + $0x38] sm:$0xff]   ;;  %v8277_v27 = vld [vmem:[%s11115_s6 + $0xe0] sm:$0xff]  }
 0x22b   : > { %7811 = vmatpush3.bf16.msra.mxu0 %v8276_v23  ;;  %v8278_v28 = vld [vmem:[%s11115_s6 + $0xa0] sm:$0xff]  }
 0x22c   : > { %v2298_v32 = vadd.f32 %v9688_v29, %v2295_v30  ;;  %7913 = vmatprep.subr.bf16.mxu0 %v8927_v24 }
 0x22e   : > { %v2317_v33 = vpack.c.bf16 %v2298_v32, %v2297_v31 }
 0x230   : > { %7876 = vmatpush3.bf16.msra.mxu1 %v2317_v33 }
 0x231   : > { %7818 = vmatprep.subr.bf16.mxu1 %v8253_v45 }
 0x233   : > { %7878 = vmatmul.mubr.msk.bf16.vlgmr.msra.gmra.mrb[16].mxu1 %vm2363_vm1, %v8244_v34  ;;  %v8279_v34 = vld [vmem:[%s11115_s6 + $0xe8] sm:$0xff]  }
 0x234   : > { %7881 = vmatprep.mubr.msk.bf16.mxu1 %vm8928_vm0, %v8927_v24  ;;  %7819 = vmatpush3.bf16.msra.mxu1 %v8254_v46 }
 0x235   : > { %7820 = vmatprep.subr.bf16.mxu1 %v8259_v48 }
 0x238   : > { %7821 = vmatpush3.bf16.msra.mxu1 %v8260_v50  ;;  %v8287_v50 = vld [vmem:[%s11115_s6 + $0xb8] sm:$0xff]  }
 0x239   : > { %7822 = vmatprep.subr.bf16.mxu1 %v8265_v60 }
 0x23b   : > { %7882 = vmatmul.mubr.msk.bf16.gmra.mrb[20].mxu1 %vm2363_vm1, %v8245_v35  ;;  %v8280_v35 = vld [vmem:[%s11115_s6 + $0xa8] sm:$0xff]  }
 0x23c   : > { %7885 = vmatprep.mubr.msk.bf16.mxu1 %vm8928_vm0, %v8927_v24  ;;  %7823 = vmatpush3.bf16.msra.mxu1 %v8266_v51 }
 0x23d   : > { %7824 = vmatprep.subr.bf16.mxu1 %v8271_v13  ;;  %v8285_v13 = vld [vmem:[%s11115_s6 + $0x110] sm:$0xff]  }
 0x240   : > { %7825 = vmatpush3.bf16.msra.mxu1 %v8273_v15  ;;  %v8288_v15 = vld [vmem:[%s11115_s6 + $0x118] sm:$0xff]  }
 0x241   : > { %7826 = vmatprep.subr.bf16.mxu1 %v8277_v27 }
 0x243   : > { %7886 = vmatmul.mubr.msk.bf16.gmra.mrb[24].mxu1 %vm2363_vm1, %v8246_v36 }
 0x244   : > { %7889 = vmatprep.mubr.msk.bf16.mxu1 %vm8928_vm0, %v8927_v24  ;;  %7827 = vmatpush3.bf16.msra.mxu1 %v8278_v28 }
 0x245   : > { %7828 = vmatprep.subr.bf16.mxu1 %v8279_v34 }
 0x248   : > { %7829 = vmatpush3.bf16.msra.mxu1 %v8280_v35 }
 0x24b   : > { %7890 = vmatmul.mubr.msk.bf16.gmra.mrb[28].mxu1 %vm2363_vm1, %v8247_v37  ;;  %v8282_v37 = vld [vmem:[%s11115_s6 + $0xf0] sm:$0xff]  }
 0x24c   : > { %7893 = vmatprep.mubr.msk.bf16.mxu1 %vm8928_vm0, %v8927_v24  ;;  %7830 = vmatprep.subr.bf16.mxu1 %v8282_v37 }
 0x253   : > { %7894 = vmatmul.mubr.msk.bf16.gmra.mrb[32].mxu1 %vm2363_vm1, %v8248_v38 }
 0x254   : > { %7897 = vmatprep.mubr.msk.bf16.mxu1 %vm8928_vm0, %v8927_v24 }
 0x25b   : > { %7898 = vmatmul.mubr.msk.bf16.gmra.mrb[36].mxu1 %vm2363_vm1, %v8249_v39 }
 0x25c   : > { %7901 = vmatprep.mubr.msk.bf16.mxu1 %vm8928_vm0, %v8927_v24 }
 0x263   : > { %7902 = vmatmul.mubr.msk.bf16.gmra.mrb[40].mxu1 %vm2363_vm1, %v8250_v40 }
 0x264   : > { %7905 = vmatprep.mubr.msk.bf16.mxu1 %vm8928_vm0, %v8927_v24 }
 0x26b   : > { %7906 = vmatmul.mubr.msk.bf16.gmra.mrb[44].mxu1 %vm2363_vm1, %v8251_v43  ;;  %v8283_v43 = vld [vmem:[%s11115_s6 + $0xb0] sm:$0xff]  }
 0x26c   : > { %7909 = vmatprep.mubr.msk.bf16.mxu1 %vm8928_vm0, %v8927_v24  ;;  %7831 = vmatpush3.bf16.msra.mxu1 %v8283_v43 }
 0x26d   : > { %7832 = vmatprep.subr.bf16.mxu1 %v8286_v49 }
 0x270   : > { %7833 = vmatpush3.bf16.msra.mxu1 %v8287_v50 }
 0x271   : > { %8003 = vmatprep.subr.bf16.mxu1 %v8926_v1 }
 0x273   : > { %7910 = vmatmul.mubr.msk.bf16.gmra.mrb[48].mxu1 %vm2363_vm1, %v8252_v44 }
 0x306   : > { %v2425_v53 = vpop.f32.mrb[16].mxu1 }
 0x307   : > { %v7879_v59 = vpop.f32.mrb[17].mxu1 }
 0x308   : > { %v2428_v52 = vpop.f32.mrb[18].mxu1 }
 0x309   : > { %v2496_v61 = vpack.c.bf16 %v2428_v52, %v2425_v53  ;;  %v7880_v0 = vpop.f32.mrb[19].mxu1 }
 0x30a   : > { %v2609_v0 = vld [vmem:[%s11116_s7] sm:$0xff] }
 0x30b   : > { %2498 = vst.msk [vmem:[#allocation3] sm:$0xff] %vm2497_vm2, %v2496_v61 }
 0x30e   : > { %v2433_v5 = vpop.f32.mrb[20].mxu1 }
 0x30f   : > { %v7883_v7 = vpop.f32.mrb[21].mxu1 }
 0x310   : > { %v2436_v8 = vpop.f32.mrb[22].mxu1 }
 0x311   : > { %v2499_v9 = vpack.c.bf16 %v2436_v8, %v2433_v5  ;;  %v7884_v10 = vpop.f32.mrb[23].mxu1 }
 0x313   : > { %2501 = vrot.lane.b32.xlu1 %v2499_v9, %s8929_s22  ;;  %v8281_v9 = vld [vmem:[%s11115_s6 + $0x100] sm:$0xff]  }
 0x316   : > { %v2441_v12 = vpop.f32.mrb[24].mxu1 }
 0x317   : > { %v7887_v16 = vpop.f32.mrb[25].mxu1 }
 0x318   : > { %v2444_v20 = vpop.f32.mrb[26].mxu1 }
 0x319   : > { %v2506_v21 = vpack.c.bf16 %v2444_v20, %v2441_v12  ;;  %v7888_v22 = vpop.f32.mrb[27].mxu1  ;;  %v8284_v12 = vld [vmem:[%s11115_s6 + $0x108] sm:$0xff]  }
 0x31b   : > { %2507 = vst.msk [vmem:[#allocation3 + $0x8] sm:$0xff] %vm2497_vm2, %v2506_v21  ;;  %v8289_v21 = vld [vmem:[%s11117_s8] sm:$0xff]  }
 0x31e   : > { %v2449_v25 = vpop.f32.mrb[28].mxu1 }
 0x31f   : > { %v7891_v26 = vpop.f32.mrb[29].mxu1 }
 0x320   : > { %v2452_v30 = vpop.f32.mrb[30].mxu1 }
 0x321   : > { %v2508_v31 = vpack.c.bf16 %v2452_v30, %v2449_v25  ;;  %v7892_v32 = vpop.f32.mrb[31].mxu1 }
 0x323   : > { %2510 = vrot.lane.b32.xlu0 %v2508_v31, %s8929_s22 }
 0x326   : > { %v2457_v33 = vpop.f32.mrb[32].mxu1 }
 0x327   : > { %v7895_v36 = vpop.f32.mrb[33].mxu1 }
 0x328   : > { %v2460_v38 = vpop.f32.mrb[34].mxu1 }
 0x329   : > { %v2514_v39 = vpack.c.bf16 %v2460_v38, %v2457_v33  ;;  %v7896_v40 = vpop.f32.mrb[35].mxu1 }
 0x32b   : > { %2515 = vst.msk [vmem:[#allocation3 + $0x10] sm:$0xff] %vm2497_vm2, %v2514_v39 }
 0x32e   : > { %v2465_v44 = vpop.f32.mrb[36].mxu1 }
 0x32f   : > { %v7899_v45 = vpop.f32.mrb[37].mxu1 }
 0x330   : > { %v2468_v46 = vpop.f32.mrb[38].mxu1 }
 0x331   : > { %v2516_v41 = vpack.c.bf16 %v2468_v46, %v2465_v44  ;;  %v7900_v42 = vpop.f32.mrb[39].mxu1 }
 0x333   : > { %2518 = vrot.lane.b32.xlu1 %v2516_v41, %s8929_s22 }
 0x336   : > { %v2473_v48 = vpop.f32.mrb[40].mxu1 }
 0x337   : > { %2618 = vperm.xlu1 %8099, %v2610_v47   ;;  %v7903_v53 = vpop.f32.mrb[41].mxu1 }
 0x338   : > { %v2476_v63 = vpop.f32.mrb[42].mxu1 }
 0x339   : > { %v2522_v54 = vpack.c.bf16 %v2476_v63, %v2473_v48  ;;  %v7904_v55 = vpop.f32.mrb[43].mxu1 }
 0x33b   : > { %2523 = vst.msk [vmem:[#allocation3 + $0x18] sm:$0xff] %vm2497_vm2, %v2522_v54 }
 0x33e   : > { %v2481_v59 = vpop.f32.mrb[44].mxu1 }
 0x33f   : > { %v7907_v60 = vpop.f32.mrb[45].mxu1 }
 0x340   : > { %v2484_v51 = vpop.f32.mrb[46].mxu1 }
 0x341   : > { %v2524_v52 = vpack.c.bf16 %v2484_v51, %v2481_v59  ;;  %v7908_v61 = vpop.f32.mrb[47].mxu1  ;;  %v8290_v51 = vld [vmem:[%s11117_s8 + $0x8] sm:$0xff]  }
 0x342   : > { %v8292_v61 = vld [vmem:[%s11117_s8 + $0x18] sm:$0xff]  }
 0x343   : > { %2526 = vrot.lane.b32.xlu0 %v2524_v52, %s8929_s22  ;;  %v8291_v52 = vld [vmem:[%s11117_s8 + $0x10] sm:$0xff]  }
 0x346   : > { %v2489_v2 = vpop.f32.mrb[48].mxu1 }
 0x347   : > { %2613 = vperm.xlu0 %8098, %v2609_v0   ;;  %v7911_v3 = vpop.f32.mrb[49].mxu1  ;;  %v8293_v0 = vld [vmem:[%s11117_s8 + $0x20] sm:$0xff]  }
 0x348   : > { %v2492_v4 = vpop.f32.mrb[50].mxu1  ;;  %v8295_v3 = vld [vmem:[%s11117_s8 + $0x30] sm:$0xff]  }
 0x349   : > { %v2530_v5 = vpack.c.bf16 %v2492_v4, %v2489_v2  ;;  %v7912_v6 = vpop.f32.mrb[51].mxu1  ;;  %v8294_v2 = vld [vmem:[%s11117_s8 + $0x28] sm:$0xff]   ;;  %v8296_v4 = vld [vmem:[%s11117_s8 + $0x38] sm:$0xff]  }
 0x34a   : > { %v8298_v6 = vld [vmem:[%s11117_s8 + $0x48] sm:$0xff]  }
 0x34b   : > { %2531 = vst.msk [vmem:[#allocation3 + $0x20] sm:$0xff] %vm2497_vm2, %v2530_v5  ;;  %v8297_v5 = vld [vmem:[%s11117_s8 + $0x40] sm:$0xff]  }
 0x352   : > { %v2536_v16 = vld [vmem:[#allocation3 + $0x20] sm:$0xff] }
 0x385   : > { %v2502_v7 = vpop.permute.xlu1 %2501 }
 0x386   : > { %2505 = vst.msk [vmem:[#allocation3] sm:$0xff] %vm2504_vm3, %v2502_v7  ;;  %v8299_v7 = vld [vmem:[%s11117_s8 + $0x50] sm:$0xff]  }
 0x38d   : > { %v2532_v11 = vld [vmem:[#allocation3] sm:$0xff] }
 0x395   : > { %v2511_v8 = vpop.permute.xlu0 %2510 }
 0x396   : > { %2513 = vst.msk [vmem:[#allocation3 + $0x8] sm:$0xff] %vm2504_vm3, %v2511_v8  ;;  %v8300_v8 = vld [vmem:[%s11117_s8 + $0x58] sm:$0xff]  }
 0x39d   : > { %v2533_v10 = vld [vmem:[#allocation3 + $0x8] sm:$0xff] }
 0x39e   : > { %2872 = vmatprep.mubr.bf16.mxu0 %v2533_v10  ;;  %v8302_v10 = vld [vmem:[%s11117_s8 + $0x68] sm:$0xff]  }
 0x39f   : > { %2873 = vmatmul.mubr.bf16.vlgmr.msra.gmra.mrb[20].mxu0 %v2532_v11  ;;  %v8303_v11 = vld [vmem:[%s11117_s8 + $0x70] sm:$0xff]  }
 0x3a0   : > { %7914 = vmatpush3.bf16.msra.mxu0 %v8281_v9  ;;  %7921 = vmatprep.mubr.msk.bf16.mxu0 %vm8928_vm0, %v8927_v24  ;;  %v8301_v9 = vld [vmem:[%s11117_s8 + $0x60] sm:$0xff]  }
 0x3a1   : > { %7915 = vmatprep.subr.bf16.mxu0 %v8927_v24 }
 0x3a4   : > { %7916 = vmatpush3.bf16.msra.mxu0 %v8284_v12  ;;  %v8304_v12 = vld [vmem:[%s11117_s8 + $0x78] sm:$0xff]  }
 0x3a5   : > { %v2519_v14 = vpop.permute.xlu1 %2518  ;;  %7917 = vmatprep.subr.bf16.mxu0 %v8927_v24 }
 0x3a6   : > { %2521 = vst.msk [vmem:[#allocation3 + $0x10] sm:$0xff] %vm2504_vm3, %v2519_v14  ;;  %v8306_v14 = vld [vmem:[%s11117_s8 + $0x88] sm:$0xff]  }
 0x3a8   : > { %7918 = vmatpush3.bf16.msra.mxu0 %v8285_v13  ;;  %v8305_v13 = vld [vmem:[%s11117_s8 + $0x80] sm:$0xff]  }
 0x3a9   : > { %7919 = vmatprep.subr.bf16.mxu0 %v8927_v24 }
 0x3ac   : > { %7920 = vmatpush3.bf16.msra.mxu0 %v8288_v15  ;;  %v8307_v15 = vld [vmem:[%s11118_s9] sm:$0xff]  }
 0x3ad   : > { %v2534_v20 = vld [vmem:[#allocation3 + $0x10] sm:$0xff] }
 0x3af   : > { %7922 = vmatmul.mubr.msk.bf16.vlgmr.msra.gmra.mrb[24].mxu0 %vm2497_vm2, %v2536_v16  ;;  %v8308_v16 = vld [vmem:[%s11118_s9 + $0x8] sm:$0xff]  }
 0x3b0   : > { %7927 = vmatprep.mubr.msk.bf16.mxu0 %vm2363_vm1, %v8289_v21 }
 0x3b5   : > { %v2527_v17 = vpop.permute.xlu0 %2526 }
 0x3b6   : > { %2529 = vst.msk [vmem:[#allocation3 + $0x18] sm:$0xff] %vm2504_vm3, %v2527_v17  ;;  %v2619_v40 = vpop.permute.xlu1 %2618 }
 0x3bd   : > { %v2535_v19 = vld [vmem:[#allocation3 + $0x18] sm:$0xff] }
 0x3be   : > { %2913 = vmatprep.mubr.bf16.mxu1 %v2535_v19 }
 0x3bf   : > { %2914 = vmatmul.mubr.bf16.vlgmr.msra.gmra.mrb[52].mxu1 %v2534_v20 }
 0x3c0   : > { %8012 = vmatpush1.bf16.msra.mxu1 %v8307_v15 }
 0x3c1   : > { %8004 = vmatprep.subr.bf16.mxu1 %v8926_v1 }
 0x3c4   : > { %8013 = vmatpush1.bf16.msra.mxu1 %v8308_v16 }
 0x3c5   : > { %8005 = vmatprep.subr.bf16.mxu1 %v8926_v1 }
 0x3c6   : > { %v2614_v35 = vpop.permute.xlu0 %2613 }
 0x472   : > { %v7812_v22 = vpop.f32.mrb[20].mxu0 }
 0x473   : > { %v7813_v23 = vpop.f32.mrb[21].mxu0 }
 0x474   : > { %v7814_v25 = vadd.f32 %v7813_v23, %v7812_v22  ;;  %v7815_v26 = vpop.f32.mrb[22].mxu0 }
 0x475   : > { %v7816_v27 = vpop.f32.mrb[23].mxu0 }
 0x476   : > { %v7817_v28 = vadd.f32 %v7816_v27, %v7815_v26  ;;  %v2875_v37 = vadd.f32 %v7814_v25, %v2614_v35  ;;  %v8309_v25 = vld [vmem:[%s11118_s9 + $0x10] sm:$0xff]  }
 0x477   : > { %8014 = vmatpush1.bf16.msra.mxu1 %v8309_v25 }
 0x478   : > { %v2878_v44 = vadd.f32 %v7817_v28, %v2619_v40  ;;  %8006 = vmatprep.subr.bf16.mxu1 %v8926_v1  ;;  %v8310_v28 = vld [vmem:[%s11118_s9 + $0x18] sm:$0xff]   ;;  %v8311_v40 = vld [vmem:[%s11118_s9 + $0x20] sm:$0xff]  }
 0x47b   : > { %8015 = vmatpush1.bf16.msra.mxu1 %v8310_v28 }
 0x47c   : > { %8007 = vmatprep.subr.bf16.mxu1 %v8926_v1 }
 0x47f   : > { %8016 = vmatpush1.bf16.msra.mxu1 %v8311_v40 }
 0x480   : > { %8008 = vmatprep.subr.bf16.mxu1 %v8926_v1 }
 0x482   : > { %v2956_v30 = vpop.f32.mrb[24].mxu0 }
 0x483   : > { %v7923_v31 = vpop.f32.mrb[25].mxu0 }
 0x484   : > { %v2959_v32 = vpop.f32.mrb[26].mxu0 }
 0x485   : > { %v7924_v33 = vpop.f32.mrb[27].mxu0 }
 0x492   : > { %v7834_v34 = vpop.f32.mrb[52].mxu1 }
 0x493   : > { %v7835_v36 = vpop.f32.mrb[53].mxu1 }
 0x494   : > { %v7836_v38 = vadd.f32 %v7835_v36, %v7834_v34  ;;  %v7837_v39 = vpop.f32.mrb[54].mxu1 }
 0x495   : > { %v7838_v43 = vpop.f32.mrb[55].mxu1 }
 0x496   : > { %v2916_v45 = vadd.f32 %v7836_v38, %v2875_v37  ;;  %v7839_v46 = vadd.f32 %v7838_v43, %v7837_v39 }
 0x498   : > { %v2957_v41 = vadd.f32 %v2956_v30, %v2916_v45  ;;  %v2919_v42 = vadd.f32 %v7839_v46, %v2878_v44  ;;  %v8312_v45 = vld [vmem:[%s11118_s9 + $0x28] sm:$0xff]  }
 0x499   : > { %8017 = vmatpush1.bf16.msra.mxu1 %v8312_v45 }
 0x49a   : > { %v2963_v47 = vmul.f32 %v2957_v41, %v9680_v18  ;;  %v2960_v48 = vadd.f32 %v2959_v32, %v2919_v42  ;;  %8009 = vmatprep.subr.bf16.mxu1 %v8926_v1 }
 0x49c   : > { %v2965_v49 = vadd.f32 %v2963_v47, %v9682_v62  ;;  %v2964_v50 = vmul.f32 %v2960_v48, %v9680_v18 }
 0x49e   : > { %v2967_v53 = vmul.f32 %v2965_v49, %v2957_v41  ;;  %v2966_v63 = vadd.f32 %v2964_v50, %v9682_v62 }
 0x4a0   : > { %v2968_v54 = vmul.f32 %v2966_v63, %v2960_v48  ;;  %v2969_v55 = vadd.f32 %v2967_v53, %v9688_v29 }
 0x4a2   : > { %v2970_v59 = vadd.f32 %v2968_v54, %v9688_v29 }
 0x4a4   : > { %v3007_v60 = vpack.c.bf16 %v2970_v59, %v2969_v55  ;;  %v8313_v55 = vld [vmem:[%s11118_s9 + $0x30] sm:$0xff]  }
 0x4a5   : > { %8018 = vmatpush1.bf16.msra.mxu1 %v8313_v55 }
 0x4a6   : > { %7925 = vmatprep.subr.bf16.mxu0 %v3007_v60  ;;  %8010 = vmatprep.subr.bf16.mxu1 %v8926_v1 }
 0x4a7   : > { %7926 = vmatpush3.bf16.msra.mxu0 %v3007_v60 }
 0x4a8   : > { %3534 = vmatprep.subr.bf16.mxu0 %v8926_v1 }
 0x4aa   : > { %7928 = vmatmul.mubr.msk.bf16.vlgmr.msra.gmra.mrb[28].mxu0 %vm2363_vm1, %v8290_v51  ;;  %v8314_v51 = vld [vmem:[%s11118_s9 + $0x38] sm:$0xff]  }
 0x4ab   : > { %7931 = vmatprep.mubr.msk.bf16.mxu0 %vm2363_vm1, %v8291_v52  ;;  %3535 = vmatpush1.bf16.msra.mxu0 %v8307_v15 }
 0x4ac   : > { %3536 = vmatprep.subr.bf16.mxu0 %v8926_v1  ;;  %8019 = vmatpush1.bf16.msra.mxu1 %v8314_v51 }
 0x4ad   : > { %8011 = vmatprep.subr.bf16.mxu1 %v8926_v1 }
 0x4af   : > { %3537 = vmatpush1.bf16.msra.mxu0 %v8308_v16 }
 0x4b0   : > { %3538 = vmatprep.subr.bf16.mxu0 %v8926_v1 }
 0x4b2   : > { %7932 = vmatmul.mubr.msk.bf16.gmra.mrb[32].mxu0 %vm2363_vm1, %v8292_v61 }
 0x4b3   : > { %7935 = vmatprep.mubr.msk.bf16.mxu0 %vm2363_vm1, %v8293_v0  ;;  %3539 = vmatpush1.bf16.msra.mxu0 %v8309_v25 }
 0x4b4   : > { %3540 = vmatprep.subr.bf16.mxu0 %v8926_v1 }
 0x4b7   : > { %3541 = vmatpush1.bf16.msra.mxu0 %v8310_v28 }
 0x4b8   : > { %3542 = vmatprep.subr.bf16.mxu0 %v8926_v1 }
 0x4ba   : > { %7936 = vmatmul.mubr.msk.bf16.gmra.mrb[36].mxu0 %vm2363_vm1, %v8294_v2 }
 0x4bb   : > { %7939 = vmatprep.mubr.msk.bf16.mxu0 %vm2363_vm1, %v8295_v3  ;;  %3543 = vmatpush1.bf16.msra.mxu0 %v8311_v40 }
 0x4bc   : > { %3544 = vmatprep.subr.bf16.mxu0 %v8926_v1 }
 0x4bf   : > { %3545 = vmatpush1.bf16.msra.mxu0 %v8312_v45 }
 0x4c0   : > { %3546 = vmatprep.subr.bf16.mxu0 %v8926_v1 }
 0x4c2   : > { %7940 = vmatmul.mubr.msk.bf16.gmra.mrb[40].mxu0 %vm2363_vm1, %v8296_v4 }
 0x4c3   : > { %7943 = vmatprep.mubr.msk.bf16.mxu0 %vm2363_vm1, %v8297_v5  ;;  %3547 = vmatpush1.bf16.msra.mxu0 %v8313_v55 }
 0x4c4   : > { %3548 = vmatprep.subr.bf16.mxu0 %v8926_v1 }
 0x4c7   : > { %3549 = vmatpush1.bf16.msra.mxu0 %v8314_v51 }
 0x4c8   : > { %3550 = vmatprep.subr.bf16.mxu0 %v8926_v1 }
 0x4ca   : > { %7944 = vmatmul.mubr.msk.bf16.gmra.mrb[44].mxu0 %vm2363_vm1, %v8298_v6 }
 0x4cb   : > { %7947 = vmatprep.mubr.msk.bf16.mxu0 %vm2363_vm1, %v8299_v7 }
 0x4d2   : > { %7948 = vmatmul.mubr.msk.bf16.gmra.mrb[48].mxu0 %vm2363_vm1, %v8300_v8 }
 0x4d3   : > { %7951 = vmatprep.mubr.msk.bf16.mxu0 %vm2363_vm1, %v8301_v9  ;;  %v8315_v9 = vld [vmem:[%s11118_s9 + $0x40] sm:$0xff]  }
 0x4d4   : > { %3551 = vmatpush1.bf16.msra.mxu0 %v8315_v9  ;;  %8020 = vmatpush1.bf16.msra.mxu1 %v8315_v9 }
 0x4d5   : > { %7963 = vmatprep.subr.bf16.mxu0 %v8927_v24 }
 0x4da   : > { %7952 = vmatmul.mubr.msk.bf16.gmra.mrb[52].mxu0 %vm2363_vm1, %v8302_v10  ;;  %v3450_v10 = vld [vmem:[%s11119_s10] sm:$0xff] }
 0x4db   : > { %7955 = vmatprep.mubr.msk.bf16.mxu0 %vm2363_vm1, %v8303_v11 }
 0x4e2   : > { %7956 = vmatmul.mubr.msk.bf16.gmra.mrb[56].mxu0 %vm2363_vm1, %v8304_v12 }
 0x4e3   : > { %7959 = vmatprep.mubr.msk.bf16.mxu0 %vm2363_vm1, %v8305_v13 }
 0x4ea   : > { %7960 = vmatmul.mubr.msk.bf16.gmra.mrb[60].mxu0 %vm2363_vm1, %v8306_v14  ;;  %v3452_v14 = vld [vmem:[%s11119_s10 + $0x10] sm:$0xff] }
 0x57d   : > { %v7929_v17 = vpop.f32.mrb[28].mxu0 }
 0x57e   : > { %v3186_v19 = vpop.f32.mrb[29].mxu0 }
 0x57f   : > { %v7930_v20 = vpop.f32.mrb[30].mxu0 }
 0x580   : > { %v3330_v21 = vpack.c.bf16 %v7930_v20, %v7929_v17  ;;  %v3189_v22 = vpop.f32.mrb[31].mxu0 }
 0x581   : > { %v3329_v23 = vpack.c.bf16 %v3189_v22, %v3186_v19  ;;  %v3451_v22 = vld [vmem:[%s11119_s10 + $0x8] sm:$0xff] }
 0x582   : > { %3332 = vst.msk [vmem:[#allocation4 + $0x10] sm:$0xff] %vm2363_vm1, %v3330_v21 }
 0x583   : > { %3331 = vst.msk [vmem:[#allocation4] sm:$0xff] %vm2363_vm1, %v3329_v23 }
 0x585   : > { %v7933_v26 = vpop.f32.mrb[32].mxu0 }
 0x586   : > { %v3202_v27 = vpop.f32.mrb[33].mxu0 }
 0x587   : > { %v7934_v30 = vpop.f32.mrb[34].mxu0 }
 0x588   : > { %v3334_v31 = vpack.c.bf16 %v7934_v30, %v7933_v26  ;;  %v3205_v32 = vpop.f32.mrb[35].mxu0 }
 0x589   : > { %v3333_v33 = vpack.c.bf16 %v3205_v32, %v3202_v27  ;;  %v3453_v27 = vld [vmem:[%s11119_s10 + $0x18] sm:$0xff] }
 0x58a   : > { %3339 = vrot.lane.b32.xlu0 %v3334_v31, %s8930_s29 }
 0x58d   : > { %v7937_v34 = vpop.f32.mrb[36].mxu0 }
 0x58e   : > { %3337 = vrot.lane.b32.xlu0 %v3333_v33, %s8930_s29  ;;  %v3218_v35 = vpop.f32.mrb[37].mxu0  ;;  %s11140_s29 = sld [smem:[#allocation16_spill]] }
 0x58f   : > { %v7938_v36 = vpop.f32.mrb[38].mxu0 }
 0x590   : > { %v3347_v37 = vpack.c.bf16 %v7938_v36, %v7937_v34  ;;  %v3221_v38 = vpop.f32.mrb[39].mxu0 }
 0x591   : > { %v3346_v39 = vpack.c.bf16 %v3221_v38, %v3218_v35 }
 0x592   : > { %3352 = vrot.lane.b32.xlu0 %v3347_v37, %s8931_s20 }
 0x593   : > { %3350 = vrot.lane.b32.xlu1 %v3346_v39, %s8931_s20 }
 0x595   : > { %v7941_v43 = vpop.f32.mrb[40].mxu0 }
 0x596   : > { %v3234_v44 = vpop.f32.mrb[41].mxu0 }
 0x597   : > { %v7942_v46 = vpop.f32.mrb[42].mxu0 }
 0x598   : > { %v3360_v41 = vpack.c.bf16 %v7942_v46, %v7941_v43  ;;  %v3237_v42 = vpop.f32.mrb[43].mxu0 }
 0x599   : > { %v3359_v47 = vpack.c.bf16 %v3237_v42, %v3234_v44 }
 0x59a   : > { %3365 = vrot.lane.b32.xlu0 %v3360_v41, %s8932_s19 }
 0x59d   : > { %v7945_v48 = vpop.f32.mrb[44].mxu0 }
 0x59e   : > { %3363 = vrot.lane.b32.xlu0 %v3359_v47, %s8932_s19  ;;  %v3250_v49 = vpop.f32.mrb[45].mxu0  ;;  %s8935_s19 = smov 112  }
 0x59f   : > { %v7946_v50 = vpop.f32.mrb[46].mxu0 }
 0x5a0   : > { %v3373_v53 = vpack.c.bf16 %v7946_v50, %v7945_v48  ;;  %v3253_v63 = vpop.f32.mrb[47].mxu0 }
 0x5a1   : > { %v3372_v54 = vpack.c.bf16 %v3253_v63, %v3250_v49 }
 0x5a2   : > { %3378 = vrot.lane.b32.xlu0 %v3373_v53, %s8929_s22 }
 0x5a3   : > { %3376 = vrot.lane.b32.xlu1 %v3372_v54, %s8929_s22 }
 0x5a5   : > { %v7949_v59 = vpop.f32.mrb[48].mxu0 }
 0x5a6   : > { %v3266_v60 = vpop.f32.mrb[49].mxu0 }
 0x5a7   : > { %v7950_v52 = vpop.f32.mrb[50].mxu0 }
 0x5a8   : > { %v3386_v61 = vpack.c.bf16 %v7950_v52, %v7949_v59  ;;  %v3269_v0 = vpop.f32.mrb[51].mxu0 }
 0x5a9   : > { %v3385_v2 = vpack.c.bf16 %v3269_v0, %v3266_v60 }
 0x5aa   : > { %3391 = vrot.lane.b32.xlu1 %v3386_v61, %s8933_s27 }
 0x5ad   : > { %v7953_v3 = vpop.f32.mrb[52].mxu0 }
 0x5ae   : > { %3389 = vrot.lane.b32.xlu1 %v3385_v2, %s8933_s27  ;;  %v3282_v4 = vpop.f32.mrb[53].mxu0 }
 0x5af   : > { %v7954_v5 = vpop.f32.mrb[54].mxu0 }
 0x5b0   : > { %v3399_v6 = vpack.c.bf16 %v7954_v5, %v7953_v3  ;;  %v3285_v7 = vpop.f32.mrb[55].mxu0 }
 0x5b1   : > { %v3398_v8 = vpack.c.bf16 %v3285_v7, %v3282_v4 }
 0x5b2   : > { %3404 = vrot.lane.b32.xlu0 %v3399_v6, %s8934_s28 }
 0x5b3   : > { %3402 = vrot.lane.b32.xlu1 %v3398_v8, %s8934_s28 }
 0x5b5   : > { %v7957_v11 = vpop.f32.mrb[56].mxu0 }
 0x5b6   : > { %3456 = vperm.xlu0 %8098, %v3450_v10   ;;  %v3298_v12 = vpop.f32.mrb[57].mxu0 }
 0x5b7   : > { %v7958_v13 = vpop.f32.mrb[58].mxu0 }
 0x5b8   : > { %v3412_v15 = vpack.c.bf16 %v7958_v13, %v7957_v11  ;;  %v3301_v16 = vpop.f32.mrb[59].mxu0 }
 0x5b9   : > { %v3411_v17 = vpack.c.bf16 %v3301_v16, %v3298_v12 }
 0x5ba   : > { %3466 = vperm.xlu0 %8098, %v3452_v14  }
 0x5bb   : > { %3415 = vrot.lane.b32.xlu1 %v3411_v17, %s8935_s19 }
 0x5bd   : > { %v7961_v19 = vpop.f32.mrb[60].mxu0 }
 0x5be   : > { %v3314_v20 = vpop.f32.mrb[61].mxu0 }
 0x5bf   : > { %3417 = vrot.lane.b32.xlu1 %v3412_v15, %s8935_s19  ;;  %v7962_v21 = vpop.f32.mrb[62].mxu0 }
 0x5c0   : > { %v3425_v23 = vpack.c.bf16 %v7962_v21, %v7961_v19  ;;  %v3317_v25 = vpop.f32.mrb[63].mxu0 }
 0x5c1   : > { %v3424_v26 = vpack.c.bf16 %v3317_v25, %v3314_v20  ;;  %v8317_v25 = vld [vmem:[%s11140_s29 + $0x8] sm:$0xff]  }
 0x5c2   : > { %3427 = vst.msk [vmem:[#allocation4 + $0x18] sm:$0xff] %vm2363_vm1, %v3425_v23  ;;  %v8316_v23 = vld [vmem:[%s11140_s29] sm:$0xff]  }
 0x5c3   : > { %3461 = vperm.xlu1 %8099, %v3451_v22   ;;  %3426 = vst.msk [vmem:[#allocation4 + $0x8] sm:$0xff] %vm2363_vm1, %v3424_v26  ;;  %v8318_v26 = vld [vmem:[%s11140_s29 + $0x10] sm:$0xff]  }
 0x5c7   : > { %3471 = vperm.xlu1 %8099, %v3453_v27   ;;  %v8319_v27 = vld [vmem:[%s11140_s29 + $0x18] sm:$0xff]  }
 0x5c9   : > { %v3431_v28 = vld [vmem:[#allocation4 + $0x18] sm:$0xff] }
 0x5ca   : > { %v3429_v30 = vld [vmem:[#allocation4 + $0x8] sm:$0xff]  ;;  %7197 = vmatprep.mubr.msk.bf16.mxu1 %vm2363_vm1, %v3431_v28  ;;  %v8320_v28 = vld [vmem:[%s11140_s29 + $0x20] sm:$0xff]  }
 0x5cb   : > { %7196 = vmatprep.mubr.msk.bf16.mxu0 %vm2363_vm1, %v3429_v30  ;;  %v8321_v30 = vld [vmem:[%s11140_s29 + $0x28] sm:$0xff]  }
 0x5fc   : > { %v3340_v31 = vpop.permute.xlu0 %3339 }
 0x5fd   : > { %3345 = vst.msk [vmem:[#allocation4 + $0x10] sm:$0xff] %vm3343_vm4, %v3340_v31  ;;  %v8322_v31 = vld [vmem:[%s11140_s29 + $0x30] sm:$0xff]  }
 0x600   : > { %v3338_v32 = vpop.permute.xlu0 %3337 }
 0x601   : > { %3344 = vst.msk [vmem:[#allocation4] sm:$0xff] %vm3343_vm4, %v3338_v32  ;;  %v8323_v32 = vld [vmem:[%s11140_s29 + $0x38] sm:$0xff]  }
 0x604   : > { %v3353_v33 = vpop.permute.xlu0 %3352 }
 0x605   : > { %3358 = vst.msk [vmem:[#allocation4 + $0x10] sm:$0xff] %vm3356_vm5, %v3353_v33  ;;  %v3351_v34 = vpop.permute.xlu1 %3350  ;;  %v8324_v33 = vld [vmem:[%s11140_s29 + $0x40] sm:$0xff]  }
 0x606   : > { %3357 = vst.msk [vmem:[#allocation4] sm:$0xff] %vm3356_vm5, %v3351_v34  ;;  %v8325_v34 = vld [vmem:[#allocation10] ss:$8 sps:$4 sm:$0xff]  }
 0x60c   : > { %v3366_v35 = vpop.permute.xlu0 %3365 }
 0x60d   : > { %3371 = vst.msk [vmem:[#allocation4 + $0x10] sm:$0xff] %vm3369_vm6, %v3366_v35  ;;  %v8327_v35 = vld [vmem:[#allocation10 + $0x4] ss:$8 sps:$4 sm:$0xff]  }
 0x610   : > { %v3364_v36 = vpop.permute.xlu0 %3363 }
 0x611   : > { %3370 = vst.msk [vmem:[#allocation4] sm:$0xff] %vm3369_vm6, %v3364_v36  ;;  %v8330_v36 = vld [vmem:[#allocation10 + $0x14] ss:$8 sps:$4 sm:$0xff]  }
 0x614   : > { %v3379_v37 = vpop.permute.xlu0 %3378 }
 0x615   : > { %3384 = vst.msk [vmem:[#allocation4 + $0x10] sm:$0xff] %vm3382_vm7, %v3379_v37  ;;  %v3377_v38 = vpop.permute.xlu1 %3376  ;;  %v8328_v37 = vld [vmem:[#allocation10 + $0x10] ss:$8 sps:$4 sm:$0xff]  }
 0x616   : > { %3383 = vst.msk [vmem:[#allocation4] sm:$0xff] %vm3382_vm7, %v3377_v38  ;;  %v8333_v38 = vld [vmem:[#allocation10 + $0x24] ss:$8 sps:$4 sm:$0xff]  }
 0x61c   : > { %v3392_v39 = vpop.permute.xlu1 %3391 }
 0x61d   : > { %3397 = vst.msk [vmem:[#allocation4 + $0x10] sm:$0xff] %vm3395_vm8, %v3392_v39  ;;  %v8331_v39 = vld [vmem:[#allocation10 + $0x20] ss:$8 sps:$4 sm:$0xff]  }
 0x620   : > { %v3390_v40 = vpop.permute.xlu1 %3389 }
 0x621   : > { %3396 = vst.msk [vmem:[#allocation4] sm:$0xff] %vm3395_vm8, %v3390_v40  ;;  %v8336_v40 = vld [vmem:[#allocation10 + $0x34] ss:$8 sps:$4 sm:$0xff]  }
 0x624   : > { %v3405_v43 = vpop.permute.xlu0 %3404 }
 0x625   : > { %3410 = vst.msk [vmem:[#allocation4 + $0x10] sm:$0xff] %vm3408_vm9, %v3405_v43  ;;  %v3403_v44 = vpop.permute.xlu1 %3402  ;;  %v8339_v43 = vld [vmem:[#allocation10 + $0x44] ss:$8 sps:$4 sm:$0xff]  }
 0x626   : > { %3409 = vst.msk [vmem:[#allocation4] sm:$0xff] %vm3408_vm9, %v3403_v44  ;;  %v8337_v44 = vld [vmem:[#allocation10 + $0x40] ss:$8 sps:$4 sm:$0xff]  }
 0x62d   : > { %v3416_v45 = vpop.permute.xlu1 %3415 }
 0x62e   : > { %3422 = vst.msk [vmem:[#allocation4] sm:$0xff] %vm3421_vm10, %v3416_v45  ;;  %v8342_v45 = vld [vmem:[#allocation10 + $0x54] ss:$8 sps:$4 sm:$0xff]  }
 0x631   : > { %v3418_v46 = vpop.permute.xlu1 %3417 }
 0x632   : > { %3423 = vst.msk [vmem:[#allocation4 + $0x10] sm:$0xff] %vm3421_vm10, %v3418_v46  ;;  %v8340_v46 = vld [vmem:[#allocation10 + $0x50] ss:$8 sps:$4 sm:$0xff]  }
 0x635   : > { %v3428_v41 = vld [vmem:[#allocation4] sm:$0xff]  ;;  %v3457_v47 = vpop.permute.xlu0 %3456 }
 0x636   : > { %3567 = vmatmul.mubr.bf16.vlgmr.msra.gmra.mrb[64].mxu0 %v3428_v41  ;;  %v8345_v41 = vld [vmem:[#allocation10 + $0x64] ss:$8 sps:$4 sm:$0xff]  }
 0x637   : > { %7967 = vmatprep.mubr.msk.bf16.mxu0 %vm8928_vm0, %v8927_v24 }
 0x639   : > { %v3430_v42 = vld [vmem:[#allocation4 + $0x10] sm:$0xff]  ;;  %v3467_v60 = vpop.permute.xlu0 %3466 }
 0x63a   : > { %3575 = vmatmul.mubr.bf16.vlgmr.msra.gmra.mrb[56].mxu1 %v3430_v42  ;;  %v8343_v42 = vld [vmem:[#allocation10 + $0x60] ss:$8 sps:$4 sm:$0xff]  }
 0x63b   : > { %4472 = vmatprep.mubr.bf16.mxu1 %v8926_v1 }
 0x642   : > { %v3462_v48 = vpop.permute.xlu1 %3461 }
 0x646   : > { %v3472_v3 = vpop.permute.xlu1 %3471 }
 0x709   : > { %v3568_v49 = vpop.f32.mrb[64].mxu0 }
 0x70a   : > { %v3569_v50 = vadd.f32 %v3568_v49, %v3457_v47  ;;  %v3570_v53 = vpop.f32.mrb[65].mxu0  ;;  %v8348_v47 = vld [vmem:[#allocation10 + $0x74] ss:$8 sps:$4 sm:$0xff]   ;;  %v8351_v49 = vld [vmem:[#allocation10 + $0x84] ss:$8 sps:$4 sm:$0xff]  }
 0x70b   : > { %v3571_v63 = vpop.f32.mrb[66].mxu0  ;;  %v8354_v53 = vld [vmem:[#allocation10 + $0x94] ss:$8 sps:$4 sm:$0xff]  }
 0x70c   : > { %v3583_v54 = vmul.f32 %v3569_v50, %v9680_v18  ;;  %v3572_v55 = vadd.f32 %v3571_v63, %v3462_v48  ;;  %v3573_v59 = vpop.f32.mrb[67].mxu0  ;;  %v8346_v48 = vld [vmem:[#allocation10 + $0x70] ss:$8 sps:$4 sm:$0xff]  }
 0x70d   : > { %v3576_v51 = vpop.f32.mrb[56].mxu1  ;;  %v8352_v63 = vld [vmem:[#allocation10 + $0x90] ss:$8 sps:$4 sm:$0xff]   ;;  %v8357_v59 = vld [vmem:[#allocation10 + $0xa4] ss:$8 sps:$4 sm:$0xff]  }
 0x70e   : > { %v3587_v52 = vadd.f32 %v3583_v54, %v9682_v62  ;;  %v3584_v61 = vmul.f32 %v3572_v55, %v9680_v18  ;;  %v3577_v0 = vadd.f32 %v3576_v51, %v3467_v60  ;;  %v3578_v2 = vpop.f32.mrb[57].mxu1  ;;  %v8360_v51 = vld [vmem:[#allocation10 + $0xb4] ss:$8 sps:$4 sm:$0xff]  }
 0x70f   : > { %v3579_v4 = vpop.f32.mrb[58].mxu1  ;;  %v8358_v2 = vld [vmem:[#allocation10 + $0xb0] ss:$8 sps:$4 sm:$0xff]  }
 0x710   : > { %v3591_v5 = vmul.f32 %v3587_v52, %v3569_v50  ;;  %v3588_v6 = vadd.f32 %v3584_v61, %v9682_v62  ;;  %v3585_v7 = vmul.f32 %v3577_v0, %v9680_v18  ;;  %v3580_v8 = vadd.f32 %v3579_v4, %v3472_v3  ;;  %v3581_v9 = vpop.f32.mrb[59].mxu1  ;;  %v8349_v50 = vld [vmem:[#allocation10 + $0x80] ss:$8 sps:$4 sm:$0xff]   ;;  %v8363_v3 = vld [vmem:[#allocation10 + $0xc4] ss:$8 sps:$4 sm:$0xff]  }
 0x711   : > { %v8361_v4 = vld [vmem:[#allocation10 + $0xc0] ss:$8 sps:$4 sm:$0xff]  }
 0x712   : > { %v3592_v10 = vmul.f32 %v3588_v6, %v3572_v55  ;;  %v3589_v11 = vadd.f32 %v3585_v7, %v9682_v62  ;;  %v3586_v12 = vmul.f32 %v3580_v8, %v9680_v18  ;;  %v3595_v13 = vadd.f32 %v3591_v5, %v9688_v29  ;;  %v8355_v55 = vld [vmem:[#allocation10 + $0xa0] ss:$8 sps:$4 sm:$0xff]   ;;  %v8366_v6 = vld [vmem:[#allocation10 + $0xd4] ss:$8 sps:$4 sm:$0xff]  }
 0x714   : > { %v3596_v14 = vadd.f32 %v3592_v10, %v9688_v29  ;;  %v3593_v15 = vmul.f32 %v3589_v11, %v3577_v0  ;;  %v3590_v16 = vadd.f32 %v3586_v12, %v9682_v62  ;;  %v8364_v11 = vld [vmem:[#allocation10 + $0xd0] ss:$8 sps:$4 sm:$0xff]  }
 0x716   : > { %v3617_v17 = vpack.c.bf16 %v3596_v14, %v3595_v13  ;;  %v3594_v19 = vmul.f32 %v3590_v16, %v3580_v8  ;;  %v3597_v20 = vadd.f32 %v3593_v15, %v9688_v29  ;;  %v8367_v13 = vld [vmem:[#allocation10 + $0xe0] ss:$8 sps:$4 sm:$0xff]   ;;  %v8369_v14 = vld [vmem:[#allocation10 + $0xe4] ss:$8 sps:$4 sm:$0xff]   ;;  %v8372_v16 = vld [vmem:[#allocation10 + $0xf4] ss:$8 sps:$4 sm:$0xff]  }
 0x718   : > { %v3598_v21 = vadd.f32 %v3594_v19, %v9688_v29  ;;  %7964 = vmatpush3.bf16.msra.mxu0 %v3617_v17 }
 0x719   : > { %7965 = vmatprep.subr.bf16.mxu0 %v8927_v24 }
 0x71a   : > { %v3618_v22 = vpack.c.bf16 %v3598_v21, %v3597_v20  ;;  %v8370_v21 = vld [vmem:[#allocation10 + $0xf0] ss:$8 sps:$4 sm:$0xff]  }
 0x71c   : > { %7966 = vmatpush3.bf16.msra.mxu0 %v3618_v22 }
 0x71d   : > { %4283 = vmatprep.subr.bf16.mxu0 %v8327_v35 }
 0x71f   : > { %7968 = vmatmul.mubr.msk.bf16.vlgmr.msra.gmra.mrb[68].mxu0 %vm3664_vm11, %v8316_v23  ;;  %v8375_v23 = vld [vmem:[#allocation10 + $0x104] ss:$8 sps:$4 sm:$0xff]  }
 0x720   : > { %7971 = vmatprep.mubr.msk.bf16.mxu0 %vm8928_vm0, %v8927_v24  ;;  %4284 = vmatpush1.bf16.msra.mxu0 %v8325_v34 }
 0x721   : > { %4285 = vmatprep.subr.bf16.mxu0 %v8330_v36 }
 0x724   : > { %4286 = vmatpush1.bf16.msra.mxu0 %v8328_v37 }
 0x725   : > { %4287 = vmatprep.subr.bf16.mxu0 %v8333_v38 }
 0x727   : > { %7972 = vmatmul.mubr.msk.bf16.gmra.mrb[72].mxu0 %vm3664_vm11, %v8317_v25 }
 0x728   : > { %7975 = vmatprep.mubr.msk.bf16.mxu0 %vm8928_vm0, %v8927_v24  ;;  %4288 = vmatpush1.bf16.msra.mxu0 %v8331_v39 }
 0x729   : > { %4289 = vmatprep.subr.bf16.mxu0 %v8336_v40  ;;  %v3909_v40 = vld [vmem:[%s11122_s13 + $0x8] sm:$0xff] }
 0x72f   : > { %7976 = vmatmul.mubr.msk.bf16.gmra.mrb[76].mxu0 %vm3664_vm11, %v8318_v26 }
 0x730   : > { %7979 = vmatprep.mubr.msk.bf16.mxu0 %vm8928_vm0, %v8927_v24 }
 0x737   : > { %7980 = vmatmul.mubr.msk.bf16.gmra.mrb[80].mxu0 %vm3664_vm11, %v8319_v27 }
 0x738   : > { %7983 = vmatprep.mubr.msk.bf16.mxu0 %vm8928_vm0, %v8927_v24 }
 0x73f   : > { %7984 = vmatmul.mubr.msk.bf16.gmra.mrb[84].mxu0 %vm3664_vm11, %v8320_v28 }
 0x740   : > { %7987 = vmatprep.mubr.msk.bf16.mxu0 %vm8928_vm0, %v8927_v24 }
 0x747   : > { %7988 = vmatmul.mubr.msk.bf16.gmra.mrb[88].mxu0 %vm3664_vm11, %v8321_v30 }
 0x748   : > { %7991 = vmatprep.mubr.msk.bf16.mxu0 %vm8928_vm0, %v8927_v24 }
 0x74f   : > { %7992 = vmatmul.mubr.msk.bf16.gmra.mrb[92].mxu0 %vm3664_vm11, %v8322_v31 }
 0x750   : > { %7995 = vmatprep.mubr.msk.bf16.mxu0 %vm8928_vm0, %v8927_v24 }
 0x757   : > { %7996 = vmatmul.mubr.msk.bf16.gmra.mrb[96].mxu0 %vm3664_vm11, %v8323_v32 }
 0x758   : > { %7999 = vmatprep.mubr.msk.bf16.mxu0 %vm8928_vm0, %v8927_v24  ;;  %v8334_v24 = vld [vmem:[#allocation10 + $0x30] ss:$8 sps:$4 sm:$0xff]   ;;  %vm4505_vm0 = vmand %vm4503_vm12, %vm4504_vm13 }
 0x759   : > { %4290 = vmatpush1.bf16.msra.mxu0 %v8334_v24 }
 0x75a   : > { %4291 = vmatprep.subr.bf16.mxu0 %v8339_v43 }
 0x75d   : > { %4292 = vmatpush1.bf16.msra.mxu0 %v8337_v44 }
 0x75e   : > { %4293 = vmatprep.subr.bf16.mxu0 %v8342_v45 }
 0x75f   : > { %8000 = vmatmul.mubr.msk.bf16.gmra.mrb[100].mxu0 %vm3664_vm11, %v8324_v33 }
 0x761   : > { %4294 = vmatpush1.bf16.msra.mxu0 %v8340_v46 }
 0x762   : > { %4295 = vmatprep.subr.bf16.mxu0 %v8345_v41 }
 0x765   : > { %4296 = vmatpush1.bf16.msra.mxu0 %v8343_v42 }
 0x766   : > { %4297 = vmatprep.subr.bf16.mxu0 %v8348_v47 }
 0x769   : > { %4298 = vmatpush1.bf16.msra.mxu0 %v8346_v48 }
 0x76a   : > { %4299 = vmatprep.subr.bf16.mxu0 %v8351_v49 }
 0x76d   : > { %4300 = vmatpush1.bf16.msra.mxu0 %v8349_v50  ;;  %v3908_v50 = vld [vmem:[%s11122_s13] sm:$0xff] }
 0x76e   : > { %4301 = vmatprep.subr.bf16.mxu0 %v8354_v53  ;;  %v4885_v53 = vld [vmem:[#allocation9] sm:$0x1] }
 0x771   : > { %4302 = vmatpush1.bf16.msra.mxu0 %v8352_v63 }
 0x772   : > { %4303 = vmatprep.subr.bf16.mxu0 %v8357_v59 }
 0x775   : > { %4304 = vmatpush1.bf16.msra.mxu0 %v8355_v55 }
 0x776   : > { %4305 = vmatprep.subr.bf16.mxu0 %v8360_v51 }
 0x779   : > { %4306 = vmatpush1.bf16.msra.mxu0 %v8358_v2  ;;  %v8378_v2 = vld [vmem:[#allocation10 + $0x114] ss:$8 sps:$4 sm:$0xff]  }
 0x77a   : > { %4307 = vmatprep.subr.bf16.mxu0 %v8363_v3 }
 0x77d   : > { %4308 = vmatpush1.bf16.msra.mxu0 %v8361_v4  ;;  %v8376_v4 = vld [vmem:[#allocation10 + $0x110] ss:$8 sps:$4 sm:$0xff]  }
 0x77e   : > { %4309 = vmatprep.subr.bf16.mxu0 %v8366_v6  ;;  %v8379_v6 = vld [vmem:[#allocation10 + $0x120] ss:$8 sps:$4 sm:$0xff]  }
 0x781   : > { %4310 = vmatpush1.bf16.msra.mxu0 %v8364_v11  ;;  %v8385_v11 = vld [vmem:[#allocation10 + $0x140] ss:$8 sps:$4 sm:$0xff]  }
 0x782   : > { %4311 = vmatprep.subr.bf16.mxu0 %v8369_v14  ;;  %v8393_v14 = vld [vmem:[#allocation10 + $0x164] ss:$8 sps:$4 sm:$0xff]  }
 0x785   : > { %4312 = vmatpush1.bf16.msra.mxu0 %v8367_v13  ;;  %v8388_v13 = vld [vmem:[#allocation10 + $0x150] ss:$8 sps:$4 sm:$0xff]  }
 0x786   : > { %4313 = vmatprep.subr.bf16.mxu0 %v8372_v16  ;;  %v8396_v16 = vld [vmem:[#allocation10 + $0x174] ss:$8 sps:$4 sm:$0xff]  }
 0x789   : > { %4314 = vmatpush1.bf16.msra.mxu0 %v8370_v21  ;;  %v8397_v21 = vld [vmem:[#allocation10 + $0x180] ss:$8 sps:$4 sm:$0xff]  }
 0x78a   : > { %4326 = vmatprep.subr.bf16.mxu0 %v8375_v23 }
 0x7f2   : > { %v3726_v54 = vpop.f32.mrb[68].mxu0 }
 0x7f3   : > { %v7969_v60 = vpop.f32.mrb[69].mxu0 }
 0x7f4   : > { %v3729_v52 = vpop.f32.mrb[70].mxu0 }
 0x7f5   : > { %v3797_v61 = vpack.c.bf16 %v3729_v52, %v3726_v54  ;;  %v7970_v0 = vpop.f32.mrb[71].mxu0 }
 0x7f7   : > { %3798 = vst.msk [vmem:[#allocation5] sm:$0xff] %vm2497_vm2, %v3797_v61  ;;  %v8373_v61 = vld [vmem:[#allocation10 + $0x100] ss:$8 sps:$4 sm:$0xff]  }
 0x7fa   : > { %v3734_v5 = vpop.f32.mrb[72].mxu0 }
 0x7fb   : > { %v7973_v7 = vpop.f32.mrb[73].mxu0 }
 0x7fc   : > { %v3737_v8 = vpop.f32.mrb[74].mxu0  ;;  %v8384_v7 = vld [vmem:[#allocation10 + $0x134] ss:$8 sps:$4 sm:$0xff]  }
 0x7fd   : > { %v3799_v9 = vpack.c.bf16 %v3737_v8, %v3734_v5  ;;  %v7974_v10 = vpop.f32.mrb[75].mxu0  ;;  %v8381_v5 = vld [vmem:[#allocation10 + $0x124] ss:$8 sps:$4 sm:$0xff]  }
 0x7fe   : > { %v8387_v10 = vld [vmem:[#allocation10 + $0x144] ss:$8 sps:$4 sm:$0xff]  }
 0x7ff   : > { %3801 = vrot.lane.b32.xlu1 %v3799_v9, %s8929_s22  ;;  %v8382_v9 = vld [vmem:[#allocation10 + $0x130] ss:$8 sps:$4 sm:$0xff]  }
 0x802   : > { %v3742_v12 = vpop.f32.mrb[76].mxu0 }
 0x803   : > { %v7977_v15 = vpop.f32.mrb[77].mxu0 }
 0x804   : > { %v3745_v17 = vpop.f32.mrb[78].mxu0  ;;  %v8391_v15 = vld [vmem:[#allocation10 + $0x160] ss:$8 sps:$4 sm:$0xff]  }
 0x805   : > { %v3805_v19 = vpack.c.bf16 %v3745_v17, %v3742_v12  ;;  %v7978_v20 = vpop.f32.mrb[79].mxu0  ;;  %v8390_v12 = vld [vmem:[#allocation10 + $0x154] ss:$8 sps:$4 sm:$0xff]  }
 0x806   : > { %v8399_v20 = vld [vmem:[#allocation10 + $0x184] ss:$8 sps:$4 sm:$0xff]  }
 0x807   : > { %3806 = vst.msk [vmem:[#allocation5 + $0x8] sm:$0xff] %vm2497_vm2, %v3805_v19  ;;  %v8394_v19 = vld [vmem:[#allocation10 + $0x170] ss:$8 sps:$4 sm:$0xff]  }
 0x80a   : > { %v3750_v22 = vpop.f32.mrb[80].mxu0 }
 0x80b   : > { %v7981_v25 = vpop.f32.mrb[81].mxu0 }
 0x80c   : > { %v3753_v26 = vpop.f32.mrb[82].mxu0  ;;  %v8400_v25 = vld [vmem:[#allocation10 + $0x190] ss:$8 sps:$4 sm:$0xff]  }
 0x80d   : > { %v3807_v27 = vpack.c.bf16 %v3753_v26, %v3750_v22  ;;  %v7982_v28 = vpop.f32.mrb[83].mxu0  ;;  %v8402_v22 = vld [vmem:[#allocation10 + $0x194] ss:$8 sps:$4 sm:$0xff]   ;;  %v8405_v26 = vld [vmem:[#allocation10 + $0x1a4] ss:$8 sps:$4 sm:$0xff]  }
 0x80e   : > { %v8408_v28 = vld [vmem:[#allocation10 + $0x1b4] ss:$8 sps:$4 sm:$0xff]  }
 0x80f   : > { %3809 = vrot.lane.b32.xlu0 %v3807_v27, %s8929_s22  ;;  %v8403_v27 = vld [vmem:[#allocation10 + $0x1a0] ss:$8 sps:$4 sm:$0xff]  }
 0x812   : > { %v3758_v30 = vpop.f32.mrb[84].mxu0 }
 0x813   : > { %v7985_v31 = vpop.f32.mrb[85].mxu0 }
 0x814   : > { %v3761_v32 = vpop.f32.mrb[86].mxu0  ;;  %v8411_v31 = vld [vmem:[#allocation10 + $0x1c4] ss:$8 sps:$4 sm:$0xff]  }
 0x815   : > { %v3813_v33 = vpack.c.bf16 %v3761_v32, %v3758_v30  ;;  %v7986_v34 = vpop.f32.mrb[87].mxu0  ;;  %v8406_v30 = vld [vmem:[#allocation10 + $0x1b0] ss:$8 sps:$4 sm:$0xff]   ;;  %v8409_v32 = vld [vmem:[#allocation10 + $0x1c0] ss:$8 sps:$4 sm:$0xff]  }
 0x816   : > { %v8412_v34 = vld [vmem:[#allocation10 + $0x1d0] ss:$8 sps:$4 sm:$0xff]  }
 0x817   : > { %3814 = vst.msk [vmem:[#allocation5 + $0x10] sm:$0xff] %vm2497_vm2, %v3813_v33  ;;  %v8414_v33 = vld [vmem:[#allocation10 + $0x1d4] ss:$8 sps:$4 sm:$0xff]  }
 0x81a   : > { %v3766_v35 = vpop.f32.mrb[88].mxu0 }
 0x81b   : > { %v7989_v36 = vpop.f32.mrb[89].mxu0 }
 0x81c   : > { %v3769_v37 = vpop.f32.mrb[90].mxu0  ;;  %v8415_v36 = vld [vmem:[#allocation10 + $0x1e0] ss:$8 sps:$4 sm:$0xff]  }
 0x81d   : > { %v3815_v38 = vpack.c.bf16 %v3769_v37, %v3766_v35  ;;  %v7990_v39 = vpop.f32.mrb[91].mxu0  ;;  %v8417_v35 = vld [vmem:[#allocation10 + $0x1e4] ss:$8 sps:$4 sm:$0xff]   ;;  %v8420_v37 = vld [vmem:[#allocation10 + $0x1f4] ss:$8 sps:$4 sm:$0xff]  }
 0x81e   : > { %v8423_v39 = vld [vmem:[#allocation10 + $0x204] ss:$8 sps:$4 sm:$0xff]  }
 0x81f   : > { %3817 = vrot.lane.b32.xlu1 %v3815_v38, %s8929_s22  ;;  %v8418_v38 = vld [vmem:[#allocation10 + $0x1f0] ss:$8 sps:$4 sm:$0xff]  }
 0x822   : > { %v3774_v24 = vpop.f32.mrb[92].mxu0 }
 0x823   : > { %3917 = vperm.xlu1 %8099, %v3909_v40   ;;  %v7993_v43 = vpop.f32.mrb[93].mxu0  ;;  %v8421_v40 = vld [vmem:[#allocation10 + $0x200] ss:$8 sps:$4 sm:$0xff]  }
 0x824   : > { %v3777_v44 = vpop.f32.mrb[94].mxu0 }
 0x825   : > { %v3821_v45 = vpack.c.bf16 %v3777_v44, %v3774_v24  ;;  %v7994_v46 = vpop.f32.mrb[95].mxu0  ;;  %v8426_v24 = vld [vmem:[#allocation10 + $0x214] ss:$8 sps:$4 sm:$0xff]   ;;  %v8424_v44 = vld [vmem:[#allocation10 + $0x210] ss:$8 sps:$4 sm:$0xff]  }
 0x826   : > { %v8427_v46 = vld [vmem:[#allocation10 + $0x220] ss:$8 sps:$4 sm:$0xff]  }
 0x827   : > { %3822 = vst.msk [vmem:[#allocation5 + $0x18] sm:$0xff] %vm2497_vm2, %v3821_v45  ;;  %v8429_v45 = vld [vmem:[#allocation10 + $0x224] ss:$8 sps:$4 sm:$0xff]  }
 0x82a   : > { %v3782_v41 = vpop.f32.mrb[96].mxu0 }
 0x82b   : > { %v7997_v42 = vpop.f32.mrb[97].mxu0 }
 0x82c   : > { %v3785_v47 = vpop.f32.mrb[98].mxu0  ;;  %v8430_v42 = vld [vmem:[#allocation10 + $0x230] ss:$8 sps:$4 sm:$0xff]  }
 0x82d   : > { %v3823_v48 = vpack.c.bf16 %v3785_v47, %v3782_v41  ;;  %v7998_v49 = vpop.f32.mrb[99].mxu0  ;;  %v8432_v41 = vld [vmem:[#allocation10 + $0x234] ss:$8 sps:$4 sm:$0xff]  }
 0x82e   : > { %v8439_v49 = vld [vmem:[%s11124_s15 + $0x14] ss:$8 sps:$4 sm:$0xff]  }
 0x82f   : > { %3825 = vrot.lane.b32.xlu0 %v3823_v48, %s8929_s22  ;;  %v8434_v48 = vld [vmem:[%s11124_s15] ss:$8 sps:$4 sm:$0xff]  }
 0x832   : > { %v3790_v63 = vpop.f32.mrb[100].mxu0 }
 0x833   : > { %3912 = vperm.xlu0 %8098, %v3908_v50   ;;  %v8001_v54 = vpop.f32.mrb[101].mxu0  ;;  %v8437_v50 = vld [vmem:[%s11124_s15 + $0x10] ss:$8 sps:$4 sm:$0xff]  }
 0x834   : > { %v3793_v55 = vpop.f32.mrb[102].mxu0  ;;  %v8451_v54 = vld [vmem:[%s11124_s15 + $0x34] ss:$8 sps:$4 sm:$0xff]  }
 0x835   : > { %v3829_v59 = vpack.c.bf16 %v3793_v55, %v3790_v63  ;;  %v8002_v60 = vpop.f32.mrb[103].mxu0  ;;  %v8443_v63 = vld [vmem:[%s11124_s15 + $0x20] ss:$8 sps:$4 sm:$0xff]   ;;  %v8449_v55 = vld [vmem:[%s11124_s15 + $0x30] ss:$8 sps:$4 sm:$0xff]  }
 0x836   : > { %v8455_v60 = vld [vmem:[%s11124_s15 + $0x40] ss:$8 sps:$4 sm:$0xff]  }
 0x837   : > { %4888 = vperm.xlu0 %8098, %v4885_v53   ;;  %3830 = vst.msk [vmem:[#allocation5 + $0x20] sm:$0xff] %vm2497_vm2, %v3829_v59  ;;  %v8445_v53 = vld [vmem:[%s11124_s15 + $0x24] ss:$8 sps:$4 sm:$0xff]  }
 0x838   : > { %v8457_v59 = vld [vmem:[%s11124_s15 + $0x44] ss:$8 sps:$4 sm:$0xff]  }
 0x83e   : > { %v3835_v47 = vld [vmem:[#allocation5 + $0x20] sm:$0xff] }
 0x871   : > { %v3802_v51 = vpop.permute.xlu1 %3801 }
 0x872   : > { %3804 = vst.msk [vmem:[#allocation5] sm:$0xff] %vm2504_vm3, %v3802_v51  ;;  %v8463_v51 = vld [vmem:[%s11124_s15 + $0x54] ss:$8 sps:$4 sm:$0xff]  }
 0x879   : > { %v3831_v3 = vld [vmem:[#allocation5] sm:$0xff] }
 0x881   : > { %v3810_v52 = vpop.permute.xlu0 %3809 }
 0x882   : > { %3812 = vst.msk [vmem:[#allocation5 + $0x8] sm:$0xff] %vm2504_vm3, %v3810_v52  ;;  %v8461_v52 = vld [vmem:[%s11124_s15 + $0x50] ss:$8 sps:$4 sm:$0xff]  }
 0x889   : > { %v3832_v0 = vld [vmem:[#allocation5 + $0x8] sm:$0xff] }
 0x88a   : > { %4315 = vmatprep.mubr.bf16.mxu0 %v3832_v0  ;;  %v8467_v0 = vld [vmem:[%s11124_s15 + $0x60] ss:$8 sps:$4 sm:$0xff]  }
 0x88b   : > { %4316 = vmatmul.mubr.bf16.vlgmr.msra.gmra.mrb[104].mxu0 %v3831_v3  ;;  %v8473_v3 = vld [vmem:[%s11124_s15 + $0x70] ss:$8 sps:$4 sm:$0xff]  }
 0x88c   : > { %4327 = vmatpush1.bf16.msra.mxu0 %v8373_v61  ;;  %v8469_v61 = vld [vmem:[%s11124_s15 + $0x64] ss:$8 sps:$4 sm:$0xff]  }
 0x88d   : > { %4328 = vmatprep.subr.bf16.mxu0 %v8378_v2  ;;  %v8475_v2 = vld [vmem:[%s11124_s15 + $0x74] ss:$8 sps:$4 sm:$0xff]  }
 0x890   : > { %4329 = vmatpush1.bf16.msra.mxu0 %v8376_v4  ;;  %v8481_v4 = vld [vmem:[%s11124_s15 + $0x84] ss:$8 sps:$4 sm:$0xff]  }
 0x891   : > { %4330 = vmatprep.subr.bf16.mxu0 %v8381_v5  ;;  %v3818_v8 = vpop.permute.xlu1 %3817  ;;  %v8479_v5 = vld [vmem:[%s11124_s15 + $0x80] ss:$8 sps:$4 sm:$0xff]  }
 0x892   : > { %3820 = vst.msk [vmem:[#allocation5 + $0x10] sm:$0xff] %vm2504_vm3, %v3818_v8 }
 0x894   : > { %4331 = vmatpush1.bf16.msra.mxu0 %v8379_v6  ;;  %v8487_v6 = vld [vmem:[%s11124_s15 + $0x94] ss:$8 sps:$4 sm:$0xff]  }
 0x895   : > { %4332 = vmatprep.subr.bf16.mxu0 %v8384_v7  ;;  %v8485_v7 = vld [vmem:[%s11124_s15 + $0x90] ss:$8 sps:$4 sm:$0xff]  }
 0x898   : > { %4333 = vmatpush1.bf16.msra.mxu0 %v8382_v9 }
 0x899   : > { %4334 = vmatprep.subr.bf16.mxu0 %v8387_v10  ;;  %v3833_v43 = vld [vmem:[#allocation5 + $0x10] sm:$0xff] }
 0x89c   : > { %4335 = vmatpush1.bf16.msra.mxu0 %v8385_v11 }
 0x89d   : > { %4336 = vmatprep.subr.bf16.mxu0 %v8390_v12 }
 0x8a0   : > { %4337 = vmatpush1.bf16.msra.mxu0 %v8388_v13 }
 0x8a1   : > { %4338 = vmatprep.subr.bf16.mxu0 %v8393_v14  ;;  %v3826_v17 = vpop.permute.xlu0 %3825 }
 0x8a2   : > { %3828 = vst.msk [vmem:[#allocation5 + $0x18] sm:$0xff] %vm2504_vm3, %v3826_v17  ;;  %v3918_v12 = vpop.permute.xlu1 %3917  ;;  %vm6873_vm3 = vcmp.lt.s32.totalorder %v559_v56, 256 }
 0x8a4   : > { %4339 = vmatpush1.bf16.msra.mxu0 %v8391_v15 }
 0x8a5   : > { %4340 = vmatprep.subr.bf16.mxu0 %v8396_v16 }
 0x8a8   : > { %4341 = vmatpush1.bf16.msra.mxu0 %v8394_v19 }
 0x8a9   : > { %4342 = vmatprep.subr.bf16.mxu0 %v8399_v20  ;;  %v3834_v23 = vld [vmem:[#allocation5 + $0x18] sm:$0xff] }
 0x8aa   : > { %4358 = vmatprep.mubr.bf16.mxu0 %v3834_v23 }
 0x8ac   : > { %4343 = vmatpush1.bf16.msra.mxu0 %v8397_v21 }
 0x8ad   : > { %4344 = vmatprep.subr.bf16.mxu0 %v8402_v22 }
 0x8b0   : > { %4345 = vmatpush1.bf16.msra.mxu0 %v8400_v25 }
 0x8b1   : > { %4346 = vmatprep.subr.bf16.mxu0 %v8405_v26 }
 0x8b2   : > { %v3913_v8 = vpop.permute.xlu0 %3912 }
 0x8b4   : > { %4347 = vmatpush1.bf16.msra.mxu0 %v8403_v27 }
 0x8b5   : > { %4348 = vmatprep.subr.bf16.mxu0 %v8408_v28 }
 0x8b8   : > { %4349 = vmatpush1.bf16.msra.mxu0 %v8406_v30 }
 0x8b9   : > { %4350 = vmatprep.subr.bf16.mxu0 %v8411_v31 }
 0x8bc   : > { %4351 = vmatpush1.bf16.msra.mxu0 %v8409_v32 }
 0x8bd   : > { %4352 = vmatprep.subr.bf16.mxu0 %v8414_v33 }
 0x8c0   : > { %4353 = vmatpush1.bf16.msra.mxu0 %v8412_v34 }
 0x8c1   : > { %4354 = vmatprep.subr.bf16.mxu0 %v8417_v35 }
 0x8c4   : > { %4355 = vmatpush1.bf16.msra.mxu0 %v8415_v36 }
 0x8c5   : > { %4356 = vmatprep.subr.bf16.mxu0 %v8420_v37 }
 0x8c8   : > { %4357 = vmatpush1.bf16.msra.mxu0 %v8418_v38 }
 0x8c9   : > { %4369 = vmatprep.subr.bf16.mxu0 %v8423_v39  ;;  %v8442_v39 = vld [vmem:[%s11124_s15 + $0x304] ss:$8 sps:$4 sm:$0xff]  }
 0x8cb   : > { %4359 = vmatmul.mubr.bf16.vlgmr.msra.gmra.mrb[104].mxu0 %v3833_v43  ;;  %v8448_v43 = vld [vmem:[%s11124_s15 + $0x314] ss:$8 sps:$4 sm:$0xff]  }
 0x8cc   : > { %4370 = vmatpush1.bf16.msra.mxu0 %v8421_v40  ;;  %4401 = vmatprep.mubr.bf16.mxu0 %v8926_v1  ;;  %v8436_v1 = vld [vmem:[%s11124_s15 + $0x4] ss:$8 sps:$4 sm:$0xff]  }
 0x8cd   : > { %4371 = vmatprep.subr.bf16.mxu0 %v8426_v24  ;;  %v8433_v40 = vld [vmem:[%s11123_s14] sm:$0x1f]  }
 0x8ce   : > { %v8440_v24 = vld [vmem:[%s11124_s15 + $0x300] ss:$8 sps:$4 sm:$0xff]  }
 0x8d0   : > { %4372 = vmatpush1.bf16.msra.mxu0 %v8424_v44  ;;  %v8446_v44 = vld [vmem:[%s11124_s15 + $0x310] ss:$8 sps:$4 sm:$0xff]  }
 0x8d1   : > { %4373 = vmatprep.subr.bf16.mxu0 %v8429_v45  ;;  %v8454_v45 = vld [vmem:[%s11124_s15 + $0x324] ss:$8 sps:$4 sm:$0xff]  }
 0x8d4   : > { %4374 = vmatpush1.bf16.msra.mxu0 %v8427_v46  ;;  %v8452_v46 = vld [vmem:[%s11124_s15 + $0x320] ss:$8 sps:$4 sm:$0xff]  }
 0x8d5   : > { %4375 = vmatprep.subr.bf16.mxu0 %v8432_v41  ;;  %v8460_v41 = vld [vmem:[%s11124_s15 + $0x334] ss:$8 sps:$4 sm:$0xff]  }
 0x8d8   : > { %4376 = vmatpush1.bf16.msra.mxu0 %v8430_v42  ;;  %v8458_v42 = vld [vmem:[%s11124_s15 + $0x330] ss:$8 sps:$4 sm:$0xff]  }
 0x8d9   : > { %6476 = vmatprep.subr.bf16.mxu0 %v8436_v1  ;;  %v8472_v1 = vld [vmem:[%s11124_s15 + $0x354] ss:$8 sps:$4 sm:$0xff]  }
 0x8db   : > { %7288 = vmatmul.mubr.msk.bf16.vlgmr.msra.gmra.mrb[104].mxu0 %vm2497_vm2, %v3835_v47  ;;  %v8466_v47 = vld [vmem:[%s11124_s15 + $0x344] ss:$8 sps:$4 sm:$0xff]  }
 0x8dc   : > { %6477 = vmatpush1.bf16.msra.mxu0 %v8434_v48  ;;  %v8464_v48 = vld [vmem:[%s11124_s15 + $0x340] ss:$8 sps:$4 sm:$0xff]  }
 0x8dd   : > { %6478 = vmatprep.subr.bf16.mxu0 %v8439_v49  ;;  %v8470_v49 = vld [vmem:[%s11124_s15 + $0x350] ss:$8 sps:$4 sm:$0xff]  }
 0x8e0   : > { %6479 = vmatpush1.bf16.msra.mxu0 %v8437_v50  ;;  %v8478_v50 = vld [vmem:[%s11124_s15 + $0x364] ss:$8 sps:$4 sm:$0xff]  }
 0x8e1   : > { %6480 = vmatprep.subr.bf16.mxu0 %v8445_v53  ;;  %v8476_v53 = vld [vmem:[%s11124_s15 + $0x360] ss:$8 sps:$4 sm:$0xff]  }
 0x8e4   : > { %6481 = vmatpush1.bf16.msra.mxu0 %v8443_v63  ;;  %v8484_v63 = vld [vmem:[%s11124_s15 + $0x374] ss:$8 sps:$4 sm:$0xff]  }
 0x8e5   : > { %6482 = vmatprep.subr.bf16.mxu0 %v8451_v54  ;;  %v8482_v54 = vld [vmem:[%s11124_s15 + $0x370] ss:$8 sps:$4 sm:$0xff]  }
 0x8e8   : > { %6483 = vmatpush1.bf16.msra.mxu0 %v8449_v55  ;;  %v8490_v55 = vld [vmem:[%s11124_s15 + $0x384] ss:$8 sps:$4 sm:$0xff]  }
 0x8e9   : > { %6484 = vmatprep.subr.bf16.mxu0 %v8457_v59  ;;  %v8488_v59 = vld [vmem:[%s11124_s15 + $0x380] ss:$8 sps:$4 sm:$0xff]  }
 0x8ec   : > { %6485 = vmatpush1.bf16.msra.mxu0 %v8455_v60  ;;  %v8493_v60 = vld [vmem:[%s11124_s15 + $0xa4] ss:$8 sps:$4 sm:$0xff]  }
 0x8ed   : > { %6486 = vmatprep.subr.bf16.mxu0 %v8463_v51  ;;  %v8496_v51 = vld [vmem:[%s11124_s15 + $0x394] ss:$8 sps:$4 sm:$0xff]  }
 0x8f0   : > { %6487 = vmatpush1.bf16.msra.mxu0 %v8461_v52  ;;  %v8491_v52 = vld [vmem:[%s11124_s15 + $0xa0] ss:$8 sps:$4 sm:$0xff]  }
 0x8f1   : > { %6488 = vmatprep.subr.bf16.mxu0 %v8469_v61  ;;  %v8494_v61 = vld [vmem:[%s11124_s15 + $0x390] ss:$8 sps:$4 sm:$0xff]  }
 0x8f4   : > { %6489 = vmatpush1.bf16.msra.mxu0 %v8467_v0  ;;  %v8497_v0 = vld [vmem:[%s11124_s15 + $0xb0] ss:$8 sps:$4 sm:$0xff]  }
 0x8f5   : > { %6490 = vmatprep.subr.bf16.mxu0 %v8475_v2  ;;  %v8499_v2 = vld [vmem:[%s11124_s15 + $0xb4] ss:$8 sps:$4 sm:$0xff]  }
 0x8f8   : > { %6491 = vmatpush1.bf16.msra.mxu0 %v8473_v3  ;;  %v8500_v3 = vld [vmem:[%s11124_s15 + $0x3a0] ss:$8 sps:$4 sm:$0xff]  }
 0x8f9   : > { %6492 = vmatprep.subr.bf16.mxu0 %v8481_v4  ;;  %v8502_v4 = vld [vmem:[%s11124_s15 + $0x3a4] ss:$8 sps:$4 sm:$0xff]  }
 0x8fc   : > { %6493 = vmatpush1.bf16.msra.mxu0 %v8479_v5  ;;  %v8503_v5 = vld [vmem:[%s11124_s15 + $0xc0] ss:$8 sps:$4 sm:$0xff]  }
 0x8fd   : > { %6494 = vmatprep.subr.bf16.mxu0 %v8487_v6  ;;  %v8505_v6 = vld [vmem:[%s11124_s15 + $0xc4] ss:$8 sps:$4 sm:$0xff]  }
 0x900   : > { %6495 = vmatpush1.bf16.msra.mxu0 %v8485_v7  ;;  %v8506_v7 = vld [vmem:[%s11124_s15 + $0x3b0] ss:$8 sps:$4 sm:$0xff]  }
 0x901   : > { %6496 = vmatprep.subr.bf16.mxu0 %v8493_v60  ;;  %v4554_v60 = vld [vmem:[#allocation6 + $0xa] sm:$0x3] }
 0x904   : > { %6497 = vmatpush1.bf16.msra.mxu0 %v8491_v52 }
 0x905   : > { %6498 = vmatprep.subr.bf16.mxu0 %v8499_v2 }
 0x908   : > { %6499 = vmatpush1.bf16.msra.mxu0 %v8497_v0 }
 0x909   : > { %6500 = vmatprep.subr.bf16.mxu0 %v8505_v6 }
 0x90c   : > { %6501 = vmatpush1.bf16.msra.mxu0 %v8503_v5 }
 0x9ae   : > { %v4403_v9 = vpop.f32.mrb[104].mxu0 }
 0x9af   : > { %v8021_v10 = vadd.f32 %v4403_v9, %v3913_v8  ;;  %v4405_v11 = vpop.f32.mrb[105].mxu0  ;;  %v8511_v9 = vld [vmem:[%s11124_s15 + $0xd4] ss:$8 sps:$4 sm:$0xff]  }
 0x9b0   : > { %v8022_v13 = vadd.f32 %v4405_v11, %v3913_v8  ;;  %v4407_v14 = vpop.f32.mrb[106].mxu0  ;;  %v8508_v8 = vld [vmem:[%s11124_s15 + $0x3b4] ss:$8 sps:$4 sm:$0xff]   ;;  %v8509_v11 = vld [vmem:[%s11124_s15 + $0xd0] ss:$8 sps:$4 sm:$0xff]   ;;  %6502 = vmatprep.subr.bf16.mxu0 %v8511_v9 }
 0x9b1   : > { %v4412_v15 = vmul.f32 %v8021_v10, %v9680_v18  ;;  %v8023_v16 = vadd.f32 %v4407_v14, %v3918_v12  ;;  %v4409_v17 = vpop.f32.mrb[107].mxu0  ;;  %v8520_v14 = vld [vmem:[%s11124_s15 + $0x3d4] ss:$8 sps:$4 sm:$0xff]   ;;  %6503 = vmatpush1.bf16.msra.mxu0 %v8509_v11 }
 0x9b2   : > { %v4413_v19 = vmul.f32 %v8022_v13, %v9680_v18  ;;  %v8024_v20 = vadd.f32 %v4409_v17, %v3918_v12  ;;  %v8512_v12 = vld [vmem:[%s11124_s15 + $0x3c0] ss:$8 sps:$4 sm:$0xff]   ;;  %v8523_v17 = vld [vmem:[%s11124_s15 + $0xf4] ss:$8 sps:$4 sm:$0xff]  }
 0x9b3   : > { %v4416_v21 = vadd.f32 %v4412_v15, %v9682_v62  ;;  %v4414_v22 = vmul.f32 %v8023_v16, %v9680_v18  ;;  %v8515_v15 = vld [vmem:[%s11124_s15 + $0xe0] ss:$8 sps:$4 sm:$0xff]  }
 0x9b4   : > { %v4417_v23 = vadd.f32 %v4413_v19, %v9682_v62  ;;  %v4415_v25 = vmul.f32 %v8024_v20, %v9680_v18  ;;  %v8526_v19 = vld [vmem:[%s11124_s15 + $0x3e4] ss:$8 sps:$4 sm:$0xff]  }
 0x9b5   : > { %v4420_v26 = vmul.f32 %v8021_v10, %v4416_v21  ;;  %v4418_v27 = vadd.f32 %v4414_v22, %v9682_v62  ;;  %v8514_v10 = vld [vmem:[%s11124_s15 + $0x3c4] ss:$8 sps:$4 sm:$0xff]   ;;  %v8524_v21 = vld [vmem:[%s11124_s15 + $0x3e0] ss:$8 sps:$4 sm:$0xff]  }
 0x9b6   : > { %v4421_v28 = vmul.f32 %v8022_v13, %v4417_v23  ;;  %v4419_v30 = vadd.f32 %v4415_v25, %v9682_v62  ;;  %v8517_v13 = vld [vmem:[%s11124_s15 + $0xe4] ss:$8 sps:$4 sm:$0xff]   ;;  %v8533_v23 = vld [vmem:[%s11124_s15 + $0x3f4] ss:$8 sps:$4 sm:$0xff]   ;;  %v8531_v25 = vld [vmem:[%s11124_s15 + $0x3f0] ss:$8 sps:$4 sm:$0xff]  }
 0x9b7   : > { %v4422_v31 = vmul.f32 %v8023_v16, %v4418_v27  ;;  %v4424_v33 = vadd.f32 %v4420_v26, %v9688_v29  ;;  %6504 = vmatprep.subr.bf16.mxu0 %v8517_v13  ;;  %v8518_v16 = vld [vmem:[%s11124_s15 + $0x3d0] ss:$8 sps:$4 sm:$0xff]   ;;  %v8530_v22 = vld [vmem:[%s11124_s15 + $0x104] ss:$8 sps:$4 sm:$0xff]   ;;  %v8936_v27 = vmov 1966171168  }
 0x9b8   : > { %v4423_v32 = vmul.f32 %v8024_v20, %v4419_v30  ;;  %v4425_v35 = vadd.f32 %v4421_v28, %v9688_v29  ;;  %6505 = vmatpush1.bf16.msra.mxu0 %v8515_v15  ;;  %v8521_v20 = vld [vmem:[%s11124_s15 + $0xf0] ss:$8 sps:$4 sm:$0xff]   ;;  %v8539_v26 = vld [vmem:[%s11124_s15 + $0x404] ss:$8 sps:$4 sm:$0xff]   ;;  %v4489_v28 = vunpack.c.l.s4 %v8936_v27 }
 0x9b9   : > { %v4426_v34 = vadd.f32 %v4422_v31, %v9688_v29  ;;  %6506 = vmatprep.subr.bf16.mxu0 %v8523_v17 }
 0x9ba   : > { %v4427_v36 = vadd.f32 %v4423_v32, %v9688_v29  ;;  %v4490_v30 = vunpack.c.0.s8 %v4489_v28  ;;  %v8537_v28 = vld [vmem:[%s11124_s15 + $0x400] ss:$8 sps:$4 sm:$0xff]  }
 0x9bb   : > { %v4430_v37 = vpack.c.bf16 %v4426_v34, %v4424_v33 }
 0x9bc   : > { %v4431_v38 = vpack.c.bf16 %v4427_v36, %v4425_v35  ;;  %6507 = vmatpush1.bf16.msra.mxu0 %v8521_v20  ;;  %v10326_v31 = vsub.s32 %v4490_v30, %v9248_v57  ;;  %v8536_v20 = vld [vmem:[%s11124_s15 + $0x114] ss:$8 sps:$4 sm:$0xff]  }
 0x9bd   : > { %6517 = vmatprep.subr.bf16.mxu0 %v8530_v22 }
 0x9be   : > { %4440 = vmatprep.subr.bf16.mxu1 %v4431_v38 }
 0x9bf   : > { %4441 = vmatpush1.bf16.msra.mxu1 %v4430_v37 }
 0x9c0   : > { %6599 = vmatprep.subr.bf16.mxu1 %v8442_v39  ;;  %v8546_v39 = vld [vmem:[%s11124_s15 + $0x130] ss:$8 sps:$4 sm:$0xff]  }
 0x9c2   : > { %7290 = vmatmul.mubr.msk.bf16.vlgmr.msra.gmra.mrb[60].mxu1 %vm2363_vm1, %v8433_v40  ;;  %vm4508_vm1 = vmand %vm4506_vm14, %vm4507_vm15  ;;  %v4510_v40 = vld [vmem:[#allocation6] sm:$0x3] }
 0x9c3   : > { %6600 = vmatpush1.bf16.msra.mxu1 %v8440_v24  ;;  %vm10329_vm2 = vmor %vm4508_vm1, %vm4505_vm0 }
 0x9c4   : > { %6601 = vmatprep.subr.bf16.mxu1 %v8448_v43 }
 0x9c7   : > { %6602 = vmatpush1.bf16.msra.mxu1 %v8446_v44 }
 0x9c8   : > { %6603 = vmatprep.subr.bf16.mxu1 %v8454_v45  ;;  %v4519_v45 = vld [vmem:[#allocation6 + $0x2] sm:$0x3] }
 0x9cb   : > { %6604 = vmatpush1.bf16.msra.mxu1 %v8452_v46  ;;  %v4531_v46 = vld [vmem:[#allocation6 + $0x4] sm:$0x3] }
 0x9cc   : > { %6605 = vmatprep.subr.bf16.mxu1 %v8460_v41  ;;  %v4545_v41 = vld [vmem:[#allocation6 + $0x8] sm:$0x3] }
 0x9cf   : > { %6606 = vmatpush1.bf16.msra.mxu1 %v8458_v42 }
 0x9d0   : > { %6607 = vmatprep.subr.bf16.mxu1 %v8466_v47 }
 0x9d3   : > { %6608 = vmatpush1.bf16.msra.mxu1 %v8464_v48 }
 0x9d4   : > { %6609 = vmatprep.subr.bf16.mxu1 %v8472_v1 }
 0x9d7   : > { %6610 = vmatpush1.bf16.msra.mxu1 %v8470_v49  ;;  %v4591_v49 = vld [vmem:[#allocation6 + $0x10] sm:$0x3] }
 0x9d8   : > { %6611 = vmatprep.subr.bf16.mxu1 %v8478_v50  ;;  %v4540_v50 = vld [vmem:[#allocation6 + $0x6] sm:$0x3] }
 0x9db   : > { %6612 = vmatpush1.bf16.msra.mxu1 %v8476_v53 }
 0x9dc   : > { %6613 = vmatprep.subr.bf16.mxu1 %v8484_v63 }
 0x9df   : > { %6614 = vmatpush1.bf16.msra.mxu1 %v8482_v54 }
 0x9e0   : > { %6615 = vmatprep.subr.bf16.mxu1 %v8490_v55 }
 0x9e3   : > { %6616 = vmatpush1.bf16.msra.mxu1 %v8488_v59 }
 0x9e4   : > { %6617 = vmatprep.subr.bf16.mxu1 %v8496_v51  ;;  %v4559_v51 = vld [vmem:[#allocation6 + $0xc] sm:$0x3] }
 0x9e7   : > { %6618 = vmatpush1.bf16.msra.mxu1 %v8494_v61 }
 0x9e8   : > { %6619 = vmatprep.subr.bf16.mxu1 %v8502_v4 }
 0x9eb   : > { %6620 = vmatpush1.bf16.msra.mxu1 %v8500_v3  ;;  %v4568_v3 = vld [vmem:[#allocation6 + $0xe] sm:$0x3] }
 0x9ec   : > { %6621 = vmatprep.subr.bf16.mxu1 %v8508_v8 }
 0x9ef   : > { %6622 = vmatpush1.bf16.msra.mxu1 %v8506_v7 }
 0x9f0   : > { %6623 = vmatprep.subr.bf16.mxu1 %v8514_v10 }
 0x9f3   : > { %6624 = vmatpush1.bf16.msra.mxu1 %v8512_v12 }
 0x9f4   : > { %6625 = vmatprep.subr.bf16.mxu1 %v8520_v14 }
 0x9f7   : > { %6626 = vmatpush1.bf16.msra.mxu1 %v8518_v16  ;;  %v8528_v16 = vld [vmem:[%s11124_s15 + $0x100] ss:$8 sps:$4 sm:$0xff]  }
 0x9f8   : > { %6627 = vmatprep.subr.bf16.mxu1 %v8526_v19 }
 0x9fb   : > { %6628 = vmatpush1.bf16.msra.mxu1 %v8524_v21 }
 0x9fc   : > { %6629 = vmatprep.subr.bf16.mxu1 %v8533_v23 }
 0x9ff   : > { %6630 = vmatpush1.bf16.msra.mxu1 %v8531_v25 }
 0xa00   : > { %6640 = vmatprep.subr.bf16.mxu1 %v8539_v26  ;;  %v8534_v26 = vld [vmem:[%s11124_s15 + $0x110] ss:$8 sps:$4 sm:$0xff]  }
 0xa95   : > { %v4474_v32 = vpop.f32.mrb[60].mxu1 }
 0xa96   : > { %v4476_v33 = vpop.f32.mrb[61].mxu1 }
 0xa97   : > { %v7291_v34 = vpack.c.bf16 %v4476_v33, %v4474_v32  ;;  %v4478_v35 = vpop.f32.mrb[62].mxu1  ;;  %v8542_v32 = vld [vmem:[%s11124_s15 + $0x124] ss:$8 sps:$4 sm:$0xff]   ;;  %v8545_v33 = vld [vmem:[%s11124_s15 + $0x414] ss:$8 sps:$4 sm:$0xff]  }
 0xa98   : > { %v4480_v36 = vpop.f32.mrb[63].mxu1 }
 0xa99   : > { %v4494_v37 = vrot.slane %v7291_v34, %v10326_v31  ;;  %v7296_v38 = vpack.c.bf16 %v4480_v36, %v4478_v35  ;;  %v8540_v35 = vld [vmem:[%s11124_s15 + $0x120] ss:$8 sps:$4 sm:$0xff]   ;;  %v8543_v36 = vld [vmem:[%s11124_s15 + $0x410] ss:$8 sps:$4 sm:$0xff]  }
 0xa9b   : > { %v4501_v24 = vrot.slane %v4494_v37, %v10326_v31  ;;  %v4522_v43 = vcombine.high %v4494_v37, %v4494_v37  ;;  %v4582_v44 = vrot.slane %v7296_v38, %v10326_v31  ;;  %v8548_v37 = vld [vmem:[%s11124_s15 + $0x134] ss:$8 sps:$4 sm:$0xff]   ;;  %v8551_v38 = vld [vmem:[%s11124_s15 + $0x424] ss:$8 sps:$4 sm:$0xff]  }
 0xa9d   : > { %v4511_v42 = vsel %vm10329_vm2, %v4501_v24, %v4510_v40  ;;  %v4514_v47 = vshrl.u32 %v4501_v24, 16  ;;  %v4529_v48 = vrot.slane %v4522_v43, %v10326_v31  ;;  %v4543_v1 = vcombine.high %v4501_v24, %v4501_v24  ;;  %v8549_v40 = vld [vmem:[%s11124_s15 + $0x420] ss:$8 sps:$4 sm:$0xff]   ;;  %v8554_v24 = vld [vmem:[%s11124_s15 + $0x144] ss:$8 sps:$4 sm:$0xff]  }
 0xa9e   : > { %4512 = vst [vmem:[#allocation6] sm:$0x3] %v4511_v42  ;;  %v4589_v53 = vrot.slane %v4582_v44, %v10326_v31  ;;  %v8557_v43 = vld [vmem:[%s11124_s15 + $0x434] ss:$8 sps:$4 sm:$0xff]   ;;  %v8552_v44 = vld [vmem:[%s11124_s15 + $0x140] ss:$8 sps:$4 sm:$0xff]  }
 0xa9f   : > { %v4520_v63 = vsel %vm10329_vm2, %v4514_v47, %v4519_v45  ;;  %v4532_v54 = vsel %vm10329_vm2, %v4529_v48, %v4531_v46  ;;  %v4535_v55 = vshrl.u32 %v4529_v48, 16  ;;  %v4546_v59 = vsel %vm10329_vm2, %v4543_v1, %v4545_v41  ;;  %v8555_v45 = vld [vmem:[%s11124_s15 + $0x430] ss:$8 sps:$4 sm:$0xff]   ;;  %v8560_v46 = vld [vmem:[%s11124_s15 + $0x154] ss:$8 sps:$4 sm:$0xff]  }
 0xaa0   : > { %4521 = vst [vmem:[#allocation6 + $0x2] sm:$0x3] %v4520_v63  ;;  %4533 = vst [vmem:[#allocation6 + $0x4] sm:$0x3] %v4532_v54  ;;  %v4549_v52 = vshrl.u32 %v4543_v1, 16  ;;  %v4557_v61 = vcombine.high %v4529_v48, %v4529_v48  ;;  %v4592_v0 = vsel %vm10329_vm2, %v4589_v53, %v4591_v49 }
 0xaa1   : > { %4547 = vst [vmem:[#allocation6 + $0x8] sm:$0x3] %v4546_v59  ;;  %v4541_v2 = vsel %vm10329_vm2, %v4535_v55, %v4540_v50  ;;  %4593 = vst [vmem:[#allocation6 + $0x10] sm:$0x3] %v4592_v0  ;;  %v8563_v41 = vld [vmem:[%s11124_s15 + $0x444] ss:$8 sps:$4 sm:$0xff]  }
 0xaa2   : > { %4542 = vst [vmem:[#allocation6 + $0x6] sm:$0x3] %v4541_v2  ;;  %v4555_v4 = vsel %vm10329_vm2, %v4549_v52, %v4554_v60  ;;  %v4560_v5 = vsel %vm10329_vm2, %v4557_v61, %v4559_v51  ;;  %v4563_v6 = vshrl.u32 %v4557_v61, 16  ;;  %v8558_v42 = vld [vmem:[%s11124_s15 + $0x150] ss:$8 sps:$4 sm:$0xff]  }
 0xaa3   : > { %4556 = vst [vmem:[#allocation6 + $0xa] sm:$0x3] %v4555_v4  ;;  %4561 = vst [vmem:[#allocation6 + $0xc] sm:$0x3] %v4560_v5  ;;  %v8561_v47 = vld [vmem:[%s11124_s15 + $0x440] ss:$8 sps:$4 sm:$0xff]  }
 0xaa4   : > { %v4569_v7 = vsel %vm10329_vm2, %v4563_v6, %v4568_v3  ;;  %v8566_v48 = vld [vmem:[%s11124_s15 + $0x164] ss:$8 sps:$4 sm:$0xff]   ;;  %v8569_v1 = vld [vmem:[%s11124_s15 + $0x454] ss:$8 sps:$4 sm:$0xff]   ;;  %v8564_v49 = vld [vmem:[%s11124_s15 + $0x160] ss:$8 sps:$4 sm:$0xff]  }
 0xaa5   : > { %4570 = vst [vmem:[#allocation6 + $0xe] sm:$0x3] %v4569_v7  ;;  %v8567_v50 = vld [vmem:[%s11124_s15 + $0x450] ss:$8 sps:$4 sm:$0xff]   ;;  %v8572_v53 = vld [vmem:[%s11124_s15 + $0x174] ss:$8 sps:$4 sm:$0xff]  }
 0xaa6   : > { %v8575_v63 = vld [vmem:[%s11124_s15 + $0x464] ss:$8 sps:$4 sm:$0xff]   ;;  %v8570_v54 = vld [vmem:[%s11124_s15 + $0x170] ss:$8 sps:$4 sm:$0xff]   ;;  %v8573_v55 = vld [vmem:[%s11124_s15 + $0x460] ss:$8 sps:$4 sm:$0xff]  }
 0xaa7   : > { %v8578_v59 = vld [vmem:[%s11124_s15 + $0x184] ss:$8 sps:$4 sm:$0xff]   ;;  %v8581_v60 = vld [vmem:[%s11124_s15 + $0x474] ss:$8 sps:$4 sm:$0xff]   ;;  %v8576_v51 = vld [vmem:[%s11124_s15 + $0x180] ss:$8 sps:$4 sm:$0xff]  }
 0xaa8   : > { %v8579_v52 = vld [vmem:[%s11124_s15 + $0x470] ss:$8 sps:$4 sm:$0xff]   ;;  %v8584_v61 = vld [vmem:[%s11124_s15 + $0x194] ss:$8 sps:$4 sm:$0xff]   ;;  %v8587_v0 = vld [vmem:[%s11124_s15 + $0x484] ss:$8 sps:$4 sm:$0xff]  }
 0xaa9   : > { %v4594_v8 = vld [vmem:[#allocation6] sm:$0xff]  ;;  %v8585_v3 = vld [vmem:[%s11124_s15 + $0x480] ss:$8 sps:$4 sm:$0xff]   ;;  %v8590_v4 = vld [vmem:[%s11124_s15 + $0x1a4] ss:$8 sps:$4 sm:$0xff]  }
 0xaaa   : > { %v4898_v9 = vcombine.high %v4594_v8, %v4594_v8  ;;  %v4905_v10 = vrot.slane %v4594_v8, %v10326_v31  ;;  %v8582_v2 = vld [vmem:[%s11124_s15 + $0x190] ss:$8 sps:$4 sm:$0xff]   ;;  %v8593_v5 = vld [vmem:[%s11124_s15 + $0x494] ss:$8 sps:$4 sm:$0xff]   ;;  %v8588_v6 = vld [vmem:[%s11124_s15 + $0x1a0] ss:$8 sps:$4 sm:$0xff]  }
 0xaab   : > { %v8591_v7 = vld [vmem:[%s11124_s15 + $0x490] ss:$8 sps:$4 sm:$0xff]   ;;  %v8596_v8 = vld [vmem:[%s11124_s15 + $0x1b4] ss:$8 sps:$4 sm:$0xff]  }
 0xaac   : > { %v4913_v11 = vcombine.high %v4905_v10, %v4905_v10  ;;  %v4912_v12 = vrot.slane %v4898_v9, %v10326_v31  ;;  %v10357_v13 = vld [vmem:[#allocation6 + $0x8] sm:$0xff]  ;;  %v10368_v19 = vrot.slane %v4905_v10, %v10326_v31  ;;  %v8599_v9 = vld [vmem:[%s11124_s15 + $0x4a4] ss:$8 sps:$4 sm:$0xff]  }
 0xaad   : > { %v10361_v14 = vrot.slane %v10357_v13, %v10326_v31  ;;  %v8594_v10 = vld [vmem:[%s11124_s15 + $0x1b0] ss:$8 sps:$4 sm:$0xff]  }
 0xaae   : > { %v4935_v15 = vrot.slane %v4913_v11, %v10326_v31  ;;  %v4914_v17 = vcombine.high %v4912_v12, %v4912_v12  ;;  %v10374_v21 = vrot.slane %v4912_v12, %v10326_v31  ;;  %v8597_v11 = vld [vmem:[%s11124_s15 + $0x4a0] ss:$8 sps:$4 sm:$0xff]   ;;  %v8602_v12 = vld [vmem:[%s11124_s15 + $0x1c4] ss:$8 sps:$4 sm:$0xff]  }
 0xaaf   : > { %v4962_v25 = vcombine.high %v10361_v14, %v10361_v14 }
 0xab0   : > { %6508 = vmatprep.mubr.bf16.mxu0 %v4935_v15  ;;  %v4945_v22 = vcombine.high %v4935_v15, %v4935_v15  ;;  %v10377_v23 = vrot.slane %v4914_v17, %v10326_v31  ;;  %v4944_v30 = vcombine.high %v10374_v21, %v10374_v21  ;;  %v8605_v15 = vld [vmem:[%s11124_s15 + $0x4b4] ss:$8 sps:$4 sm:$0xff]   ;;  %v8603_v17 = vld [vmem:[%s11124_s15 + $0x4b0] ss:$8 sps:$4 sm:$0xff]  }
 0xab1   : > { %6509 = vmatmul.mubr.bf16.vlgmr.msra.gmra.mrb[108].mxu0 %v10368_v19  ;;  %v10399_v34 = vrot.slane %v4962_v25, %v10326_v31  ;;  %v8606_v25 = vld [vmem:[%s11124_s15 + $0x1d0] ss:$8 sps:$4 sm:$0xff]  }
 0xab2   : > { %6518 = vmatpush1.bf16.msra.mxu0 %v8528_v16  ;;  %6549 = vmatprep.mubr.bf16.mxu0 %v4945_v22  ;;  %v4946_v27 = vcombine.high %v10377_v23, %v10377_v23  ;;  %v8600_v16 = vld [vmem:[%s11124_s15 + $0x1c0] ss:$8 sps:$4 sm:$0xff]   ;;  %v8611_v22 = vld [vmem:[%s11124_s15 + $0x4c4] ss:$8 sps:$4 sm:$0xff]  }
 0xab3   : > { %6519 = vmatprep.subr.bf16.mxu0 %v8536_v20  ;;  %v8608_v20 = vld [vmem:[%s11124_s15 + $0x1d4] ss:$8 sps:$4 sm:$0xff]  }
 0xab4   : > { %6631 = vmatprep.mubr.bf16.mxu1 %v4946_v27  ;;  %v8614_v27 = vld [vmem:[%s11124_s15 + $0x1e4] ss:$8 sps:$4 sm:$0xff]  }
 0xab5   : > { %6632 = vmatmul.mubr.bf16.vlgmr.msra.gmra.mrb[64].mxu1 %v4944_v30  ;;  %v8612_v30 = vld [vmem:[%s11124_s15 + $0x1e0] ss:$8 sps:$4 sm:$0xff]  }
 0xab6   : > { %6520 = vmatpush1.bf16.msra.mxu0 %v8534_v26  ;;  %6641 = vmatpush1.bf16.msra.mxu1 %v8537_v28  ;;  %v8609_v26 = vld [vmem:[%s11124_s15 + $0x4c0] ss:$8 sps:$4 sm:$0xff]   ;;  %v8617_v28 = vld [vmem:[%s11124_s15 + $0x4d4] ss:$8 sps:$4 sm:$0xff]  }
 0xab7   : > { %6672 = vmatprep.mubr.bf16.mxu1 %v10399_v34  ;;  %6521 = vmatprep.subr.bf16.mxu0 %v8542_v32  ;;  %v8615_v32 = vld [vmem:[%s11124_s15 + $0x4d0] ss:$8 sps:$4 sm:$0xff]  }
 0xab8   : > { %6642 = vmatprep.subr.bf16.mxu1 %v8545_v33  ;;  %v8620_v33 = vld [vmem:[%s11124_s15 + $0x1f4] ss:$8 sps:$4 sm:$0xff]  }
 0xaba   : > { %6522 = vmatpush1.bf16.msra.mxu0 %v8540_v35  ;;  %6643 = vmatpush1.bf16.msra.mxu1 %v8543_v36  ;;  %v8623_v35 = vld [vmem:[%s11124_s15 + $0x4e4] ss:$8 sps:$4 sm:$0xff]   ;;  %v8618_v36 = vld [vmem:[%s11124_s15 + $0x1f0] ss:$8 sps:$4 sm:$0xff]  }
 0xabb   : > { %6523 = vmatprep.subr.bf16.mxu0 %v8548_v37  ;;  %6644 = vmatprep.subr.bf16.mxu1 %v8551_v38  ;;  %v8621_v37 = vld [vmem:[%s11124_s15 + $0x4e0] ss:$8 sps:$4 sm:$0xff]   ;;  %v8626_v38 = vld [vmem:[%s11124_s15 + $0x204] ss:$8 sps:$4 sm:$0xff]  }
 0xabe   : > { %6524 = vmatpush1.bf16.msra.mxu0 %v8546_v39  ;;  %6645 = vmatpush1.bf16.msra.mxu1 %v8549_v40  ;;  %v8629_v39 = vld [vmem:[%s11124_s15 + $0x4f4] ss:$8 sps:$4 sm:$0xff]   ;;  %v8624_v40 = vld [vmem:[%s11124_s15 + $0x200] ss:$8 sps:$4 sm:$0xff]  }
 0xabf   : > { %6525 = vmatprep.subr.bf16.mxu0 %v8554_v24  ;;  %6646 = vmatprep.subr.bf16.mxu1 %v8557_v43  ;;  %v4943_v24 = vcombine.high %v10368_v19, %v10368_v19  ;;  %v8627_v43 = vld [vmem:[%s11124_s15 + $0x4f0] ss:$8 sps:$4 sm:$0xff]  }
 0xac0   : > { %v8630_v19 = vld [vmem:[%s11124_s15 + $0x210] ss:$8 sps:$4 sm:$0xff]  }
 0xac2   : > { %6526 = vmatpush1.bf16.msra.mxu0 %v8552_v44  ;;  %6647 = vmatpush1.bf16.msra.mxu1 %v8555_v45  ;;  %v8632_v44 = vld [vmem:[%s11124_s15 + $0x214] ss:$8 sps:$4 sm:$0xff]   ;;  %v8635_v45 = vld [vmem:[%s11124_s15 + $0x504] ss:$8 sps:$4 sm:$0xff]  }
 0xac3   : > { %6527 = vmatprep.subr.bf16.mxu0 %v8560_v46  ;;  %6648 = vmatprep.subr.bf16.mxu1 %v8563_v41  ;;  %v8633_v46 = vld [vmem:[%s11124_s15 + $0x500] ss:$8 sps:$4 sm:$0xff]   ;;  %v10593_v41 = vrot.slane %v10361_v14, %v10326_v31 }
 0xac4   : > { %v8636_v14 = vld [vmem:[%s11124_s15 + $0x220] ss:$8 sps:$4 sm:$0xff]  }
 0xac6   : > { %6528 = vmatpush1.bf16.msra.mxu0 %v8558_v42  ;;  %6649 = vmatpush1.bf16.msra.mxu1 %v8561_v47  ;;  %v8638_v42 = vld [vmem:[%s11124_s15 + $0x224] ss:$8 sps:$4 sm:$0xff]   ;;  %v4994_v47 = vcombine.high %v10399_v34, %v10399_v34 }
 0xac7   : > { %6529 = vmatprep.subr.bf16.mxu0 %v8566_v48  ;;  %6650 = vmatprep.subr.bf16.mxu1 %v8569_v1  ;;  %v8639_v48 = vld [vmem:[%s11124_s15 + $0x510] ss:$8 sps:$4 sm:$0xff]   ;;  %v8644_v1 = vld [vmem:[%s11124_s15 + $0x234] ss:$8 sps:$4 sm:$0xff]   ;;  %v8647_v34 = vld [vmem:[%s11124_s15 + $0x524] ss:$8 sps:$4 sm:$0xff]  }
 0xaca   : > { %6530 = vmatpush1.bf16.msra.mxu0 %v8564_v49  ;;  %6651 = vmatpush1.bf16.msra.mxu1 %v8567_v50  ;;  %v8642_v49 = vld [vmem:[%s11124_s15 + $0x230] ss:$8 sps:$4 sm:$0xff]   ;;  %v8645_v50 = vld [vmem:[%s11124_s15 + $0x520] ss:$8 sps:$4 sm:$0xff]  }
 0xacb   : > { %6531 = vmatprep.subr.bf16.mxu0 %v8572_v53  ;;  %6652 = vmatprep.subr.bf16.mxu1 %v8575_v63  ;;  %v8650_v53 = vld [vmem:[%s11124_s15 + $0x244] ss:$8 sps:$4 sm:$0xff]   ;;  %v8653_v63 = vld [vmem:[%s11124_s15 + $0x534] ss:$8 sps:$4 sm:$0xff]  }
 0xace   : > { %6532 = vmatpush1.bf16.msra.mxu0 %v8570_v54  ;;  %6653 = vmatpush1.bf16.msra.mxu1 %v8573_v55  ;;  %v8648_v54 = vld [vmem:[%s11124_s15 + $0x240] ss:$8 sps:$4 sm:$0xff]   ;;  %v8651_v55 = vld [vmem:[%s11124_s15 + $0x530] ss:$8 sps:$4 sm:$0xff]  }
 0xacf   : > { %6533 = vmatprep.subr.bf16.mxu0 %v8578_v59  ;;  %6654 = vmatprep.subr.bf16.mxu1 %v8581_v60  ;;  %v8656_v59 = vld [vmem:[%s11124_s15 + $0x254] ss:$8 sps:$4 sm:$0xff]   ;;  %v8659_v60 = vld [vmem:[%s11124_s15 + $0x544] ss:$8 sps:$4 sm:$0xff]  }
 0xad2   : > { %6534 = vmatpush1.bf16.msra.mxu0 %v8576_v51  ;;  %6655 = vmatpush1.bf16.msra.mxu1 %v8579_v52  ;;  %v8654_v51 = vld [vmem:[%s11124_s15 + $0x250] ss:$8 sps:$4 sm:$0xff]   ;;  %v8657_v52 = vld [vmem:[%s11124_s15 + $0x540] ss:$8 sps:$4 sm:$0xff]  }
 0xad3   : > { %6535 = vmatprep.subr.bf16.mxu0 %v8584_v61  ;;  %6656 = vmatprep.subr.bf16.mxu1 %v8587_v0  ;;  %v8662_v61 = vld [vmem:[%s11124_s15 + $0x264] ss:$8 sps:$4 sm:$0xff]   ;;  %v8665_v0 = vld [vmem:[%s11124_s15 + $0x554] ss:$8 sps:$4 sm:$0xff]  }
 0xad6   : > { %6536 = vmatpush1.bf16.msra.mxu0 %v8582_v2  ;;  %6657 = vmatpush1.bf16.msra.mxu1 %v8585_v3  ;;  %v8660_v2 = vld [vmem:[%s11124_s15 + $0x260] ss:$8 sps:$4 sm:$0xff]   ;;  %v8663_v3 = vld [vmem:[%s11124_s15 + $0x550] ss:$8 sps:$4 sm:$0xff]  }
 0xad7   : > { %6537 = vmatprep.subr.bf16.mxu0 %v8590_v4  ;;  %6658 = vmatprep.subr.bf16.mxu1 %v8593_v5  ;;  %v8668_v4 = vld [vmem:[%s11124_s15 + $0x274] ss:$8 sps:$4 sm:$0xff]   ;;  %v8671_v5 = vld [vmem:[%s11124_s15 + $0x564] ss:$8 sps:$4 sm:$0xff]  }
 0xada   : > { %6538 = vmatpush1.bf16.msra.mxu0 %v8588_v6  ;;  %6659 = vmatpush1.bf16.msra.mxu1 %v8591_v7  ;;  %v8666_v6 = vld [vmem:[%s11124_s15 + $0x270] ss:$8 sps:$4 sm:$0xff]   ;;  %v8669_v7 = vld [vmem:[%s11124_s15 + $0x560] ss:$8 sps:$4 sm:$0xff]  }
 0xadb   : > { %6539 = vmatprep.subr.bf16.mxu0 %v8596_v8  ;;  %6660 = vmatprep.subr.bf16.mxu1 %v8599_v9  ;;  %v8674_v8 = vld [vmem:[%s11124_s15 + $0x284] ss:$8 sps:$4 sm:$0xff]   ;;  %v8677_v9 = vld [vmem:[%s11124_s15 + $0x574] ss:$8 sps:$4 sm:$0xff]  }
 0xade   : > { %6540 = vmatpush1.bf16.msra.mxu0 %v8594_v10  ;;  %6661 = vmatpush1.bf16.msra.mxu1 %v8597_v11  ;;  %v8672_v10 = vld [vmem:[%s11124_s15 + $0x280] ss:$8 sps:$4 sm:$0xff]   ;;  %v8675_v11 = vld [vmem:[%s11124_s15 + $0x570] ss:$8 sps:$4 sm:$0xff]  }
 0xadf   : > { %6541 = vmatprep.subr.bf16.mxu0 %v8602_v12  ;;  %6662 = vmatprep.subr.bf16.mxu1 %v8605_v15  ;;  %v8680_v12 = vld [vmem:[%s11124_s15 + $0x294] ss:$8 sps:$4 sm:$0xff]   ;;  %v8683_v15 = vld [vmem:[%s11124_s15 + $0x584] ss:$8 sps:$4 sm:$0xff]  }
 0xae2   : > { %6542 = vmatpush1.bf16.msra.mxu0 %v8600_v16  ;;  %6663 = vmatpush1.bf16.msra.mxu1 %v8603_v17  ;;  %v8678_v16 = vld [vmem:[%s11124_s15 + $0x290] ss:$8 sps:$4 sm:$0xff]   ;;  %v8681_v17 = vld [vmem:[%s11124_s15 + $0x580] ss:$8 sps:$4 sm:$0xff]  }
 0xae3   : > { %6543 = vmatprep.subr.bf16.mxu0 %v8608_v20  ;;  %6664 = vmatprep.subr.bf16.mxu1 %v8611_v22  ;;  %v8686_v20 = vld [vmem:[%s11124_s15 + $0x2a4] ss:$8 sps:$4 sm:$0xff]   ;;  %v8689_v22 = vld [vmem:[%s11124_s15 + $0x594] ss:$8 sps:$4 sm:$0xff]  }
 0xae6   : > { %6544 = vmatpush1.bf16.msra.mxu0 %v8606_v25  ;;  %6665 = vmatpush1.bf16.msra.mxu1 %v8609_v26  ;;  %v8684_v25 = vld [vmem:[%s11124_s15 + $0x2a0] ss:$8 sps:$4 sm:$0xff]   ;;  %v8687_v26 = vld [vmem:[%s11124_s15 + $0x590] ss:$8 sps:$4 sm:$0xff]  }
 0xae7   : > { %6545 = vmatprep.subr.bf16.mxu0 %v8614_v27  ;;  %6666 = vmatprep.subr.bf16.mxu1 %v8617_v28  ;;  %v8692_v27 = vld [vmem:[%s11124_s15 + $0x2b4] ss:$8 sps:$4 sm:$0xff]   ;;  %v8695_v28 = vld [vmem:[%s11124_s15 + $0x5a4] ss:$8 sps:$4 sm:$0xff]  }
 0xaea   : > { %6546 = vmatpush1.bf16.msra.mxu0 %v8612_v30  ;;  %6667 = vmatpush1.bf16.msra.mxu1 %v8615_v32  ;;  %v8690_v30 = vld [vmem:[%s11124_s15 + $0x2b0] ss:$8 sps:$4 sm:$0xff]   ;;  %v8693_v32 = vld [vmem:[%s11124_s15 + $0x5a0] ss:$8 sps:$4 sm:$0xff]  }
 0xaeb   : > { %6547 = vmatprep.subr.bf16.mxu0 %v8620_v33  ;;  %6668 = vmatprep.subr.bf16.mxu1 %v8623_v35  ;;  %v8698_v33 = vld [vmem:[%s11124_s15 + $0x2c4] ss:$8 sps:$4 sm:$0xff]   ;;  %v8701_v35 = vld [vmem:[%s11124_s15 + $0x5b4] ss:$8 sps:$4 sm:$0xff]  }
 0xaee   : > { %6548 = vmatpush1.bf16.msra.mxu0 %v8618_v36  ;;  %6669 = vmatpush1.bf16.msra.mxu1 %v8621_v37  ;;  %v8696_v36 = vld [vmem:[%s11124_s15 + $0x2c0] ss:$8 sps:$4 sm:$0xff]   ;;  %v8699_v37 = vld [vmem:[%s11124_s15 + $0x5b0] ss:$8 sps:$4 sm:$0xff]  }
 0xaef   : > { %6558 = vmatprep.subr.bf16.mxu0 %v8626_v38  ;;  %6670 = vmatprep.subr.bf16.mxu1 %v8629_v39  ;;  %v8704_v38 = vld [vmem:[%s11124_s15 + $0x2d4] ss:$8 sps:$4 sm:$0xff]   ;;  %v8707_v39 = vld [vmem:[%s11124_s15 + $0x5c4] ss:$8 sps:$4 sm:$0xff]  }
 0xaf1   : > { %6550 = vmatmul.mubr.bf16.vlgmr.msra.gmra.mrb[108].mxu0 %v4943_v24  ;;  %v8705_v24 = vld [vmem:[%s11124_s15 + $0x5c0] ss:$8 sps:$4 sm:$0xff]  }
 0xaf2   : > { %6559 = vmatpush1.bf16.msra.mxu0 %v8624_v40  ;;  %6590 = vmatprep.mubr.bf16.mxu0 %v10377_v23  ;;  %v8641_v23 = vld [vmem:[%s11124_s15 + $0x514] ss:$8 sps:$4 sm:$0xff]   ;;  %v8702_v40 = vld [vmem:[%s11124_s15 + $0x2d0] ss:$8 sps:$4 sm:$0xff]  }
 0xaf3   : > { %6671 = vmatpush1.bf16.msra.mxu1 %v8627_v43  ;;  %6560 = vmatprep.subr.bf16.mxu0 %v8632_v44  ;;  %v8710_v43 = vld [vmem:[%s11124_s15 + $0x2e4] ss:$8 sps:$4 sm:$0xff]   ;;  %v8713_v44 = vld [vmem:[%s11124_s15 + $0x5d4] ss:$8 sps:$4 sm:$0xff]  }
 0xaf4   : > { %6681 = vmatprep.subr.bf16.mxu1 %v8635_v45  ;;  %v8708_v45 = vld [vmem:[%s11124_s15 + $0x2e0] ss:$8 sps:$4 sm:$0xff]  }
 0xaf6   : > { %6673 = vmatmul.mubr.bf16.vlgmr.msra.gmra.mrb[64].mxu1 %v10593_v41  ;;  %6561 = vmatpush1.bf16.msra.mxu0 %v8630_v19  ;;  %v8711_v19 = vld [vmem:[%s11124_s15 + $0x5d0] ss:$8 sps:$4 sm:$0xff]  }
 0xaf7   : > { %6682 = vmatpush1.bf16.msra.mxu1 %v8633_v46  ;;  %6713 = vmatprep.mubr.bf16.mxu1 %v4994_v47  ;;  %v8716_v46 = vld [vmem:[%s11124_s15 + $0x2f4] ss:$8 sps:$4 sm:$0xff]   ;;  %v8714_v47 = vld [vmem:[%s11124_s15 + $0x2f0] ss:$8 sps:$4 sm:$0xff]  }
 0xaf8   : > { %6562 = vmatprep.subr.bf16.mxu0 %v8638_v42  ;;  %6683 = vmatprep.subr.bf16.mxu1 %v8641_v23  ;;  %v8719_v42 = vld [vmem:[%s11124_s15 + $0x5e4] ss:$8 sps:$4 sm:$0xff]   ;;  %v4947_v23 = vcombine.high %v10357_v13, %v10357_v13  ;;  %v8720_v13 = vld [vmem:[%s11124_s15 + $0x5f0] ss:$8 sps:$4 sm:$0xff]  }
 0xafa   : > { %6563 = vmatpush1.bf16.msra.mxu0 %v8636_v14  ;;  %v8717_v14 = vld [vmem:[%s11124_s15 + $0x5e0] ss:$8 sps:$4 sm:$0xff]  }
 0xafb   : > { %6684 = vmatpush1.bf16.msra.mxu1 %v8639_v48  ;;  %6564 = vmatprep.subr.bf16.mxu0 %v8644_v1  ;;  %v8722_v48 = vld [vmem:[%s11124_s15 + $0x5f4] ss:$8 sps:$4 sm:$0xff]   ;;  %v10772_v1 = vrot.slane %v4947_v23, %v10326_v31 }
 0xafc   : > { %6685 = vmatprep.subr.bf16.mxu1 %v8647_v34  ;;  %v8725_v34 = vld [vmem:[%s11124_s15 + $0x604] ss:$8 sps:$4 sm:$0xff]   ;;  %v8795_v23 = vld [vmem:[%s11124_s15 + $0x774] ss:$8 sps:$4 sm:$0xff]  }
 0xafe   : > { %6565 = vmatpush1.bf16.msra.mxu0 %v8642_v49  ;;  %v4963_v49 = vcombine.high %v10772_v1, %v10772_v1 }
 0xaff   : > { %6686 = vmatpush1.bf16.msra.mxu1 %v8645_v50  ;;  %6566 = vmatprep.subr.bf16.mxu0 %v8650_v53  ;;  %v8723_v50 = vld [vmem:[%s11124_s15 + $0x600] ss:$8 sps:$4 sm:$0xff]   ;;  %v4992_v53 = vcombine.high %v10593_v41, %v10593_v41  ;;  %v8732_v41 = vld [vmem:[%s11124_s15 + $0x624] ss:$8 sps:$4 sm:$0xff]  }
 0xb00   : > { %6687 = vmatprep.subr.bf16.mxu1 %v8653_v63  ;;  %v8729_v63 = vld [vmem:[%s11124_s15 + $0x614] ss:$8 sps:$4 sm:$0xff]  }
 0xb02   : > { %6567 = vmatpush1.bf16.msra.mxu0 %v8648_v54  ;;  %v10792_v54 = vrot.slane %v4963_v49, %v10326_v31  ;;  %v8802_v49 = vld [vmem:[%s11124_s15 + $0x7a0] ss:$8 sps:$4 sm:$0xff]  }
 0xb03   : > { %6688 = vmatpush1.bf16.msra.mxu1 %v8651_v55  ;;  %6568 = vmatprep.subr.bf16.mxu0 %v8656_v59  ;;  %v8730_v55 = vld [vmem:[%s11124_s15 + $0x620] ss:$8 sps:$4 sm:$0xff]   ;;  %v8735_v59 = vld [vmem:[%s11124_s15 + $0x634] ss:$8 sps:$4 sm:$0xff]  }
 0xb04   : > { %6689 = vmatprep.subr.bf16.mxu1 %v8659_v60  ;;  %v8733_v60 = vld [vmem:[%s11124_s15 + $0x630] ss:$8 sps:$4 sm:$0xff]  }
 0xb06   : > { %6569 = vmatpush1.bf16.msra.mxu0 %v8654_v51  ;;  %v8738_v51 = vld [vmem:[%s11124_s15 + $0x644] ss:$8 sps:$4 sm:$0xff]  }
 0xb07   : > { %6690 = vmatpush1.bf16.msra.mxu1 %v8657_v52  ;;  %6570 = vmatprep.subr.bf16.mxu0 %v8662_v61  ;;  %v8736_v52 = vld [vmem:[%s11124_s15 + $0x640] ss:$8 sps:$4 sm:$0xff]   ;;  %v8741_v61 = vld [vmem:[%s11124_s15 + $0x654] ss:$8 sps:$4 sm:$0xff]  }
 0xb08   : > { %6691 = vmatprep.subr.bf16.mxu1 %v8665_v0  ;;  %v8739_v0 = vld [vmem:[%s11124_s15 + $0x650] ss:$8 sps:$4 sm:$0xff]  }
 0xb0a   : > { %6571 = vmatpush1.bf16.msra.mxu0 %v8660_v2  ;;  %v8744_v2 = vld [vmem:[%s11124_s15 + $0x664] ss:$8 sps:$4 sm:$0xff]  }
 0xb0b   : > { %6692 = vmatpush1.bf16.msra.mxu1 %v8663_v3  ;;  %6572 = vmatprep.subr.bf16.mxu0 %v8668_v4  ;;  %v8742_v3 = vld [vmem:[%s11124_s15 + $0x660] ss:$8 sps:$4 sm:$0xff]   ;;  %v8747_v4 = vld [vmem:[%s11124_s15 + $0x674] ss:$8 sps:$4 sm:$0xff]  }
 0xb0c   : > { %6693 = vmatprep.subr.bf16.mxu1 %v8671_v5  ;;  %v8745_v5 = vld [vmem:[%s11124_s15 + $0x670] ss:$8 sps:$4 sm:$0xff]  }
 0xb0e   : > { %6573 = vmatpush1.bf16.msra.mxu0 %v8666_v6  ;;  %v8750_v6 = vld [vmem:[%s11124_s15 + $0x684] ss:$8 sps:$4 sm:$0xff]  }
 0xb0f   : > { %6694 = vmatpush1.bf16.msra.mxu1 %v8669_v7  ;;  %6574 = vmatprep.subr.bf16.mxu0 %v8674_v8  ;;  %v8748_v7 = vld [vmem:[%s11124_s15 + $0x680] ss:$8 sps:$4 sm:$0xff]   ;;  %v8753_v8 = vld [vmem:[%s11124_s15 + $0x694] ss:$8 sps:$4 sm:$0xff]  }
 0xb10   : > { %6695 = vmatprep.subr.bf16.mxu1 %v8677_v9  ;;  %v8751_v9 = vld [vmem:[%s11124_s15 + $0x690] ss:$8 sps:$4 sm:$0xff]  }
 0xb12   : > { %6575 = vmatpush1.bf16.msra.mxu0 %v8672_v10  ;;  %v8756_v10 = vld [vmem:[%s11124_s15 + $0x6a4] ss:$8 sps:$4 sm:$0xff]  }
 0xb13   : > { %6696 = vmatpush1.bf16.msra.mxu1 %v8675_v11  ;;  %6576 = vmatprep.subr.bf16.mxu0 %v8680_v12  ;;  %v8754_v11 = vld [vmem:[%s11124_s15 + $0x6a0] ss:$8 sps:$4 sm:$0xff]   ;;  %v8759_v12 = vld [vmem:[%s11124_s15 + $0x6b4] ss:$8 sps:$4 sm:$0xff]  }
 0xb14   : > { %6697 = vmatprep.subr.bf16.mxu1 %v8683_v15  ;;  %v8757_v15 = vld [vmem:[%s11124_s15 + $0x6b0] ss:$8 sps:$4 sm:$0xff]  }
 0xb16   : > { %6577 = vmatpush1.bf16.msra.mxu0 %v8678_v16  ;;  %v8762_v16 = vld [vmem:[%s11124_s15 + $0x6c4] ss:$8 sps:$4 sm:$0xff]  }
 0xb17   : > { %6698 = vmatpush1.bf16.msra.mxu1 %v8681_v17  ;;  %6578 = vmatprep.subr.bf16.mxu0 %v8686_v20  ;;  %v8760_v17 = vld [vmem:[%s11124_s15 + $0x6c0] ss:$8 sps:$4 sm:$0xff]   ;;  %v8765_v20 = vld [vmem:[%s11124_s15 + $0x6d4] ss:$8 sps:$4 sm:$0xff]  }
 0xb18   : > { %6699 = vmatprep.subr.bf16.mxu1 %v8689_v22  ;;  %v8763_v22 = vld [vmem:[%s11124_s15 + $0x6d0] ss:$8 sps:$4 sm:$0xff]  }
 0xb1a   : > { %6579 = vmatpush1.bf16.msra.mxu0 %v8684_v25  ;;  %v8768_v25 = vld [vmem:[%s11124_s15 + $0x6e4] ss:$8 sps:$4 sm:$0xff]  }
 0xb1b   : > { %6700 = vmatpush1.bf16.msra.mxu1 %v8687_v26  ;;  %6580 = vmatprep.subr.bf16.mxu0 %v8692_v27  ;;  %v8766_v26 = vld [vmem:[%s11124_s15 + $0x6e0] ss:$8 sps:$4 sm:$0xff]   ;;  %v8771_v27 = vld [vmem:[%s11124_s15 + $0x6f4] ss:$8 sps:$4 sm:$0xff]  }
 0xb1c   : > { %6701 = vmatprep.subr.bf16.mxu1 %v8695_v28  ;;  %v8769_v28 = vld [vmem:[%s11124_s15 + $0x6f0] ss:$8 sps:$4 sm:$0xff]  }
 0xb1e   : > { %6581 = vmatpush1.bf16.msra.mxu0 %v8690_v30  ;;  %v8774_v30 = vld [vmem:[%s11124_s15 + $0x704] ss:$8 sps:$4 sm:$0xff]  }
 0xb1f   : > { %6702 = vmatpush1.bf16.msra.mxu1 %v8693_v32  ;;  %6582 = vmatprep.subr.bf16.mxu0 %v8698_v33  ;;  %v8772_v32 = vld [vmem:[%s11124_s15 + $0x700] ss:$8 sps:$4 sm:$0xff]   ;;  %v10890_v33 = vrot.slane %v10772_v1, %v10326_v31  ;;  %v8801_v1 = vld [vmem:[%s11124_s15 + $0x794] ss:$8 sps:$4 sm:$0xff]  }
 0xb20   : > { %6703 = vmatprep.subr.bf16.mxu1 %v8701_v35  ;;  %v8777_v35 = vld [vmem:[%s11124_s15 + $0x714] ss:$8 sps:$4 sm:$0xff]  }
 0xb22   : > { %6583 = vmatpush1.bf16.msra.mxu0 %v8696_v36  ;;  %v4995_v36 = vcombine.high %v10792_v54, %v10792_v54 }
 0xb23   : > { %6704 = vmatpush1.bf16.msra.mxu1 %v8699_v37  ;;  %6584 = vmatprep.subr.bf16.mxu0 %v8704_v38  ;;  %v8775_v37 = vld [vmem:[%s11124_s15 + $0x710] ss:$8 sps:$4 sm:$0xff]   ;;  %v8780_v38 = vld [vmem:[%s11124_s15 + $0x724] ss:$8 sps:$4 sm:$0xff]  }
 0xb24   : > { %6705 = vmatprep.subr.bf16.mxu1 %v8707_v39  ;;  %v8778_v39 = vld [vmem:[%s11124_s15 + $0x720] ss:$8 sps:$4 sm:$0xff]  }
 0xb26   : > { %6585 = vmatpush1.bf16.msra.mxu0 %v8702_v40  ;;  %v8783_v40 = vld [vmem:[%s11124_s15 + $0x734] ss:$8 sps:$4 sm:$0xff]  }
 0xb27   : > { %6706 = vmatpush1.bf16.msra.mxu1 %v8705_v24  ;;  %6586 = vmatprep.subr.bf16.mxu0 %v8710_v43  ;;  %v8781_v24 = vld [vmem:[%s11124_s15 + $0x730] ss:$8 sps:$4 sm:$0xff]   ;;  %v8786_v43 = vld [vmem:[%s11124_s15 + $0x744] ss:$8 sps:$4 sm:$0xff]  }
 0xb28   : > { %6707 = vmatprep.subr.bf16.mxu1 %v8713_v44  ;;  %v8784_v44 = vld [vmem:[%s11124_s15 + $0x740] ss:$8 sps:$4 sm:$0xff]  }
 0xb2a   : > { %6587 = vmatpush1.bf16.msra.mxu0 %v8708_v45  ;;  %v8789_v45 = vld [vmem:[%s11124_s15 + $0x754] ss:$8 sps:$4 sm:$0xff]  }
 0xb2b   : > { %6708 = vmatpush1.bf16.msra.mxu1 %v8711_v19  ;;  %6588 = vmatprep.subr.bf16.mxu0 %v8716_v46  ;;  %v8787_v19 = vld [vmem:[%s11124_s15 + $0x750] ss:$8 sps:$4 sm:$0xff]   ;;  %v8792_v46 = vld [vmem:[%s11124_s15 + $0x764] ss:$8 sps:$4 sm:$0xff]  }
 0xb2c   : > { %6709 = vmatprep.subr.bf16.mxu1 %v8719_v42  ;;  %v8790_v42 = vld [vmem:[%s11124_s15 + $0x760] ss:$8 sps:$4 sm:$0xff]  }
 0xb2e   : > { %6589 = vmatpush1.bf16.msra.mxu0 %v8714_v47  ;;  %v8793_v47 = vld [vmem:[%s11124_s15 + $0x770] ss:$8 sps:$4 sm:$0xff]  }
 0xb2f   : > { %6710 = vmatpush1.bf16.msra.mxu1 %v8717_v14  ;;  %v8798_v14 = vld [vmem:[%s11124_s15 + $0x784] ss:$8 sps:$4 sm:$0xff]  }
 0xb30   : > { %6711 = vmatprep.subr.bf16.mxu1 %v8722_v48  ;;  %v8796_v48 = vld [vmem:[%s11124_s15 + $0x780] ss:$8 sps:$4 sm:$0xff]  }
 0xb31   : > { %6591 = vmatmul.mubr.bf16.vlgmr.msra.gmra.mrb[108].mxu0 %v10374_v21  ;;  %v8727_v21 = vld [vmem:[%s11124_s15 + $0x610] ss:$8 sps:$4 sm:$0xff]  }
 0xb33   : > { %6712 = vmatpush1.bf16.msra.mxu1 %v8720_v13  ;;  %v8799_v13 = vld [vmem:[%s11124_s15 + $0x790] ss:$8 sps:$4 sm:$0xff]  }
 0xb34   : > { %6722 = vmatprep.subr.bf16.mxu1 %v8725_v34  ;;  %v8804_v34 = vld [vmem:[%s11124_s15 + $0x7a4] ss:$8 sps:$4 sm:$0xff]  }
 0xb36   : > { %6714 = vmatmul.mubr.bf16.vlgmr.msra.gmra.mrb[64].mxu1 %v4992_v53  ;;  %v8805_v53 = vld [vmem:[%s11124_s15 + $0x7b0] ss:$8 sps:$4 sm:$0xff]  }
 0xb37   : > { %6723 = vmatpush1.bf16.msra.mxu1 %v8723_v50  ;;  %6754 = vmatprep.mubr.bf16.mxu1 %v10792_v54  ;;  %v8807_v50 = vld [vmem:[%s11124_s15 + $0x7b4] ss:$8 sps:$4 sm:$0xff]   ;;  %v8808_v54 = vld [vmem:[%s11124_s15 + $0x7c0] ss:$8 sps:$4 sm:$0xff]  }
 0xb38   : > { %6724 = vmatprep.subr.bf16.mxu1 %v8729_v63  ;;  %v8810_v63 = vld [vmem:[%s11124_s15 + $0x7c4] ss:$8 sps:$4 sm:$0xff]  }
 0xb3b   : > { %6725 = vmatpush1.bf16.msra.mxu1 %v8727_v21  ;;  %v8813_v21 = vld [vmem:[%s11124_s15 + $0x7d4] ss:$8 sps:$4 sm:$0xff]  }
 0xb3c   : > { %6726 = vmatprep.subr.bf16.mxu1 %v8732_v41  ;;  %v8811_v41 = vld [vmem:[%s11124_s15 + $0x7d0] ss:$8 sps:$4 sm:$0xff]  }
 0xb3f   : > { %6727 = vmatpush1.bf16.msra.mxu1 %v8730_v55  ;;  %v8816_v55 = vld [vmem:[%s11124_s15 + $0x7e4] ss:$8 sps:$4 sm:$0xff]  }
 0xb40   : > { %6728 = vmatprep.subr.bf16.mxu1 %v8735_v59  ;;  %v8814_v59 = vld [vmem:[%s11124_s15 + $0x7e0] ss:$8 sps:$4 sm:$0xff]  }
 0xb43   : > { %6729 = vmatpush1.bf16.msra.mxu1 %v8733_v60  ;;  %v8819_v60 = vld [vmem:[%s11124_s15 + $0x7f4] ss:$8 sps:$4 sm:$0xff]  }
 0xb44   : > { %6730 = vmatprep.subr.bf16.mxu1 %v8738_v51  ;;  %v10982_v51 = vld.sshfl [vmem:[#allocation6 + $0x10] sm:$0x11 pattern:$0x75316420] }
 0xb47   : > { %6731 = vmatpush1.bf16.msra.mxu1 %v8736_v52  ;;  %v8817_v52 = vld [vmem:[%s11124_s15 + $0x7f0] ss:$8 sps:$4 sm:$0xff]  }
 0xb48   : > { %6732 = vmatprep.subr.bf16.mxu1 %v8741_v61  ;;  %v8822_v61 = vld [vmem:[%s11124_s15 + $0x804] ss:$8 sps:$4 sm:$0xff]  }
 0xb4b   : > { %6733 = vmatpush1.bf16.msra.mxu1 %v8739_v0  ;;  %v5003_v0 = vcombine.high %v10982_v51, %v10982_v51 }
 0xb4c   : > { %6734 = vmatprep.subr.bf16.mxu1 %v8744_v2  ;;  %v8820_v2 = vld [vmem:[%s11124_s15 + $0x800] ss:$8 sps:$4 sm:$0xff]  }
 0xb4f   : > { %6735 = vmatpush1.bf16.msra.mxu1 %v8742_v3  ;;  %v4993_v3 = vcombine.high %v10890_v33, %v10890_v33 }
 0xb50   : > { %6736 = vmatprep.subr.bf16.mxu1 %v8747_v4  ;;  %v8825_v4 = vld [vmem:[%s11124_s15 + $0x814] ss:$8 sps:$4 sm:$0xff]  }
 0xb53   : > { %6737 = vmatpush1.bf16.msra.mxu1 %v8745_v5  ;;  %v5017_v5 = vrot.slane %v5003_v0, %v10326_v31 }
 0xb54   : > { %6738 = vmatprep.subr.bf16.mxu1 %v8750_v6  ;;  %v8823_v6 = vld [vmem:[%s11124_s15 + $0x810] ss:$8 sps:$4 sm:$0xff]  }
 0xb57   : > { %6739 = vmatpush1.bf16.msra.mxu1 %v8748_v7  ;;  %v8828_v7 = vld [vmem:[%s11124_s15 + $0x824] ss:$8 sps:$4 sm:$0xff]  }
 0xb58   : > { %6740 = vmatprep.subr.bf16.mxu1 %v8753_v8  ;;  %v8826_v8 = vld [vmem:[%s11124_s15 + $0x820] ss:$8 sps:$4 sm:$0xff]  }
 0xb5b   : > { %6741 = vmatpush1.bf16.msra.mxu1 %v8751_v9  ;;  %v8831_v9 = vld [vmem:[%s11124_s15 + $0x834] ss:$8 sps:$4 sm:$0xff]  }
 0xb5c   : > { %6742 = vmatprep.subr.bf16.mxu1 %v8756_v10  ;;  %v8829_v10 = vld [vmem:[%s11124_s15 + $0x830] ss:$8 sps:$4 sm:$0xff]  }
 0xb5f   : > { %6743 = vmatpush1.bf16.msra.mxu1 %v8754_v11  ;;  %v8834_v11 = vld [vmem:[%s11124_s15 + $0x844] ss:$8 sps:$4 sm:$0xff]  }
 0xb60   : > { %6744 = vmatprep.subr.bf16.mxu1 %v8759_v12  ;;  %v8832_v12 = vld [vmem:[%s11124_s15 + $0x840] ss:$8 sps:$4 sm:$0xff]  }
 0xb63   : > { %6745 = vmatpush1.bf16.msra.mxu1 %v8757_v15  ;;  %v8837_v15 = vld [vmem:[%s11124_s15 + $0x854] ss:$8 sps:$4 sm:$0xff]  }
 0xb64   : > { %6746 = vmatprep.subr.bf16.mxu1 %v8762_v16  ;;  %v8835_v16 = vld [vmem:[%s11124_s15 + $0x850] ss:$8 sps:$4 sm:$0xff]  }
 0xb67   : > { %6747 = vmatpush1.bf16.msra.mxu1 %v8760_v17  ;;  %v8840_v17 = vld [vmem:[%s11124_s15 + $0x864] ss:$8 sps:$4 sm:$0xff]  }
 0xb68   : > { %6748 = vmatprep.subr.bf16.mxu1 %v8765_v20  ;;  %v8838_v20 = vld [vmem:[%s11124_s15 + $0x860] ss:$8 sps:$4 sm:$0xff]  }
 0xb6b   : > { %6749 = vmatpush1.bf16.msra.mxu1 %v8763_v22  ;;  %v8843_v22 = vld [vmem:[%s11124_s15 + $0x874] ss:$8 sps:$4 sm:$0xff]  }
 0xb6c   : > { %6750 = vmatprep.subr.bf16.mxu1 %v8768_v25  ;;  %v8841_v25 = vld [vmem:[%s11124_s15 + $0x870] ss:$8 sps:$4 sm:$0xff]  }
 0xb6f   : > { %6751 = vmatpush1.bf16.msra.mxu1 %v8766_v26  ;;  %v8846_v26 = vld [vmem:[%s11124_s15 + $0x884] ss:$8 sps:$4 sm:$0xff]  }
 0xb70   : > { %6752 = vmatprep.subr.bf16.mxu1 %v8771_v27  ;;  %v8844_v27 = vld [vmem:[%s11124_s15 + $0x880] ss:$8 sps:$4 sm:$0xff]  }
 0xb73   : > { %6753 = vmatpush1.bf16.msra.mxu1 %v8769_v28  ;;  %v8849_v28 = vld [vmem:[%s11124_s15 + $0x894] ss:$8 sps:$4 sm:$0xff]  }
 0xb74   : > { %6763 = vmatprep.subr.bf16.mxu1 %v8774_v30  ;;  %v8847_v30 = vld [vmem:[%s11124_s15 + $0x890] ss:$8 sps:$4 sm:$0xff]  }
 0xb76   : > { %6755 = vmatmul.mubr.bf16.vlgmr.msra.gmra.mrb[64].mxu1 %v10890_v33  ;;  %v8850_v33 = vld [vmem:[%s11124_s15 + $0x8a0] ss:$8 sps:$4 sm:$0xff]  }
 0xb77   : > { %6764 = vmatpush1.bf16.msra.mxu1 %v8772_v32  ;;  %6795 = vmatprep.mubr.bf16.mxu1 %v4995_v36  ;;  %v8852_v32 = vld [vmem:[%s11124_s15 + $0x8a4] ss:$8 sps:$4 sm:$0xff]   ;;  %v8853_v36 = vld [vmem:[%s11124_s15 + $0x8b0] ss:$8 sps:$4 sm:$0xff]  }
 0xb78   : > { %6765 = vmatprep.subr.bf16.mxu1 %v8777_v35  ;;  %v8855_v35 = vld [vmem:[%s11124_s15 + $0x8b4] ss:$8 sps:$4 sm:$0xff]  }
 0xb7b   : > { %6766 = vmatpush1.bf16.msra.mxu1 %v8775_v37  ;;  %v8858_v37 = vld [vmem:[%s11124_s15 + $0x8c4] ss:$8 sps:$4 sm:$0xff]  }
 0xb7c   : > { %6767 = vmatprep.subr.bf16.mxu1 %v8780_v38  ;;  %v8856_v38 = vld [vmem:[%s11124_s15 + $0x8c0] ss:$8 sps:$4 sm:$0xff]  }
 0xb7f   : > { %6768 = vmatpush1.bf16.msra.mxu1 %v8778_v39  ;;  %v8861_v39 = vld [vmem:[%s11124_s15 + $0x8d4] ss:$8 sps:$4 sm:$0xff]  }
 0xb80   : > { %6769 = vmatprep.subr.bf16.mxu1 %v8783_v40  ;;  %v8859_v40 = vld [vmem:[%s11124_s15 + $0x8d0] ss:$8 sps:$4 sm:$0xff]  }
 0xb83   : > { %6770 = vmatpush1.bf16.msra.mxu1 %v8781_v24  ;;  %v8864_v24 = vld [vmem:[%s11124_s15 + $0x8e4] ss:$8 sps:$4 sm:$0xff]  }
 0xb84   : > { %6771 = vmatprep.subr.bf16.mxu1 %v8786_v43  ;;  %v8862_v43 = vld [vmem:[%s11124_s15 + $0x8e0] ss:$8 sps:$4 sm:$0xff]  }
 0xb87   : > { %6772 = vmatpush1.bf16.msra.mxu1 %v8784_v44  ;;  %v8867_v44 = vld [vmem:[%s11124_s15 + $0x8f4] ss:$8 sps:$4 sm:$0xff]  }
 0xb88   : > { %6773 = vmatprep.subr.bf16.mxu1 %v8789_v45  ;;  %v8865_v45 = vld [vmem:[%s11124_s15 + $0x8f0] ss:$8 sps:$4 sm:$0xff]  }
 0xb8b   : > { %6774 = vmatpush1.bf16.msra.mxu1 %v8787_v19  ;;  %v5010_v19 = vrot.slane %v10982_v51, %v10326_v31 }
 0xb8c   : > { %6775 = vmatprep.subr.bf16.mxu1 %v8792_v46 }
 0xb8f   : > { %6776 = vmatpush1.bf16.msra.mxu1 %v8790_v42 }
 0xb90   : > { %6777 = vmatprep.subr.bf16.mxu1 %v8795_v23 }
 0xb93   : > { %6778 = vmatpush1.bf16.msra.mxu1 %v8793_v47 }
 0xb94   : > { %6779 = vmatprep.subr.bf16.mxu1 %v8798_v14  ;;  %v4889_v14 = vpop.permute.xlu0 %4888 }
 0xb97   : > { %6780 = vmatpush1.bf16.msra.mxu1 %v8796_v48  ;;  %v4894_v48 = vrot.slane %v4889_v14, %v561_v58 }
 0xb98   : > { %6781 = vmatprep.subr.bf16.mxu1 %v8801_v1 }
 0xb9b   : > { %6782 = vmatpush1.bf16.msra.mxu1 %v8799_v13 }
 0xb9c   : > { %6783 = vmatprep.subr.bf16.mxu1 %v8804_v34 }
 0xb9f   : > { %6784 = vmatpush1.bf16.msra.mxu1 %v8802_v49 }
 0xba0   : > { %6785 = vmatprep.subr.bf16.mxu1 %v8807_v50 }
 0xba3   : > { %6786 = vmatpush1.bf16.msra.mxu1 %v8805_v53 }
 0xba4   : > { %6787 = vmatprep.subr.bf16.mxu1 %v8810_v63 }
 0xba7   : > { %6788 = vmatpush1.bf16.msra.mxu1 %v8808_v54 }
 0xba8   : > { %6789 = vmatprep.subr.bf16.mxu1 %v8813_v21 }
 0xbab   : > { %6790 = vmatpush1.bf16.msra.mxu1 %v8811_v41 }
 0xbac   : > { %6791 = vmatprep.subr.bf16.mxu1 %v8816_v55 }
 0xbaf   : > { %6792 = vmatpush1.bf16.msra.mxu1 %v8814_v59 }
 0xbb0   : > { %6793 = vmatprep.subr.bf16.mxu1 %v8819_v60 }
 0xbb3   : > { %6794 = vmatpush1.bf16.msra.mxu1 %v8817_v52 }
 0xbb4   : > { %6804 = vmatprep.subr.bf16.mxu1 %v8822_v61 }
 0xbb6   : > { %6796 = vmatmul.mubr.bf16.vlgmr.msra.gmra.mrb[64].mxu1 %v4993_v3 }
 0xbb7   : > { %6805 = vmatpush1.bf16.msra.mxu1 %v8820_v2  ;;  %6836 = vmatprep.mubr.bf16.mxu1 %v5017_v5 }
 0xbb8   : > { %6806 = vmatprep.subr.bf16.mxu1 %v8825_v4 }
 0xbbb   : > { %6807 = vmatpush1.bf16.msra.mxu1 %v8823_v6 }
 0xbbc   : > { %6808 = vmatprep.subr.bf16.mxu1 %v8828_v7 }
 0xbbf   : > { %6809 = vmatpush1.bf16.msra.mxu1 %v8826_v8 }
 0xbc0   : > { %6810 = vmatprep.subr.bf16.mxu1 %v8831_v9 }
 0xbc3   : > { %6811 = vmatpush1.bf16.msra.mxu1 %v8829_v10 }
 0xbc4   : > { %6812 = vmatprep.subr.bf16.mxu1 %v8834_v11 }
 0xbc7   : > { %6813 = vmatpush1.bf16.msra.mxu1 %v8832_v12 }
 0xbc8   : > { %6814 = vmatprep.subr.bf16.mxu1 %v8837_v15 }
 0xbcb   : > { %6815 = vmatpush1.bf16.msra.mxu1 %v8835_v16 }
 0xbcc   : > { %6816 = vmatprep.subr.bf16.mxu1 %v8840_v17 }
 0xbcf   : > { %6817 = vmatpush1.bf16.msra.mxu1 %v8838_v20 }
 0xbd0   : > { %6818 = vmatprep.subr.bf16.mxu1 %v8843_v22 }
 0xbd3   : > { %6819 = vmatpush1.bf16.msra.mxu1 %v8841_v25 }
 0xbd4   : > { %6820 = vmatprep.subr.bf16.mxu1 %v8846_v26 }
 0xbd7   : > { %6821 = vmatpush1.bf16.msra.mxu1 %v8844_v27 }
 0xbd8   : > { %6822 = vmatprep.subr.bf16.mxu1 %v8849_v28 }
 0xbdb   : > { %6823 = vmatpush1.bf16.msra.mxu1 %v8847_v30 }
 0xbdc   : > { %6824 = vmatprep.subr.bf16.mxu1 %v8852_v32 }
 0xbdf   : > { %6825 = vmatpush1.bf16.msra.mxu1 %v8850_v33 }
 0xbe0   : > { %6826 = vmatprep.subr.bf16.mxu1 %v8855_v35 }
 0xbe3   : > { %6827 = vmatpush1.bf16.msra.mxu1 %v8853_v36 }
 0xbe4   : > { %6828 = vmatprep.subr.bf16.mxu1 %v8858_v37 }
 0xbe7   : > { %6829 = vmatpush1.bf16.msra.mxu1 %v8856_v38 }
 0xbe8   : > { %6830 = vmatprep.subr.bf16.mxu1 %v8861_v39 }
 0xbeb   : > { %6831 = vmatpush1.bf16.msra.mxu1 %v8859_v40 }
 0xbec   : > { %6832 = vmatprep.subr.bf16.mxu1 %v8864_v24 }
 0xbef   : > { %6833 = vmatpush1.bf16.msra.mxu1 %v8862_v43 }
 0xbf0   : > { %6834 = vmatprep.subr.bf16.mxu1 %v8867_v44 }
 0xbf3   : > { %6835 = vmatpush1.bf16.msra.mxu1 %v8865_v45 }
 0xbf6   : > { %6837 = vmatmul.mubr.bf16.vlgmr.msra.gmra.mrb[64].mxu1 %v5010_v19 }
 0xc04   : > { %v6592_v46 = vpop.f32.mrb[108].mxu0 }
 0xc05   : > { %v6594_v42 = vpop.f32.mrb[109].mxu0  ;;  %v8025_v1 = vadd.f32 %v6592_v46, %v4894_v48 }
 0xc06   : > { %v6596_v23 = vpop.f32.mrb[110].mxu0  ;;  %v8027_v13 = vadd.f32 %v6594_v42, %v4894_v48 }
 0xc07   : > { %v6597_v47 = vpop.f32.mrb[111].mxu0 }
 0xcc9   : > { %v6838_v34 = vpop.f32.mrb[64].mxu1 }
 0xcca   : > { %v8026_v49 = vadd.f32 %v8025_v1, %v6838_v34  ;;  %v6840_v50 = vpop.f32.mrb[65].mxu1 }
 0xccb   : > { %v8028_v53 = vadd.f32 %v8027_v13, %v6840_v50  ;;  %v6842_v63 = vpop.f32.mrb[66].mxu1 }
 0xccc   : > { %v6845_v54 = vmul.f32 %v8026_v49, %v9680_v18  ;;  %v6843_v21 = vpop.f32.mrb[67].mxu1 }
 0xccd   : > { %v6846_v41 = vmul.f32 %v8028_v53, %v9680_v18 }
 0xcce   : > { %v6847_v55 = vadd.f32 %v6845_v54, %v9682_v62 }
 0xccf   : > { %v6848_v59 = vadd.f32 %v6846_v41, %v9682_v62 }
 0xcd0   : > { %v6849_v60 = vmul.f32 %v8026_v49, %v6847_v55 }
 0xcd1   : > { %v6850_v57 = vmul.f32 %v8028_v53, %v6848_v59 }
 0xcd2   : > { %v6851_v58 = vadd.f32 %v6849_v60, %v9688_v29 }
 0xcd3   : > { %v6852_v51 = vadd.f32 %v6850_v57, %v9688_v29 }
 0xcd5   : > { %v6855_v52 = vcombine.low %v6851_v58, %v6852_v51 }
 0xcd7   : > { %v6862_v61 = vrot.slane %v6855_v52, %v10326_v31 }
 0xcd9   : > { %v6869_v18 = vrot.slane %v6862_v61, %v10326_v31 }
 0xcdb   : > { %6875 = vst.msk [vmem:[%s540_s1] sm:$0x3] %vm6873_vm3, %v6869_v18 }
 0xcdc PF: > { %s36_s30 = sadd.s32 1, %s8920_s30  }
 0xcdd   : > { %p33_p8 = scmp.ge.s32.totalorder %s36_s30, 4  }
 0xcdf   :  { %35 = sbr.rel (!%p33_p8) target bundleno = 23 (0x17), region = 119 }
 0xce6   :  { %6895 = vsyncpa [#allocation11], 1 }
 0xce7   :  { %6897 = vsyncpa [#allocation11 + $0x1], 1 }

</bundles_post_ra>
